<compile_context>
chip_gen: v6e
topology: v6e:2x2x1
jax: 0.10.0
libtpu: 0.0.40
codegen_flags: <defaults>
</compile_context>

<pallas_src>
import functools

import jax
import jax.numpy as jnp
from jax.experimental import pallas as pl
from jax.experimental.pallas import tpu as pltpu


def _md2d_kernel(x_ref, bt_ref, out_ref, bt_out_ref, *,
                 inv_t, steps, eps, n_valid, mxu_dtype):
    """NMF2D forward for a block of BB slabs.

    x_ref:      (BB, D, Np)  flattened features, already in mxu_dtype
    bt_ref:     (BB, R, D)   initial bases, transposed (D on lanes), f32
    out_ref:    (BB, D, Np)  reconstruction  bases @ coef^T
    bt_out_ref: (BB, R, D)   final bases, transposed
    """
    np_pad = x_ref.shape[-1]

    def to_mxu(v):
        return v if v.dtype == mxu_dtype else v.astype(mxu_dtype)

    def mm(a, b, ca, cb):
        # Batched matmul: batch on dim 0, contraction on (ca, cb).
        # Operands are pre-cast; f32 accumulation on the MXU; no materialized
        # transposes anywhere.
        return jax.lax.dot_general(
            a, b, (((ca,), (cb,)), ((0,), (0,))),
            preferred_element_type=jnp.float32)

    xm = to_mxu(x_ref[...])                      # (BB, D, Np) -- no f32 copy
    basesT = bt_ref[...]                         # (BB, R, D)  f32
    basesT_m = to_mxu(basesT)

    # Shared numerator: btx = bases^T @ x (used by the softmax AND step 0).
    btx = mm(basesT_m, xm, 2, 1)                 # (BB, R, Np)

    # ---- local_inference: coefT = softmax(inv_t * bases^T @ x) over R ----
    logits = inv_t * btx
    logits = logits - jnp.max(logits, axis=1, keepdims=True)
    p = jnp.exp(logits)
    coef_t = p * pl.reciprocal(jnp.sum(p, axis=1, keepdims=True), approx=True)

    if n_valid < np_pad:
        # Zero padded columns once; multiplicative updates keep them zero, so
        # every contraction over N matches the unpadded computation exactly.
        lane = jax.lax.broadcasted_iota(jnp.int32, coef_t.shape, 2)
        coef_t = jnp.where(lane < n_valid, coef_t, 0.0)

    # `steps` x local_step + compute_coef.  Restructured so bases^T @ x is
    # computed exactly once per bases value (dedup of the original logits /
    # step-0 numerator duplication).  Iteration `steps` runs only the coef
    # half, which is exactly compute_coef.
    for step in range(steps + 1):
        # -- coef multiplicative update (local_step 1st half / compute_coef) --
        btb = to_mxu(mm(basesT_m, basesT_m, 2, 2))      # (BB, R, R)
        coef_m = to_mxu(coef_t)
        den = mm(btb, coef_m, 1, 1)                     # (BB, R, Np)
        coef_t = coef_t * btx * pl.reciprocal(den + eps, approx=True)
        if step == steps:
            break
        # -- bases multiplicative update (local_step 2nd half) --
        coef_m = to_mxu(coef_t)
        num_bT = mm(coef_m, xm, 2, 2)                   # (BB, R, D)
        ctc = to_mxu(mm(coef_m, coef_m, 2, 2))          # (BB, R, R)
        den_bT = mm(ctc, basesT_m, 1, 1)                # (BB, R, D) (old bases)
        basesT = basesT * num_bT * pl.reciprocal(den_bT + eps, approx=True)
        basesT_m = to_mxu(basesT)
        # Numerator for the next iteration's coef update (new bases).
        btx = mm(basesT_m, xm, 2, 1)                    # (BB, R, Np)

    # ---- reconstruction: bases @ coef^T (both carried transposed) ----
    recon = mm(basesT_m, to_mxu(coef_t), 1, 1)          # (BB, D, Np)
    out_ref[...] = recon.astype(out_ref.dtype)
    bt_out_ref[...] = basesT.astype(bt_out_ref.dtype)   # lane-dense store


def _vmem_capacity_bytes():
    try:
        return int(pltpu.get_tpu_info().vmem_capacity_bytes)
    except Exception:
        return 64 * 1024 * 1024   # conservative default (v7x: 64 MiB per TC)


def _est_vmem(bb, n_buf, D, R, n_pad, x_bytes, out_bytes):
    """Rough per-grid-step VMEM footprint: pipelined in/out slabs + in-kernel
    f32 intermediates (xm view, recon, ~6 coef-sized temps, bases temps)."""
    dn, rn, rd = bb * D * n_pad, bb * R * n_pad, bb * R * D
    io = n_buf * dn * (x_bytes + out_bytes) + 4 * rd * 4
    live = dn * (x_bytes + 4) + 6 * rn * 4 + 4 * rd * 4
    return io + live


def _pick_block_b(BS, D, R, n_pad, x_bytes, out_bytes, vmem_cap):
    """Batch several (D, N) slabs per grid step to amortize per-step overhead,
    generation-aware: budget ~24 MiB on v7x (64 MiB VMEM), ~48 MiB on
    v5e/v6e (128 MiB).  Keeps >= 2 grid steps when BS allows so both v7x
    TensorCores get work (BS == 1 leaves the second TC idle)."""
    budget = int(0.375 * vmem_cap)
    bb = 1
    for cand in range(1, min(BS, 8) + 1):
        if BS % cand:
            continue
        if BS >= 2 and BS // cand < 2:
            continue
        if _est_vmem(cand, 2, D, R, n_pad, x_bytes, out_bytes) <= budget:
            bb = cand
    single_buffer = _est_vmem(bb, 2, D, R, n_pad, x_bytes, out_bytes) > budget
    est = _est_vmem(bb, 1 if single_buffer else 2, D, R, n_pad, x_bytes, out_bytes)
    return bb, single_buffer, est


def matrix_decomposition_2d(x, bases, *, S=1, inv_t=100.0, steps=7, eps=1e-6,
                            mxu_dtype=jnp.bfloat16, block_b=None):
    """Pallas port of _MatrixDecomposition2DBase.forward (spatial=True, eval).

    x:     (B, C, H, W) float32   NCHW, like the PyTorch module
    bases: (B*S, D, R)  float32   initial bases (already built / normalized)
    returns (x_out (B,C,H,W), bases_out (B,S,D,R))
    Pass mxu_dtype=jnp.float32 for a tolerance-sensitive f32 validation path.
    """
    B, C, H, W = x.shape
    assert C % S == 0, "C must be divisible by MD_S"
    D = C // S
    N = H * W
    BS = B * S
    R = bases.shape[-1]
    assert bases.shape == (BS, D, R), (
        f"bases must have shape {(BS, D, R)}, got {bases.shape}")

    x_flat = x.reshape(BS, D, N)

    # Pad N to a lane-dense multiple of 128 (unmasked vector stores).
    n_pad = ((N + 127) // 128) * 128
    if n_pad != N:
        # TODO(synk): padding + the final slice cost ~2 extra HBM passes over
        # x; prefer call sites where H*W is already a multiple of 128.
        x_flat = jnp.pad(x_flat, ((0, 0), (0, 0), (0, n_pad - N)))
    # Stream x already in the MXU dtype (halves DMA bytes and the VMEM slab);
    # elementwise NMF update math stays f32 inside the kernel.
    x_flat = x_flat.astype(mxu_dtype)

    # Carry bases transposed (R, D): D on lanes inside the kernel.
    basesT = jnp.swapaxes(bases, 1, 2).astype(jnp.float32)     # (BS, R, D)

    x_bytes = jnp.finfo(mxu_dtype).bits // 8
    out_bytes = jnp.finfo(x.dtype).bits // 8
    vmem_cap = _vmem_capacity_bytes()

    if block_b is None:
        block_b, single_buffer, est_bytes = _pick_block_b(
            BS, D, R, n_pad, x_bytes, out_bytes, vmem_cap)
    else:
        single_buffer = False
        est_bytes = _est_vmem(block_b, 2, D, R, n_pad, x_bytes, out_bytes)
    assert BS % block_b == 0
    grid_b = BS // block_b

    # Clamp the scoped VMEM limit to the actual chip (v7x has only 64 MiB).
    vmem_limit = int(min(0.85 * vmem_cap,
                         max(32 * 1024 * 1024, 1.3 * est_bytes)))

    def _idx(b):
        return (b, 0, 0)

    def _big_spec(shape):
        if single_buffer:
            # Compute-bound (steps x NMF matmuls per slab): exposing one slab
            # DMA per grid step is cheap and reclaims a full buffer on v7x.
            return pl.BlockSpec(shape, _idx, pipeline_mode=pl.Buffered(1))
        return pl.BlockSpec(shape, _idx)

    kernel = functools.partial(
        _md2d_kernel, inv_t=float(inv_t), steps=int(steps), eps=float(eps),
        n_valid=int(N), mxu_dtype=mxu_dtype)

    out_flat, basesT_out = pl.pallas_call(
        kernel,
        out_shape=(
            jax.ShapeDtypeStruct((BS, D, n_pad), x.dtype),
            jax.ShapeDtypeStruct((BS, R, D), jnp.float32),
        ),
        grid_spec=pltpu.PrefetchScalarGridSpec(
            num_scalar_prefetch=0,
            grid=(grid_b,),
            in_specs=[
                _big_spec((block_b, D, n_pad)),
                pl.BlockSpec((block_b, R, D), _idx),
            ],
            out_specs=[
                _big_spec((block_b, D, n_pad)),
                pl.BlockSpec((block_b, R, D), _idx),
            ],
        ),
        compiler_params=pltpu.CompilerParams(
            dimension_semantics=("parallel",),
            vmem_limit_bytes=vmem_limit),
    )(x_flat, basesT)

    if n_pad != N:
        out_flat = out_flat[:, :, :N]
    x_out = out_flat.reshape(B, C, H, W)
    bases_out = jnp.swapaxes(basesT_out, 1, 2).reshape(B, S, D, R)
    return x_out, bases_out


def build_bases(key, B, S, D, R, dtype=jnp.float32):
    """NMF2D._build_bases: uniform random, L2-normalized over D."""
    bases = jax.random.uniform(key, (B * S, D, R), dtype=dtype)
    norm = jnp.sqrt(jnp.sum(bases * bases, axis=1, keepdims=True))
    return bases / jnp.maximum(norm, 1e-12)


if __name__ == "__main__":
    # Module hyper-parameters (base-class defaults, scaled-down shapes):
    # SPATIAL=True, MD_S=1, MD_R=64, INV_T=100, RAND_INIT=True,
    # eval_steps=7 (module in eval / inference mode).
    S = 1
    R = 64
    INV_T = 100.0
    STEPS = 7

    # Small forward-consistent shapes: D = C = 128 (lane-dense), N = H*W = 256
    # (multiple of 128 -> no padding copies around the kernel).
    B, C, H, W = 2, 128, 16, 16

    key = jax.random.PRNGKey(0)
    kx, kb = jax.random.split(key)
    # NMF-style non-negative features (what LightHamHead feeds post-ReLU).
    x = jax.random.uniform(kx, (B, C, H, W), dtype=jnp.float32)
    bases0 = build_bases(kb, B, S, C // S, R)

    x_out, bases_out = matrix_decomposition_2d(
        x, bases0, S=S, inv_t=INV_T, steps=STEPS)
    x_out = jax.block_until_ready(x_out)
    bases_out = jax.block_until_ready(bases_out)

    assert x_out.shape == (B, C, H, W)
    assert bases_out.shape == (B, S, C // S, R)
    assert bool(jnp.all(jnp.isfinite(x_out)))
    assert bool(jnp.all(jnp.isfinite(bases_out)))

    print("KERNEL_OK")
</pallas_src>

<mosaic_0001>
module attributes {stable_mosaic.version = 11 : i64} {
  func.func @_md2d_kernel(%arg0: i32, %arg1: memref<1x128x256xbf16, #tpu.memory_space<vmem>>, %arg2: memref<1x64x128xf32, #tpu.memory_space<vmem>>, %arg3: memref<1x128x256xf32, #tpu.memory_space<vmem>>, %arg4: memref<1x64x128xf32, #tpu.memory_space<vmem>>) attributes {dimension_semantics = [#tpu.dimension_semantics<parallel>], iteration_bounds = array<i64: 2>, scalar_prefetch = 0 : i64, scratch_operands = 0 : i64, tpu.core_type = #tpu.core_type<tc>, window_params = [{transform_indices = @transform_0, window_bounds = array<i64: 1, 128, 256>}, {transform_indices = @transform_1, window_bounds = array<i64: 1, 64, 128>}, {transform_indices = @transform_2, window_bounds = array<i64: 1, 128, 256>}, {transform_indices = @transform_3, window_bounds = array<i64: 1, 64, 128>}]} {
    %c0 = arith.constant 0 : index
    %c0_0 = arith.constant 0 : index
    %c0_1 = arith.constant 0 : index
    %0 = vector.load %arg1[%c0, %c0_0, %c0_1] : memref<1x128x256xbf16, #tpu.memory_space<vmem>>, vector<1x128x256xbf16>
    %c0_2 = arith.constant 0 : index
    %c0_3 = arith.constant 0 : index
    %c0_4 = arith.constant 0 : index
    %1 = vector.load %arg2[%c0_2, %c0_3, %c0_4] : memref<1x64x128xf32, #tpu.memory_space<vmem>>, vector<1x64x128xf32>
    %2 = arith.truncf %1 : vector<1x64x128xf32> to vector<1x64x128xbf16>
    %cst = arith.constant dense<0.000000e+00> : vector<1x64x256xf32>
    %3 = tpu.matmul %2, %0, %cst {dimension_numbers = #tpu.dot_dimension_numbers<[2], [1], [1], [2], [0, 0, 0, 1, 1, 2], [0], [0]>} : vector<1x64x128xbf16>, vector<1x128x256xbf16>, vector<1x64x256xf32> -> vector<1x64x256xf32>
    %cst_5 = arith.constant 1.000000e+02 : f32
    %4 = vector.broadcast %cst_5 : f32 to vector<1x64x256xf32>
    %5 = arith.mulf %4, %3 : vector<1x64x256xf32>
    %cst_6 = arith.constant dense<0xFF800000> : vector<1x256xf32>
    %6 = vector.multi_reduction <maximumf>, %5, %cst_6 [1] : vector<1x64x256xf32> to vector<1x256xf32>
    %7 = vector.shape_cast %6 : vector<1x256xf32> to vector<1x1x256xf32>
    %8 = vector.broadcast %7 : vector<1x1x256xf32> to vector<1x64x256xf32>
    %9 = arith.subf %5, %8 : vector<1x64x256xf32>
    %10 = math.exp %9 : vector<1x64x256xf32>
    %cst_7 = arith.constant dense<0.000000e+00> : vector<1x256xf32>
    %11 = vector.multi_reduction <add>, %10, %cst_7 [1] : vector<1x64x256xf32> to vector<1x256xf32>
    %12 = vector.shape_cast %11 : vector<1x256xf32> to vector<1x1x256xf32>
    %13 = tpu.reciprocal %12 {approx = true} : vector<1x1x256xf32> -> vector<1x1x256xf32>
    %14 = vector.broadcast %13 : vector<1x1x256xf32> to vector<1x64x256xf32>
    %15 = arith.mulf %10, %14 : vector<1x64x256xf32>
    %cst_8 = arith.constant dense<0.000000e+00> : vector<1x64x64xf32>
    %16 = tpu.matmul %2, %2, %cst_8 {dimension_numbers = #tpu.dot_dimension_numbers<[2], [2], [1], [1], [0, 0, 0, 1, 1, 1], [0], [0]>} : vector<1x64x128xbf16>, vector<1x64x128xbf16>, vector<1x64x64xf32> -> vector<1x64x64xf32>
    %17 = arith.truncf %16 : vector<1x64x64xf32> to vector<1x64x64xbf16>
    %18 = arith.truncf %15 : vector<1x64x256xf32> to vector<1x64x256xbf16>
    %cst_9 = arith.constant dense<0.000000e+00> : vector<1x64x256xf32>
    %19 = tpu.matmul %17, %18, %cst_9 {dimension_numbers = #tpu.dot_dimension_numbers<[1], [1], [2], [2], [0, 0, 0, 2, 1, 2], [0], [0]>} : vector<1x64x64xbf16>, vector<1x64x256xbf16>, vector<1x64x256xf32> -> vector<1x64x256xf32>
    %20 = arith.mulf %15, %3 : vector<1x64x256xf32>
    %cst_10 = arith.constant 9.99999997E-7 : f32
    %21 = vector.broadcast %cst_10 : f32 to vector<1x64x256xf32>
    %22 = arith.addf %19, %21 : vector<1x64x256xf32>
    %23 = tpu.reciprocal %22 {approx = true} : vector<1x64x256xf32> -> vector<1x64x256xf32>
    %24 = arith.mulf %20, %23 : vector<1x64x256xf32>
    %25 = arith.truncf %24 : vector<1x64x256xf32> to vector<1x64x256xbf16>
    %cst_11 = arith.constant dense<0.000000e+00> : vector<1x64x128xf32>
    %26 = tpu.matmul %25, %0, %cst_11 {dimension_numbers = #tpu.dot_dimension_numbers<[2], [2], [1], [1], [0, 0, 0, 1, 1, 1], [0], [0]>} : vector<1x64x256xbf16>, vector<1x128x256xbf16>, vector<1x64x128xf32> -> vector<1x64x128xf32>
    %cst_12 = arith.constant dense<0.000000e+00> : vector<1x64x64xf32>
    %27 = tpu.matmul %25, %25, %cst_12 {dimension_numbers = #tpu.dot_dimension_numbers<[2], [2], [1], [1], [0, 0, 0, 1, 1, 1], [0], [0]>} : vector<1x64x256xbf16>, vector<1x64x256xbf16>, vector<1x64x64xf32> -> vector<1x64x64xf32>
    %28 = arith.truncf %27 : vector<1x64x64xf32> to vector<1x64x64xbf16>
    %cst_13 = arith.constant dense<0.000000e+00> : vector<1x64x128xf32>
    %29 = tpu.matmul %28, %2, %cst_13 {dimension_numbers = #tpu.dot_dimension_numbers<[1], [1], [2], [2], [0, 0, 0, 2, 1, 2], [0], [0]>} : vector<1x64x64xbf16>, vector<1x64x128xbf16>, vector<1x64x128xf32> -> vector<1x64x128xf32>
    %30 = arith.mulf %1, %26 : vector<1x64x128xf32>
    %cst_14 = arith.constant 9.99999997E-7 : f32
    %31 = vector.broadcast %cst_14 : f32 to vector<1x64x128xf32>
    %32 = arith.addf %29, %31 : vector<1x64x128xf32>
    %33 = tpu.reciprocal %32 {approx = true} : vector<1x64x128xf32> -> vector<1x64x128xf32>
    %34 = arith.mulf %30, %33 : vector<1x64x128xf32>
    %35 = arith.truncf %34 : vector<1x64x128xf32> to vector<1x64x128xbf16>
    %cst_15 = arith.constant dense<0.000000e+00> : vector<1x64x256xf32>
    %36 = tpu.matmul %35, %0, %cst_15 {dimension_numbers = #tpu.dot_dimension_numbers<[2], [1], [1], [2], [0, 0, 0, 1, 1, 2], [0], [0]>} : vector<1x64x128xbf16>, vector<1x128x256xbf16>, vector<1x64x256xf32> -> vector<1x64x256xf32>
    %cst_16 = arith.constant dense<0.000000e+00> : vector<1x64x64xf32>
    %37 = tpu.matmul %35, %35, %cst_16 {dimension_numbers = #tpu.dot_dimension_numbers<[2], [2], [1], [1], [0, 0, 0, 1, 1, 1], [0], [0]>} : vector<1x64x128xbf16>, vector<1x64x128xbf16>, vector<1x64x64xf32> -> vector<1x64x64xf32>
    %38 = arith.truncf %37 : vector<1x64x64xf32> to vector<1x64x64xbf16>
    %39 = arith.truncf %24 : vector<1x64x256xf32> to vector<1x64x256xbf16>
    %cst_17 = arith.constant dense<0.000000e+00> : vector<1x64x256xf32>
    %40 = tpu.matmul %38, %39, %cst_17 {dimension_numbers = #tpu.dot_dimension_numbers<[1], [1], [2], [2], [0, 0, 0, 2, 1, 2], [0], [0]>} : vector<1x64x64xbf16>, vector<1x64x256xbf16>, vector<1x64x256xf32> -> vector<1x64x256xf32>
    %41 = arith.mulf %24, %36 : vector<1x64x256xf32>
    %cst_18 = arith.constant 9.99999997E-7 : f32
    %42 = vector.broadcast %cst_18 : f32 to vector<1x64x256xf32>
    %43 = arith.addf %40, %42 : vector<1x64x256xf32>
    %44 = tpu.reciprocal %43 {approx = true} : vector<1x64x256xf32> -> vector<1x64x256xf32>
    %45 = arith.mulf %41, %44 : vector<1x64x256xf32>
    %46 = arith.truncf %45 : vector<1x64x256xf32> to vector<1x64x256xbf16>
    %cst_19 = arith.constant dense<0.000000e+00> : vector<1x64x128xf32>
    %47 = tpu.matmul %46, %0, %cst_19 {dimension_numbers = #tpu.dot_dimension_numbers<[2], [2], [1], [1], [0, 0, 0, 1, 1, 1], [0], [0]>} : vector<1x64x256xbf16>, vector<1x128x256xbf16>, vector<1x64x128xf32> -> vector<1x64x128xf32>
    %cst_20 = arith.constant dense<0.000000e+00> : vector<1x64x64xf32>
    %48 = tpu.matmul %46, %46, %cst_20 {dimension_numbers = #tpu.dot_dimension_numbers<[2], [2], [1], [1], [0, 0, 0, 1, 1, 1], [0], [0]>} : vector<1x64x256xbf16>, vector<1x64x256xbf16>, vector<1x64x64xf32> -> vector<1x64x64xf32>
    %49 = arith.truncf %48 : vector<1x64x64xf32> to vector<1x64x64xbf16>
    %cst_21 = arith.constant dense<0.000000e+00> : vector<1x64x128xf32>
    %50 = tpu.matmul %49, %35, %cst_21 {dimension_numbers = #tpu.dot_dimension_numbers<[1], [1], [2], [2], [0, 0, 0, 2, 1, 2], [0], [0]>} : vector<1x64x64xbf16>, vector<1x64x128xbf16>, vector<1x64x128xf32> -> vector<1x64x128xf32>
    %51 = arith.mulf %34, %47 : vector<1x64x128xf32>
    %cst_22 = arith.constant 9.99999997E-7 : f32
    %52 = vector.broadcast %cst_22 : f32 to vector<1x64x128xf32>
    %53 = arith.addf %50, %52 : vector<1x64x128xf32>
    %54 = tpu.reciprocal %53 {approx = true} : vector<1x64x128xf32> -> vector<1x64x128xf32>
    %55 = arith.mulf %51, %54 : vector<1x64x128xf32>
    %56 = arith.truncf %55 : vector<1x64x128xf32> to vector<1x64x128xbf16>
    %cst_23 = arith.constant dense<0.000000e+00> : vector<1x64x256xf32>
    %57 = tpu.matmul %56, %0, %cst_23 {dimension_numbers = #tpu.dot_dimension_numbers<[2], [1], [1], [2], [0, 0, 0, 1, 1, 2], [0], [0]>} : vector<1x64x128xbf16>, vector<1x128x256xbf16>, vector<1x64x256xf32> -> vector<1x64x256xf32>
    %cst_24 = arith.constant dense<0.000000e+00> : vector<1x64x64xf32>
    %58 = tpu.matmul %56, %56, %cst_24 {dimension_numbers = #tpu.dot_dimension_numbers<[2], [2], [1], [1], [0, 0, 0, 1, 1, 1], [0], [0]>} : vector<1x64x128xbf16>, vector<1x64x128xbf16>, vector<1x64x64xf32> -> vector<1x64x64xf32>
    %59 = arith.truncf %58 : vector<1x64x64xf32> to vector<1x64x64xbf16>
    %60 = arith.truncf %45 : vector<1x64x256xf32> to vector<1x64x256xbf16>
    %cst_25 = arith.constant dense<0.000000e+00> : vector<1x64x256xf32>
    %61 = tpu.matmul %59, %60, %cst_25 {dimension_numbers = #tpu.dot_dimension_numbers<[1], [1], [2], [2], [0, 0, 0, 2, 1, 2], [0], [0]>} : vector<1x64x64xbf16>, vector<1x64x256xbf16>, vector<1x64x256xf32> -> vector<1x64x256xf32>
    %62 = arith.mulf %45, %57 : vector<1x64x256xf32>
    %cst_26 = arith.constant 9.99999997E-7 : f32
    %63 = vector.broadcast %cst_26 : f32 to vector<1x64x256xf32>
    %64 = arith.addf %61, %63 : vector<1x64x256xf32>
    %65 = tpu.reciprocal %64 {approx = true} : vector<1x64x256xf32> -> vector<1x64x256xf32>
    %66 = arith.mulf %62, %65 : vector<1x64x256xf32>
    %67 = arith.truncf %66 : vector<1x64x256xf32> to vector<1x64x256xbf16>
    %cst_27 = arith.constant dense<0.000000e+00> : vector<1x64x128xf32>
    %68 = tpu.matmul %67, %0, %cst_27 {dimension_numbers = #tpu.dot_dimension_numbers<[2], [2], [1], [1], [0, 0, 0, 1, 1, 1], [0], [0]>} : vector<1x64x256xbf16>, vector<1x128x256xbf16>, vector<1x64x128xf32> -> vector<1x64x128xf32>
    %cst_28 = arith.constant dense<0.000000e+00> : vector<1x64x64xf32>
    %69 = tpu.matmul %67, %67, %cst_28 {dimension_numbers = #tpu.dot_dimension_numbers<[2], [2], [1], [1], [0, 0, 0, 1, 1, 1], [0], [0]>} : vector<1x64x256xbf16>, vector<1x64x256xbf16>, vector<1x64x64xf32> -> vector<1x64x64xf32>
    %70 = arith.truncf %69 : vector<1x64x64xf32> to vector<1x64x64xbf16>
    %cst_29 = arith.constant dense<0.000000e+00> : vector<1x64x128xf32>
    %71 = tpu.matmul %70, %56, %cst_29 {dimension_numbers = #tpu.dot_dimension_numbers<[1], [1], [2], [2], [0, 0, 0, 2, 1, 2], [0], [0]>} : vector<1x64x64xbf16>, vector<1x64x128xbf16>, vector<1x64x128xf32> -> vector<1x64x128xf32>
    %72 = arith.mulf %55, %68 : vector<1x64x128xf32>
    %cst_30 = arith.constant 9.99999997E-7 : f32
    %73 = vector.broadcast %cst_30 : f32 to vector<1x64x128xf32>
    %74 = arith.addf %71, %73 : vector<1x64x128xf32>
    %75 = tpu.reciprocal %74 {approx = true} : vector<1x64x128xf32> -> vector<1x64x128xf32>
    %76 = arith.mulf %72, %75 : vector<1x64x128xf32>
    %77 = arith.truncf %76 : vector<1x64x128xf32> to vector<1x64x128xbf16>
    %cst_31 = arith.constant dense<0.000000e+00> : vector<1x64x256xf32>
    %78 = tpu.matmul %77, %0, %cst_31 {dimension_numbers = #tpu.dot_dimension_numbers<[2], [1], [1], [2], [0, 0, 0, 1, 1, 2], [0], [0]>} : vector<1x64x128xbf16>, vector<1x128x256xbf16>, vector<1x64x256xf32> -> vector<1x64x256xf32>
    %cst_32 = arith.constant dense<0.000000e+00> : vector<1x64x64xf32>
    %79 = tpu.matmul %77, %77, %cst_32 {dimension_numbers = #tpu.dot_dimension_numbers<[2], [2], [1], [1], [0, 0, 0, 1, 1, 1], [0], [0]>} : vector<1x64x128xbf16>, vector<1x64x128xbf16>, vector<1x64x64xf32> -> vector<1x64x64xf32>
    %80 = arith.truncf %79 : vector<1x64x64xf32> to vector<1x64x64xbf16>
    %81 = arith.truncf %66 : vector<1x64x256xf32> to vector<1x64x256xbf16>
    %cst_33 = arith.constant dense<0.000000e+00> : vector<1x64x256xf32>
    %82 = tpu.matmul %80, %81, %cst_33 {dimension_numbers = #tpu.dot_dimension_numbers<[1], [1], [2], [2], [0, 0, 0, 2, 1, 2], [0], [0]>} : vector<1x64x64xbf16>, vector<1x64x256xbf16>, vector<1x64x256xf32> -> vector<1x64x256xf32>
    %83 = arith.mulf %66, %78 : vector<1x64x256xf32>
    %cst_34 = arith.constant 9.99999997E-7 : f32
    %84 = vector.broadcast %cst_34 : f32 to vector<1x64x256xf32>
    %85 = arith.addf %82, %84 : vector<1x64x256xf32>
    %86 = tpu.reciprocal %85 {approx = true} : vector<1x64x256xf32> -> vector<1x64x256xf32>
    %87 = arith.mulf %83, %86 : vector<1x64x256xf32>
    %88 = arith.truncf %87 : vector<1x64x256xf32> to vector<1x64x256xbf16>
    %cst_35 = arith.constant dense<0.000000e+00> : vector<1x64x128xf32>
    %89 = tpu.matmul %88, %0, %cst_35 {dimension_numbers = #tpu.dot_dimension_numbers<[2], [2], [1], [1], [0, 0, 0, 1, 1, 1], [0], [0]>} : vector<1x64x256xbf16>, vector<1x128x256xbf16>, vector<1x64x128xf32> -> vector<1x64x128xf32>
    %cst_36 = arith.constant dense<0.000000e+00> : vector<1x64x64xf32>
    %90 = tpu.matmul %88, %88, %cst_36 {dimension_numbers = #tpu.dot_dimension_numbers<[2], [2], [1], [1], [0, 0, 0, 1, 1, 1], [0], [0]>} : vector<1x64x256xbf16>, vector<1x64x256xbf16>, vector<1x64x64xf32> -> vector<1x64x64xf32>
    %91 = arith.truncf %90 : vector<1x64x64xf32> to vector<1x64x64xbf16>
    %cst_37 = arith.constant dense<0.000000e+00> : vector<1x64x128xf32>
    %92 = tpu.matmul %91, %77, %cst_37 {dimension_numbers = #tpu.dot_dimension_numbers<[1], [1], [2], [2], [0, 0, 0, 2, 1, 2], [0], [0]>} : vector<1x64x64xbf16>, vector<1x64x128xbf16>, vector<1x64x128xf32> -> vector<1x64x128xf32>
    %93 = arith.mulf %76, %89 : vector<1x64x128xf32>
    %cst_38 = arith.constant 9.99999997E-7 : f32
    %94 = vector.broadcast %cst_38 : f32 to vector<1x64x128xf32>
    %95 = arith.addf %92, %94 : vector<1x64x128xf32>
    %96 = tpu.reciprocal %95 {approx = true} : vector<1x64x128xf32> -> vector<1x64x128xf32>
    %97 = arith.mulf %93, %96 : vector<1x64x128xf32>
    %98 = arith.truncf %97 : vector<1x64x128xf32> to vector<1x64x128xbf16>
    %cst_39 = arith.constant dense<0.000000e+00> : vector<1x64x256xf32>
    %99 = tpu.matmul %98, %0, %cst_39 {dimension_numbers = #tpu.dot_dimension_numbers<[2], [1], [1], [2], [0, 0, 0, 1, 1, 2], [0], [0]>} : vector<1x64x128xbf16>, vector<1x128x256xbf16>, vector<1x64x256xf32> -> vector<1x64x256xf32>
    %cst_40 = arith.constant dense<0.000000e+00> : vector<1x64x64xf32>
    %100 = tpu.matmul %98, %98, %cst_40 {dimension_numbers = #tpu.dot_dimension_numbers<[2], [2], [1], [1], [0, 0, 0, 1, 1, 1], [0], [0]>} : vector<1x64x128xbf16>, vector<1x64x128xbf16>, vector<1x64x64xf32> -> vector<1x64x64xf32>
    %101 = arith.truncf %100 : vector<1x64x64xf32> to vector<1x64x64xbf16>
    %102 = arith.truncf %87 : vector<1x64x256xf32> to vector<1x64x256xbf16>
    %cst_41 = arith.constant dense<0.000000e+00> : vector<1x64x256xf32>
    %103 = tpu.matmul %101, %102, %cst_41 {dimension_numbers = #tpu.dot_dimension_numbers<[1], [1], [2], [2], [0, 0, 0, 2, 1, 2], [0], [0]>} : vector<1x64x64xbf16>, vector<1x64x256xbf16>, vector<1x64x256xf32> -> vector<1x64x256xf32>
    %104 = arith.mulf %87, %99 : vector<1x64x256xf32>
    %cst_42 = arith.constant 9.99999997E-7 : f32
    %105 = vector.broadcast %cst_42 : f32 to vector<1x64x256xf32>
    %106 = arith.addf %103, %105 : vector<1x64x256xf32>
    %107 = tpu.reciprocal %106 {approx = true} : vector<1x64x256xf32> -> vector<1x64x256xf32>
    %108 = arith.mulf %104, %107 : vector<1x64x256xf32>
    %109 = arith.truncf %108 : vector<1x64x256xf32> to vector<1x64x256xbf16>
    %cst_43 = arith.constant dense<0.000000e+00> : vector<1x64x128xf32>
    %110 = tpu.matmul %109, %0, %cst_43 {dimension_numbers = #tpu.dot_dimension_numbers<[2], [2], [1], [1], [0, 0, 0, 1, 1, 1], [0], [0]>} : vector<1x64x256xbf16>, vector<1x128x256xbf16>, vector<1x64x128xf32> -> vector<1x64x128xf32>
    %cst_44 = arith.constant dense<0.000000e+00> : vector<1x64x64xf32>
    %111 = tpu.matmul %109, %109, %cst_44 {dimension_numbers = #tpu.dot_dimension_numbers<[2], [2], [1], [1], [0, 0, 0, 1, 1, 1], [0], [0]>} : vector<1x64x256xbf16>, vector<1x64x256xbf16>, vector<1x64x64xf32> -> vector<1x64x64xf32>
    %112 = arith.truncf %111 : vector<1x64x64xf32> to vector<1x64x64xbf16>
    %cst_45 = arith.constant dense<0.000000e+00> : vector<1x64x128xf32>
    %113 = tpu.matmul %112, %98, %cst_45 {dimension_numbers = #tpu.dot_dimension_numbers<[1], [1], [2], [2], [0, 0, 0, 2, 1, 2], [0], [0]>} : vector<1x64x64xbf16>, vector<1x64x128xbf16>, vector<1x64x128xf32> -> vector<1x64x128xf32>
    %114 = arith.mulf %97, %110 : vector<1x64x128xf32>
    %cst_46 = arith.constant 9.99999997E-7 : f32
    %115 = vector.broadcast %cst_46 : f32 to vector<1x64x128xf32>
    %116 = arith.addf %113, %115 : vector<1x64x128xf32>
    %117 = tpu.reciprocal %116 {approx = true} : vector<1x64x128xf32> -> vector<1x64x128xf32>
    %118 = arith.mulf %114, %117 : vector<1x64x128xf32>
    %119 = arith.truncf %118 : vector<1x64x128xf32> to vector<1x64x128xbf16>
    %cst_47 = arith.constant dense<0.000000e+00> : vector<1x64x256xf32>
    %120 = tpu.matmul %119, %0, %cst_47 {dimension_numbers = #tpu.dot_dimension_numbers<[2], [1], [1], [2], [0, 0, 0, 1, 1, 2], [0], [0]>} : vector<1x64x128xbf16>, vector<1x128x256xbf16>, vector<1x64x256xf32> -> vector<1x64x256xf32>
    %cst_48 = arith.constant dense<0.000000e+00> : vector<1x64x64xf32>
    %121 = tpu.matmul %119, %119, %cst_48 {dimension_numbers = #tpu.dot_dimension_numbers<[2], [2], [1], [1], [0, 0, 0, 1, 1, 1], [0], [0]>} : vector<1x64x128xbf16>, vector<1x64x128xbf16>, vector<1x64x64xf32> -> vector<1x64x64xf32>
    %122 = arith.truncf %121 : vector<1x64x64xf32> to vector<1x64x64xbf16>
    %123 = arith.truncf %108 : vector<1x64x256xf32> to vector<1x64x256xbf16>
    %cst_49 = arith.constant dense<0.000000e+00> : vector<1x64x256xf32>
    %124 = tpu.matmul %122, %123, %cst_49 {dimension_numbers = #tpu.dot_dimension_numbers<[1], [1], [2], [2], [0, 0, 0, 2, 1, 2], [0], [0]>} : vector<1x64x64xbf16>, vector<1x64x256xbf16>, vector<1x64x256xf32> -> vector<1x64x256xf32>
    %125 = arith.mulf %108, %120 : vector<1x64x256xf32>
    %cst_50 = arith.constant 9.99999997E-7 : f32
    %126 = vector.broadcast %cst_50 : f32 to vector<1x64x256xf32>
    %127 = arith.addf %124, %126 : vector<1x64x256xf32>
    %128 = tpu.reciprocal %127 {approx = true} : vector<1x64x256xf32> -> vector<1x64x256xf32>
    %129 = arith.mulf %125, %128 : vector<1x64x256xf32>
    %130 = arith.truncf %129 : vector<1x64x256xf32> to vector<1x64x256xbf16>
    %cst_51 = arith.constant dense<0.000000e+00> : vector<1x64x128xf32>
    %131 = tpu.matmul %130, %0, %cst_51 {dimension_numbers = #tpu.dot_dimension_numbers<[2], [2], [1], [1], [0, 0, 0, 1, 1, 1], [0], [0]>} : vector<1x64x256xbf16>, vector<1x128x256xbf16>, vector<1x64x128xf32> -> vector<1x64x128xf32>
    %cst_52 = arith.constant dense<0.000000e+00> : vector<1x64x64xf32>
    %132 = tpu.matmul %130, %130, %cst_52 {dimension_numbers = #tpu.dot_dimension_numbers<[2], [2], [1], [1], [0, 0, 0, 1, 1, 1], [0], [0]>} : vector<1x64x256xbf16>, vector<1x64x256xbf16>, vector<1x64x64xf32> -> vector<1x64x64xf32>
    %133 = arith.truncf %132 : vector<1x64x64xf32> to vector<1x64x64xbf16>
    %cst_53 = arith.constant dense<0.000000e+00> : vector<1x64x128xf32>
    %134 = tpu.matmul %133, %119, %cst_53 {dimension_numbers = #tpu.dot_dimension_numbers<[1], [1], [2], [2], [0, 0, 0, 2, 1, 2], [0], [0]>} : vector<1x64x64xbf16>, vector<1x64x128xbf16>, vector<1x64x128xf32> -> vector<1x64x128xf32>
    %135 = arith.mulf %118, %131 : vector<1x64x128xf32>
    %cst_54 = arith.constant 9.99999997E-7 : f32
    %136 = vector.broadcast %cst_54 : f32 to vector<1x64x128xf32>
    %137 = arith.addf %134, %136 : vector<1x64x128xf32>
    %138 = tpu.reciprocal %137 {approx = true} : vector<1x64x128xf32> -> vector<1x64x128xf32>
    %139 = arith.mulf %135, %138 : vector<1x64x128xf32>
    %140 = arith.truncf %139 : vector<1x64x128xf32> to vector<1x64x128xbf16>
    %cst_55 = arith.constant dense<0.000000e+00> : vector<1x64x256xf32>
    %141 = tpu.matmul %140, %0, %cst_55 {dimension_numbers = #tpu.dot_dimension_numbers<[2], [1], [1], [2], [0, 0, 0, 1, 1, 2], [0], [0]>} : vector<1x64x128xbf16>, vector<1x128x256xbf16>, vector<1x64x256xf32> -> vector<1x64x256xf32>
    %cst_56 = arith.constant dense<0.000000e+00> : vector<1x64x64xf32>
    %142 = tpu.matmul %140, %140, %cst_56 {dimension_numbers = #tpu.dot_dimension_numbers<[2], [2], [1], [1], [0, 0, 0, 1, 1, 1], [0], [0]>} : vector<1x64x128xbf16>, vector<1x64x128xbf16>, vector<1x64x64xf32> -> vector<1x64x64xf32>
    %143 = arith.truncf %142 : vector<1x64x64xf32> to vector<1x64x64xbf16>
    %144 = arith.truncf %129 : vector<1x64x256xf32> to vector<1x64x256xbf16>
    %cst_57 = arith.constant dense<0.000000e+00> : vector<1x64x256xf32>
    %145 = tpu.matmul %143, %144, %cst_57 {dimension_numbers = #tpu.dot_dimension_numbers<[1], [1], [2], [2], [0, 0, 0, 2, 1, 2], [0], [0]>} : vector<1x64x64xbf16>, vector<1x64x256xbf16>, vector<1x64x256xf32> -> vector<1x64x256xf32>
    %146 = arith.mulf %129, %141 : vector<1x64x256xf32>
    %cst_58 = arith.constant 9.99999997E-7 : f32
    %147 = vector.broadcast %cst_58 : f32 to vector<1x64x256xf32>
    %148 = arith.addf %145, %147 : vector<1x64x256xf32>
    %149 = tpu.reciprocal %148 {approx = true} : vector<1x64x256xf32> -> vector<1x64x256xf32>
    %150 = arith.mulf %146, %149 : vector<1x64x256xf32>
    %151 = arith.truncf %150 : vector<1x64x256xf32> to vector<1x64x256xbf16>
    %cst_59 = arith.constant dense<0.000000e+00> : vector<1x64x128xf32>
    %152 = tpu.matmul %151, %0, %cst_59 {dimension_numbers = #tpu.dot_dimension_numbers<[2], [2], [1], [1], [0, 0, 0, 1, 1, 1], [0], [0]>} : vector<1x64x256xbf16>, vector<1x128x256xbf16>, vector<1x64x128xf32> -> vector<1x64x128xf32>
    %cst_60 = arith.constant dense<0.000000e+00> : vector<1x64x64xf32>
    %153 = tpu.matmul %151, %151, %cst_60 {dimension_numbers = #tpu.dot_dimension_numbers<[2], [2], [1], [1], [0, 0, 0, 1, 1, 1], [0], [0]>} : vector<1x64x256xbf16>, vector<1x64x256xbf16>, vector<1x64x64xf32> -> vector<1x64x64xf32>
    %154 = arith.truncf %153 : vector<1x64x64xf32> to vector<1x64x64xbf16>
    %cst_61 = arith.constant dense<0.000000e+00> : vector<1x64x128xf32>
    %155 = tpu.matmul %154, %140, %cst_61 {dimension_numbers = #tpu.dot_dimension_numbers<[1], [1], [2], [2], [0, 0, 0, 2, 1, 2], [0], [0]>} : vector<1x64x64xbf16>, vector<1x64x128xbf16>, vector<1x64x128xf32> -> vector<1x64x128xf32>
    %156 = arith.mulf %139, %152 : vector<1x64x128xf32>
    %cst_62 = arith.constant 9.99999997E-7 : f32
    %157 = vector.broadcast %cst_62 : f32 to vector<1x64x128xf32>
    %158 = arith.addf %155, %157 : vector<1x64x128xf32>
    %159 = tpu.reciprocal %158 {approx = true} : vector<1x64x128xf32> -> vector<1x64x128xf32>
    %160 = arith.mulf %156, %159 : vector<1x64x128xf32>
    %161 = arith.truncf %160 : vector<1x64x128xf32> to vector<1x64x128xbf16>
    %cst_63 = arith.constant dense<0.000000e+00> : vector<1x64x256xf32>
    %162 = tpu.matmul %161, %0, %cst_63 {dimension_numbers = #tpu.dot_dimension_numbers<[2], [1], [1], [2], [0, 0, 0, 1, 1, 2], [0], [0]>} : vector<1x64x128xbf16>, vector<1x128x256xbf16>, vector<1x64x256xf32> -> vector<1x64x256xf32>
    %cst_64 = arith.constant dense<0.000000e+00> : vector<1x64x64xf32>
    %163 = tpu.matmul %161, %161, %cst_64 {dimension_numbers = #tpu.dot_dimension_numbers<[2], [2], [1], [1], [0, 0, 0, 1, 1, 1], [0], [0]>} : vector<1x64x128xbf16>, vector<1x64x128xbf16>, vector<1x64x64xf32> -> vector<1x64x64xf32>
    %164 = arith.truncf %163 : vector<1x64x64xf32> to vector<1x64x64xbf16>
    %165 = arith.truncf %150 : vector<1x64x256xf32> to vector<1x64x256xbf16>
    %cst_65 = arith.constant dense<0.000000e+00> : vector<1x64x256xf32>
    %166 = tpu.matmul %164, %165, %cst_65 {dimension_numbers = #tpu.dot_dimension_numbers<[1], [1], [2], [2], [0, 0, 0, 2, 1, 2], [0], [0]>} : vector<1x64x64xbf16>, vector<1x64x256xbf16>, vector<1x64x256xf32> -> vector<1x64x256xf32>
    %167 = arith.mulf %150, %162 : vector<1x64x256xf32>
    %cst_66 = arith.constant 9.99999997E-7 : f32
    %168 = vector.broadcast %cst_66 : f32 to vector<1x64x256xf32>
    %169 = arith.addf %166, %168 : vector<1x64x256xf32>
    %170 = tpu.reciprocal %169 {approx = true} : vector<1x64x256xf32> -> vector<1x64x256xf32>
    %171 = arith.mulf %167, %170 : vector<1x64x256xf32>
    %172 = arith.truncf %171 : vector<1x64x256xf32> to vector<1x64x256xbf16>
    %cst_67 = arith.constant dense<0.000000e+00> : vector<1x128x256xf32>
    %173 = tpu.matmul %161, %172, %cst_67 {dimension_numbers = #tpu.dot_dimension_numbers<[1], [1], [2], [2], [0, 0, 0, 2, 1, 2], [0], [0]>} : vector<1x64x128xbf16>, vector<1x64x256xbf16>, vector<1x128x256xf32> -> vector<1x128x256xf32>
    %c0_68 = arith.constant 0 : index
    %c0_69 = arith.constant 0 : index
    %c0_70 = arith.constant 0 : index
    %174 = vector.load %arg3[%c0_68, %c0_69, %c0_70] : memref<1x128x256xf32, #tpu.memory_space<vmem>>, vector<1x128x256xf32>
    tpu.vector_store %arg3[%c0_68, %c0_69, %c0_70], %173 {strides = array<i32>} : memref<1x128x256xf32, #tpu.memory_space<vmem>>, vector<1x128x256xf32>,
    %c0_71 = arith.constant 0 : index
    %c0_72 = arith.constant 0 : index
    %c0_73 = arith.constant 0 : index
    %175 = vector.load %arg4[%c0_71, %c0_72, %c0_73] : memref<1x64x128xf32, #tpu.memory_space<vmem>>, vector<1x64x128xf32>
    tpu.vector_store %arg4[%c0_71, %c0_72, %c0_73], %160 {strides = array<i32>} : memref<1x64x128xf32, #tpu.memory_space<vmem>>, vector<1x64x128xf32>,
    return
  }
  func.func @transform_0(%arg0: i32) -> (i32, i32, i32) {
    %c0_i32 = arith.constant 0 : i32
    %c0_i32_0 = arith.constant 0 : i32
    %c0_i32_1 = arith.constant 0 : i32
    return %arg0, %c0_i32, %c0_i32_0 : i32, i32, i32
  }
  func.func @transform_1(%arg0: i32) -> (i32, i32, i32) {
    %c0_i32 = arith.constant 0 : i32
    %c0_i32_0 = arith.constant 0 : i32
    %c0_i32_1 = arith.constant 0 : i32
    return %arg0, %c0_i32, %c0_i32_0 : i32, i32, i32
  }
  func.func @transform_2(%arg0: i32) -> (i32, i32, i32) {
    %c0_i32 = arith.constant 0 : i32
    %c0_i32_0 = arith.constant 0 : i32
    %c0_i32_1 = arith.constant 0 : i32
    return %arg0, %c0_i32, %c0_i32_0 : i32, i32, i32
  }
  func.func @transform_3(%arg0: i32) -> (i32, i32, i32) {
    %c0_i32 = arith.constant 0 : i32
    %c0_i32_0 = arith.constant 0 : i32
    %c0_i32_1 = arith.constant 0 : i32
    return %arg0, %c0_i32, %c0_i32_0 : i32, i32, i32
  }
}

</mosaic_0001>

<bundles_post_ra>
// kernel: tpu_custom_call.1
= control target key start
LH: loop header
LB: loop body
LE: loop exit
PB: predicated region body
PF: predicated region fallthrough
CT: control target
= control target key end

     0   :  { %9 = vsyncpa [#allocation3], 0  ;;  %s8792_s0 = inlined_call_operand.hbm [shape: bf16[2,128,256], index: 0, kind: input, shape index: {}]   ;;  %s8793_s1 = inlined_call_operand.hbm [shape: f32[2,64,128], index: 1, kind: input, shape index: {}]   ;;  %s8794_s2 = inlined_call_operand.hbm [shape: f32[2,128,256], index: 2, kind: output, shape index: {0}]   ;;  %s8795_s3 = inlined_call_operand.hbm [shape: f32[2,64,128], index: 3, kind: output, shape index: {1}]  }
   0x1   :  { %11 = vsyncpa [#allocation3 + $0x1], 0 }
   0x2   :  { %12 = vsyncpa [#allocation6], 0 }
   0x3   :  { %14 = vsyncpa [#allocation6 + $0x1], 0 }
   0x4   :  { %15 = vsyncpa [#allocation4], 0 }
   0x5   :  { %17 = vsyncpa [#allocation4 + $0x1], 0 }
   0x6   :  { %18 = vsyncpa [#allocation9], 0 }
   0x7   :  { %20 = vsyncpa [#allocation9 + $0x1], 0  ;;  %s6229_s12 = smov 0   ;;  %s6231_s13 = smov 0  }
   0x8   :  { %s6233_s14 = smov 0   ;;  %s6235_s15 = smov 0  }
   0x9 LB: > { %s6250_s16 = sadd.s32 4294967295, %s6196_s15   ;;  %s5025_s17 = sadd.s32 4294967294, %s6196_s15   ;;  %s6196_s15 = sphi %s6235_s15, %s9038_s15   ;;  %s6192_s14 = sphi %s6233_s14, %s9037_s14   ;;  %s6188_s13 = sphi %s6231_s13, %s9036_s13   ;;  %s6184_s12 = sphi %s6229_s12, %s9035_s12  }
   0xa   : > { %s6254_s18 = sadd.s32 1, %s6196_s15   ;;  %s33_s19 = sadd.s32 1, %s6192_s14 }
   0xb   : > { %s30_s20 = ssub.s32 %s6196_s15, %s6254_s18  ;;  %p40_p0 = scmp.ne.s32.totalorder %s6192_s14, %s6188_s13 }
   0xc   : > { %p31_p1 = scmp.eq.s32.totalorder %s30_s20, 0  ;;  %p41_p2 = scmp.eq.s32.totalorder %s6196_s15, 0 }
   0xd   : > { %p46_p3 = scmp.ne.s32.totalorder %s6188_s13, %s6184_s12  ;;  %p47_p4 = scmp.eq.s32.totalorder %s6250_s16, 0 }
   0xe   : > { %s6266_s21 = scalar_select %p31_p1, %s6192_s14, %s33_s19  }
   0xf   : > { %p6268_p5 = por %p41_p2, %p40_p0  ;;  %p6272_p6 = por %p47_p4, %p46_p3 }
  0x10   : > { %p96_p7 = scmp.eq.s32.totalorder %s6250_s16, 1  ;;  %p102_p8 = scmp.eq.s32.totalorder %s5025_s17, 1 }
  0x11   : > { %s8887_s23 = scalar_select %p6272_p6, 1, 0 }
  0x12   : > { %p5517_p10 = scmp.lt.s32.totalorder %s6196_s15, 2  ;;  %p6279_p11 = por %p96_p7, %p40_p0 }
  0x13   : > { %p6283_p12 = por %p102_p8, %p46_p3  ;;  %s6288_s26 = sand.u32 1, %s6192_s14  }
  0x14   : > { %s8888_s24 = scalar_select %p6279_p11, 1, 0 }
  0x15   : > { %s8889_s25 = scalar_select %p6283_p12, 1, 0 }
  0x16   : > { %s5131_s27 = sshll.u32 %s6196_s15, 11  ;;  %s5028_s28 = sshll.u32 %s6288_s26, 7 }
  0x17   : > { %s6295_s4 = scalar_lea.hbm %s8792_s0, %s5131_s27  ;;  %s152_s5 = scalar_lea.vmem [#allocation2], %s5028_s28 }
  0x18   : > { %s159_s6 = sshll.u32 %s152_s5, 4  ;;  %p6299_p13 = pnand %p5517_p10, %p6268_p5  ;;  %s6303_s6 = int_to_ptr.vmem [resolvable:$true] %s159_s6 }
  0x19   : > { %s149_s8 = scalar_lea.sflag [#allocation3], %s6288_s26  ;;  %s6042_s9 = scalar_lea.hbm %s6295_s4, 2048 }
  0x1a   : > { %p6043_p0 = scmp.ne.s32.totalorder %s6295_s4, %s6042_s9  ;;  %p6044_p1 = pneg %p6299_p13 }
  0x1b   : > { %s6047_s17 = scalar_lea.hbm %s8792_s0, 4096  ;;  %p6048_p4 = scmp.lt.s32.totalorder %s6295_s4, %s8792_s0 }
  0x1c   : > { %p6045_p2 = pnand %p6044_p1, %p6043_p0  ;;  %p6049_p5 = scmp.lt.s32.totalorder %s6047_s17, %s6042_s9 }
  0x1e   : > { %p6046_p3 = pneg %p6045_p2  ;;  %p6050_p7 = por %p6049_p5, %p6048_p4 }
  0x20   : > { %p6051_p8 = pnand %p6050_p7, %p6046_p3 }
  0x22   : > { %6054 = shalt.err (!%p6051_p8)
}
  0x23   : > { %s6055_s22 = scalar_lea.vmem %s6303_s6, 2048  ;;  %s6198_s27 = smov [#allocation2]  }
  0x24   : > { %p6056_p10 = scmp.ne.s32.totalorder %s6303_s6, %s6055_s22  ;;  %s6060_s28 = sshll.u32 %s6198_s27, 4  ;;  %s6061_s28 = int_to_ptr.vmem [resolvable:$false] %s6060_s28 }
  0x25   : > { %s6062_s29 = scalar_lea.vmem %s6061_s28, 4096  ;;  %p6063_p9 = scmp.lt.s32.totalorder %s6303_s6, %s6061_s28 }
  0x26   : > { %p6058_p0 = pnand %p6056_p10, %p6044_p1  ;;  %p6064_p12 = scmp.lt.s32.totalorder %s6062_s29, %s6055_s22 }
  0x28   : > { %p6059_p2 = pneg %p6058_p0  ;;  %p6065_p11 = por %p6064_p12, %p6063_p9 }
  0x2a   : > { %p6066_p4 = pnand %p6065_p11, %p6059_p2 }
  0x2c   : > { %6069 = shalt.err (!%p6066_p4)
}
  0x2d   : > { %s6199_s30 = smov 128   ;;  %s6200_s5 = smov 8  }
  0x2e   : > { %5506 = dma.hbm_to_vmem [thread:$0]  (!%p6299_p13), %s6295_s4, 2048, %s6303_s6, %s149_s8, %s6199_s30, %s6199_s30, %s6200_s5  }
  0x2f   : > { %p5034_p9 = scmp.ge.s32.totalorder %s6196_s15, 1  ;;  %p188_p11 = scmp.lt.s32.totalorder %s6196_s15, 3 }
  0x30   : > { %s5031_s9 = sshll.u32 %s6288_s26, 6  ;;  %s5132_s11 = sshll.u32 %s6196_s15, 10 }
  0x31   : > { %p6338_p12 = pnand %p5034_p9, %p188_p11  ;;  %s173_s17 = scalar_lea.vmem [#allocation5], %s5031_s9 }
  0x32   : > { %s180_s19 = sshll.u32 %s173_s17, 4  ;;  %s6346_s27 = scalar_lea.hbm %s8793_s1, %s5132_s11  ;;  %s6348_s19 = int_to_ptr.vmem [resolvable:$true] %s180_s19 }
  0x33   : > { %s170_s4 = scalar_lea.sflag [#allocation6], %s6288_s26  ;;  %s6070_s6 = scalar_lea.hbm %s6346_s27, 1024 }
  0x34   : > { %p6071_p3 = scmp.ne.s32.totalorder %s6346_s27, %s6070_s6  ;;  %s6075_s29 = scalar_lea.hbm %s8793_s1, 2048 }
  0x35   : > { %p6076_p8 = scmp.lt.s32.totalorder %s6346_s27, %s8793_s1  ;;  %p6077_p10 = scmp.lt.s32.totalorder %s6075_s29, %s6070_s6 }
  0x36   : > { %p6073_p5 = pnand %p6071_p3, %p6044_p1 }
  0x37   : > { %p6078_p0 = por %p6077_p10, %p6076_p8 }
  0x38   : > { %p6074_p7 = pneg %p6073_p5 }
  0x3a   : > { %p6079_p2 = pnand %p6078_p0, %p6074_p7 }
  0x3c   : > { %6082 = shalt.err (!%p6079_p2)
}
  0x3d   : > { %s6083_s26 = scalar_lea.vmem %s6348_s19, 1024  ;;  %s6201_s11 = smov [#allocation5]  }
  0x3e   : > { %p6084_p4 = scmp.ne.s32.totalorder %s6348_s19, %s6083_s26  ;;  %s6088_s20 = sshll.u32 %s6201_s11, 4  ;;  %s6089_s20 = int_to_ptr.vmem [resolvable:$false] %s6088_s20 }
  0x3f   : > { %s6090_s22 = scalar_lea.vmem %s6089_s20, 2048  ;;  %p6091_p3 = scmp.lt.s32.totalorder %s6348_s19, %s6089_s20 }
  0x40   : > { %p6086_p9 = pnand %p6084_p4, %p6044_p1  ;;  %p6092_p5 = scmp.lt.s32.totalorder %s6090_s22, %s6083_s26 }
  0x42   : > { %p6087_p11 = pneg %p6086_p9  ;;  %p6093_p6 = por %p6092_p5, %p6091_p3 }
  0x44   : > { %p6094_p8 = pnand %p6093_p6, %p6087_p11 }
  0x46   : > { %6097 = shalt.err (!%p6094_p8)
}
  0x47   : > { %5509 = dma.hbm_to_vmem [thread:$0]  (!%p6299_p13), %s6346_s27, 1024, %s6348_s19, %s170_s4, %s6199_s30, %s6199_s30, %s6200_s5  }
  0x48   : > { %192 = sbr.rel (%p6338_p12) target bundleno = 8991 (0x231f), region = 28 }
  0x4d   : > { %s6379_s6 = sand.u32 1, %s6188_s13   ;;  %p8892_p6 = scmp.ne.s32.totalorder %s8887_s23, 0 }
  0x4e   : > { %s5035_s8 = sshll.u32 %s6379_s6, 7  ;;  %s195_s28 = scalar_lea.sflag [#allocation3], %s6379_s6 }
  0x4f   : > { %s6383_s29 = scalar_lea.vmem [#allocation2], %s5035_s8 }
  0x50   : > { %6167 = dma.done.wait (%p8892_p6), %s195_s28, 2048  }
  0x51   : > { %6169 = vsyncadd (%p8892_p6), %s195_s28, 4294965248  ;;  %s5036_s7 = sshll.u32 %s6379_s6, 6  ;;  %s204_s30 = scalar_lea.sflag [#allocation6], %s6379_s6 }
  0x52   : > { %s6393_s5 = scalar_lea.vmem [#allocation5], %s5036_s7 }
  0x53   : > { %6171 = dma.done.wait (%p8892_p6), %s204_s30, 1024  }
  0x54   : > { %6173 = vsyncadd (%p8892_p6), %s204_s30, 4294966272  ;;  %v8798_v0 = vmov 0   ;;  %v6401_v1 = vld [vmem:[%s6383_s29 + $0x74] ss:$8 sps:$4 sm:$0xff]   ;;  %v6404_v2 = vld [vmem:[%s6383_s29 + $0x70] ss:$8 sps:$4 sm:$0xff]  }
  0x55   : > { %381 = vmatprep.mubr.bf16.mxu0 %v8798_v0  ;;  %349 = vmatprep.subr.bf16.mxu0 %v6401_v1  ;;  %v6408_v3 = vld [vmem:[%s6383_s29 + $0x64] ss:$8 sps:$4 sm:$0xff]   ;;  %v6412_v4 = vld [vmem:[%s6383_s29 + $0x60] ss:$8 sps:$4 sm:$0xff]   ;;  %v6415_v5 = vld [vmem:[%s6383_s29 + $0x54] ss:$8 sps:$4 sm:$0xff]  }
  0x56   : > { %350 = vmatpush1.bf16.msra.mxu0 %v6404_v2  ;;  %v263_v6 = vld [vmem:[%s6393_s5 + $0x30] sm:$0xff]  ;;  %v264_v7 = vld [vmem:[%s6393_s5 + $0x38] sm:$0xff]  ;;  %v261_v10 = vld [vmem:[%s6393_s5 + $0x20] sm:$0xff]  ;;  %vm665_vm0 = vcmask 523264   ;;  %s8560_s23 = scalar_lea.vmem [#allocation8], %s5036_s7  ;;  %s5134_s10 = sshll.u32 %s6250_s16, 10 }
  0x57   : > { %351 = vmatprep.subr.bf16.mxu0 %v6408_v3  ;;  %v6420_v8 = vpack.c.bf16 %v264_v7, %v263_v6  ;;  %v6424_v9 = vld [vmem:[%s6383_s29 + $0x50] ss:$8 sps:$4 sm:$0xff]   ;;  %v262_v11 = vld [vmem:[%s6393_s5 + $0x28] sm:$0xff]  ;;  %v6447_v17 = vld [vmem:[%s6383_s29 + $0x34] ss:$8 sps:$4 sm:$0xff]   ;;  %s4897_s19 = sshll.u32 %s8560_s23, 4  ;;  %s8680_s9 = scalar_lea.hbm %s8795_s3, %s5134_s10  ;;  %s8682_s19 = int_to_ptr.vmem [resolvable:$true] %s4897_s19 }
  0x58   : > { %v6432_v12 = vld [vmem:[%s6383_s29 + $0x44] ss:$8 sps:$4 sm:$0xff]   ;;  %v6434_v13 = vpack.c.bf16 %v262_v11, %v261_v10  ;;  %v6437_v14 = vld [vmem:[%s6383_s29 + $0x40] ss:$8 sps:$4 sm:$0xff]   ;;  %v259_v15 = vld [vmem:[%s6393_s5 + $0x10] sm:$0xff]  ;;  %s4868_s17 = scalar_lea.sflag [#allocation9], %s6379_s6 }
  0x59   : > { %8893 = vst [vmem:[#allocation14_spill] sm:$0xff] %v6420_v8  ;;  %5255 = vmatprep.subr.bf16.mxu1 %v6420_v8  ;;  %v6443_v16 = vld [vmem:[%s6393_s5 + $0x18] sm:$0xff]  ;;  %v6450_v18 = vld [vmem:[%s6393_s5] sm:$0xff]  ;;  %v6456_v20 = vld [vmem:[%s6393_s5 + $0x8] sm:$0xff]  ;;  %s6098_s26 = scalar_lea.vmem %s8682_s19, 1024  ;;  %p9032_p1 = scmp.ne.s32.totalorder %s8888_s24, 0 }
  0x5a   : > { %352 = vmatpush1.bf16.msra.mxu0 %v6412_v4  ;;  %5256 = vmatpush3.bf16.xpose.msra.mxu1 %v6420_v8  ;;  %8894 = vst [vmem:[#allocation15_spill] sm:$0xff] %v6434_v13  ;;  %8895 = vst [vmem:[#allocation16_spill] sm:$0xff] %v6443_v16  ;;  %v6453_v19 = vpack.c.bf16 %v6443_v16, %v259_v15  ;;  %v6460_v21 = vld [vmem:[%s6383_s29 + $0x30] ss:$8 sps:$4 sm:$0xff]   ;;  %v6464_v22 = vpack.c.bf16 %v6456_v20, %v6450_v18  ;;  %v6469_v23 = vld [vmem:[%s6383_s29 + $0x24] ss:$8 sps:$4 sm:$0xff]   ;;  %p6099_p13 = scmp.ne.s32.totalorder %s8682_s19, %s6098_s26 }
  0x5b   : > { %353 = vmatprep.subr.bf16.mxu0 %v6415_v5  ;;  %5257 = vmatprep.subr.bf16.mxu1 %v6434_v13  ;;  %8896 = vst [vmem:[#allocation17_spill] sm:$0xff] %v6450_v18  ;;  %8898 = vst [vmem:[#allocation19_spill] sm:$0xff] %v6456_v20  ;;  %v6475_v24 = vld [vmem:[%s6383_s29 + $0x20] ss:$8 sps:$4 sm:$0xff]   ;;  %v6479_v25 = vld [vmem:[%s6383_s29 + $0x14] ss:$8 sps:$4 sm:$0xff]  }
  0x5c   : > { %8897 = vst [vmem:[#allocation18_spill] sm:$0xff] %v6453_v19  ;;  %8899 = vst [vmem:[#allocation20_spill] sm:$0xff] %v6464_v22  ;;  %5263 = vmatprep.mubr.bf16.mxu1 %v6464_v22  ;;  %v6483_v26 = vld [vmem:[%s6383_s29 + $0x10] ss:$8 sps:$4 sm:$0xff]   ;;  %v6488_v27 = vld [vmem:[%s6383_s29 + $0x4] ss:$8 sps:$4 sm:$0xff]   ;;  %p6100_p12 = pnand %p6099_p13, %p9032_p1 }
  0x5d   : > { %8900 = vst [vmem:[#allocation21_spill] sm:$0xff] %v6469_v23  ;;  %8901 = vst [vmem:[#allocation22_spill] sm:$0xff] %v6475_v24  ;;  %v6493_v28 = vld [vmem:[%s6383_s29] ss:$8 sps:$4 sm:$0xff]   ;;  %s6203_s11 = smov [#allocation8]  }
  0x5e   : > { %354 = vmatpush1.bf16.msra.mxu0 %v6424_v9  ;;  %8902 = vst [vmem:[#allocation23_spill] sm:$0xff] %v6479_v25  ;;  %8903 = vst [vmem:[#allocation24_spill] sm:$0xff] %v6483_v26  ;;  %p6101_p7 = pneg %p6100_p12  ;;  %s6102_s20 = sshll.u32 %s6203_s11, 4  ;;  %s6103_s20 = int_to_ptr.vmem [resolvable:$false] %s6102_s20 }
  0x5f   : > { %355 = vmatprep.subr.bf16.mxu0 %v6432_v12  ;;  %8904 = vst [vmem:[#allocation25_spill] sm:$0xff] %v6488_v27  ;;  %8905 = vst [vmem:[#allocation26_spill] sm:$0xff] %v6493_v28  ;;  %s6104_s22 = scalar_lea.vmem %s6103_s20, 2048  ;;  %p6105_p10 = scmp.lt.s32.totalorder %s8682_s19, %s6103_s20 }
  0x60   : > { %p6106_p0 = scmp.lt.s32.totalorder %s6104_s22, %s6098_s26 }
  0x62   : > { %356 = vmatpush1.bf16.msra.mxu0 %v6437_v14  ;;  %5258 = vmatpush3.bf16.xpose.msra.mxu1 %v6434_v13  ;;  %p6107_p2 = por %p6106_p0, %p6105_p10 }
  0x63   : > { %357 = vmatprep.subr.bf16.mxu0 %v6447_v17  ;;  %5259 = vmatprep.subr.bf16.mxu1 %v6453_v19 }
  0x64   : > { %p6108_p4 = pnand %p6107_p2, %p6101_p7 }
  0x66   : > { %358 = vmatpush1.bf16.msra.mxu0 %v6460_v21 }
  0x67   : > { %359 = vmatprep.subr.bf16.mxu0 %v6469_v23 }
  0x6a   : > { %360 = vmatpush1.bf16.msra.mxu0 %v6475_v24  ;;  %5260 = vmatpush3.bf16.xpose.msra.mxu1 %v6453_v19 }
  0x6b   : > { %361 = vmatprep.subr.bf16.mxu0 %v6479_v25  ;;  %5261 = vmatprep.subr.bf16.mxu1 %v6464_v22 }
  0x6e   : > { %362 = vmatpush1.bf16.msra.mxu0 %v6483_v26 }
  0x6f   : > { %363 = vmatprep.subr.bf16.mxu0 %v6488_v27 }
  0x72   : > { %364 = vmatpush1.bf16.msra.mxu0 %v6493_v28  ;;  %5262 = vmatpush3.bf16.xpose.msra.mxu1 %v6464_v22 }
  0x73   : > { %791 = vmatprep.subr.bf16.mxu0 %v6401_v1 }
  0x75   : > { %382 = vmatmul.mubr.bf16.vlgmr.msra.gmra.mxu0 %v6464_v22 }
  0x76   : > { %391 = vmatprep.mubr.bf16.mxu0 %v8798_v0  ;;  %792 = vmatpush1.bf16.xpose.msra.mxu0 %v6404_v2 }
  0x77   : > { %793 = vmatprep.subr.bf16.mxu0 %v6408_v3 }
  0x79   : > { %5264 = vmatmul.mubr.bf16.vlgmr.msra.gmra.mxu1 %v6453_v19 }
  0x7a   : > { %5267 = vmatprep.mubr.bf16.mxu1 %v6434_v13 }
  0x7d   : > { %392 = vmatmul.mubr.bf16.gmra.mxu0 %v6453_v19 }
  0x7e   : > { %401 = vmatprep.mubr.bf16.mxu0 %v8798_v0  ;;  %794 = vmatpush1.bf16.xpose.msra.mxu0 %v6412_v4 }
  0x7f   : > { %795 = vmatprep.subr.bf16.mxu0 %v6415_v5 }
  0x81   : > { %5268 = vmatmul.mubr.bf16.gmra.mxu1 %v6420_v8 }
  0x82   : > { %710 = vmatprep.mubr.bf16.mxu1 %v8798_v0 }
  0x85   : > { %402 = vmatmul.mubr.bf16.gmra.mxu0 %v6434_v13 }
  0x86   : > { %411 = vmatprep.mubr.bf16.mxu0 %v8798_v0  ;;  %796 = vmatpush1.bf16.xpose.msra.mxu0 %v6424_v9 }
  0x87   : > { %797 = vmatprep.subr.bf16.mxu0 %v6432_v12 }
  0x8d   : > { %412 = vmatmul.mubr.bf16.gmra.mxu0 %v6420_v8 }
  0x8e   : > { %798 = vmatpush1.bf16.xpose.msra.mxu0 %v6437_v14 }
  0x8f   : > { %799 = vmatprep.subr.bf16.mxu0 %v6447_v17 }
  0x96   : > { %800 = vmatpush1.bf16.xpose.msra.mxu0 %v6460_v21 }
  0x97   : > { %801 = vmatprep.subr.bf16.mxu0 %v6469_v23 }
  0x9e   : > { %802 = vmatpush1.bf16.xpose.msra.mxu0 %v6475_v24 }
  0x9f   : > { %803 = vmatprep.subr.bf16.mxu0 %v6479_v25 }
  0xa6   : > { %804 = vmatpush1.bf16.xpose.msra.mxu0 %v6483_v26 }
  0xa7   : > { %805 = vmatprep.subr.bf16.mxu0 %v6488_v27 }
  0xae   : > { %806 = vmatpush1.bf16.xpose.msra.mxu0 %v6493_v28 }
  0xaf   : > { %1046 = vmatprep.subr.bf16.mxu0 %v6401_v1 }
 0x135   : > { %v6526_v29 = vpop.f32.mrf.mxu0 }
 0x136   : > { %v422_v58 = vmul.f32 100.0, %v6526_v29 }
 0x137   : > { %v6528_v30 = vpop.f32.mrf.mxu0 }
 0x138   : > { %v423_v62 = vmul.f32 100.0, %v6528_v30 }
 0x139   : > { %v6530_v31 = vpop.f32.mrf.mxu0  ;;  %v5265_v32 = vpop.f32.mrf.mxu1 }
 0x13a   : > { %v424_v59 = vmul.f32 100.0, %v6530_v31 }
 0x13b   : > { %v6532_v33 = vpop.f32.mrf.mxu0  ;;  %v590_v34 = vpop.f32.mrf.mxu1 }
 0x13c   : > { %v425_v63 = vmul.f32 100.0, %v6532_v33 }
 0x13d   : > { %v6534_v35 = vpop.f32.mrf.mxu0  ;;  %v5266_v36 = vpop.f32.mrf.mxu1 }
 0x13e   : > { %v622_v42 = vpack.c.bf16 %v5266_v36, %v5265_v32  ;;  %v426_v53 = vmul.f32 100.0, %v6534_v35 }
 0x13f   : > { %v6536_v37 = vpop.f32.mrf.mxu0  ;;  %v593_v38 = vpop.f32.mrf.mxu1 }
 0x140   : > { %v621_v40 = vpack.c.bf16 %v593_v38, %v590_v34  ;;  %v6553_v55 = vmul.f32 100.0, %v6536_v37  ;;  %v438_v7 = vmax.f32 %v422_v58, %v426_v53 }
 0x141   : > { %v6538_v39 = vpop.f32.mrf.mxu0  ;;  %v5269_v41 = vpop.f32.mrf.mxu1 }
 0x142   : > { %649 = vxpose.xlu0.c.b16.start [1/4] (short) (narrow) %v621_v40, 64  ;;  %v428_v54 = vmul.f32 100.0, %v6538_v39  ;;  %v451_v32 = vmax.f32 %v423_v62, %v6553_v55 }
 0x143   : > { %v6540_v43 = vpop.f32.mrf.mxu0  ;;  %v606_v44 = vpop.f32.mrf.mxu1 }
 0x144   : > { %v6556_v56 = vmul.f32 100.0, %v6540_v43  ;;  %v439_v10 = vmax.f32 %v424_v59, %v428_v54 }
 0x145   : > { %v6542_v45 = vpop.f32.mrf.mxu0  ;;  %v5270_v46 = vpop.f32.mrf.mxu1 }
 0x146   : > { %650 = vxpose.xlu0.c.b16.cont [2/4] (short) (narrow) %v622_v42, 64  ;;  %v624_v51 = vpack.c.bf16 %v5270_v46, %v5269_v41  ;;  %v430_v60 = vmul.f32 100.0, %v6542_v45  ;;  %v452_v34 = vmax.f32 %v425_v63, %v6556_v56 }
 0x147   : > { %v6544_v47 = vpop.f32.mrf.mxu0  ;;  %v609_v48 = vpop.f32.mrf.mxu1 }
 0x148   : > { %v623_v50 = vpack.c.bf16 %v609_v48, %v606_v44  ;;  %v6567_v1 = vmul.f32 100.0, %v6544_v47  ;;  %v440_v38 = vmax.f32 %v438_v7, %v430_v60 }
 0x149   : > { %v6546_v49 = vpop.f32.mrf.mxu0 }
 0x14a   : > { %651 = vxpose.xlu0.c.b16.cont [3/4] (short) (narrow) %v623_v50, 64  ;;  %v432_v61 = vmul.f32 100.0, %v6546_v49  ;;  %v453_v44 = vmax.f32 %v451_v32, %v6567_v1 }
 0x14b   : > { %v6548_v52 = vpop.f32.mrf.mxu0 }
 0x14c   : > { %v6572_v11 = vmul.f32 100.0, %v6548_v52  ;;  %v441_v40 = vmax.f32 %v439_v10, %v432_v61 }
 0x14d   : > { %v6558_v57 = vpop.f32.mrf.mxu0 }
 0x14e   : > { %8906 = vst [vmem:[#allocation27_spill] sm:$0xff] %v6558_v57  ;;  %652 = vxpose.xlu0.c.b16.end [4/4] (short) (narrow) %v624_v51, 64  ;;  %v434_v15 = vmul.f32 100.0, %v6558_v57  ;;  %v454_v48 = vmax.f32 %v452_v34, %v6572_v11 }
 0x14f   : > { %v6569_v6 = vpop.f32.mrf.mxu0 }
 0x150   : > { %v6580_v41 = vmul.f32 100.0, %v6569_v6  ;;  %v442_v50 = vmax.f32 %v440_v38, %v434_v15 }
 0x151   : > { %v6577_v36 = vpop.f32.mrf.mxu0 }
 0x152   : > { %v436_v42 = vmul.f32 100.0, %v6577_v36  ;;  %v455_v16 = vmax.f32 %v453_v44, %v6580_v41 }
 0x153   : > { %v6584_v46 = vpop.f32.mrf.mxu0 }
 0x154   : > { %v443_v51 = vmax.f32 %v441_v40, %v436_v42  ;;  %v6588_v0 = vmul.f32 100.0, %v6584_v46 }
 0x156   : > { %v444_v7 = vmax.f32 %v442_v50, %v443_v51  ;;  %v456_v10 = vmax.f32 %v454_v48, %v6588_v0 }
 0x158   : > { %v445_v20 = vrot.slane %v444_v7, 4  ;;  %v457_v18 = vmax.f32 %v455_v16, %v456_v10 }
 0x15a   : > { %v446_v22 = vmax.f32 %v444_v7, %v445_v20  ;;  %v458_v19 = vrot.slane %v457_v18, 4 }
 0x15c   : > { %v447_v13 = vrot.slane %v446_v22, 2  ;;  %v459_v32 = vmax.f32 %v457_v18, %v458_v19 }
 0x15e   : > { %v448_v8 = vmax.f32 %v446_v22, %v447_v13  ;;  %v460_v28 = vrot.slane %v459_v32, 2 }
 0x160   : > { %v449_v27 = vrot.slane %v448_v8, 1  ;;  %v461_v34 = vmax.f32 %v459_v32, %v460_v28 }
 0x162   : > { %v450_v38 = vmax.f32 %v448_v8, %v449_v27  ;;  %v462_v40 = vrot.slane %v461_v34, 1 }
 0x164   : > { %v464_v26 = vsub.f32 %v422_v58, %v450_v38  ;;  %v466_v25 = vsub.f32 %v424_v59, %v450_v38  ;;  %v468_v24 = vsub.f32 %v426_v53, %v450_v38  ;;  %v470_v23 = vsub.f32 %v428_v54, %v450_v38 }
 0x165   : > { %v472_v44 = vsub.f32 %v430_v60, %v450_v38  ;;  %v463_v48 = vmax.f32 %v461_v34, %v462_v40  ;;  %v474_v57 = vsub.f32 %v432_v61, %v450_v38  ;;  %v476_v19 = vsub.f32 %v434_v15, %v450_v38 }
 0x166   : > { %v480_v50 = vmul.f32 1.442695, %v464_v26  ;;  %v484_v51 = vmul.f32 1.442695, %v466_v25  ;;  %v488_v16 = vmul.f32 1.442695, %v468_v24  ;;  %v478_v28 = vsub.f32 %v436_v42, %v450_v38 }
 0x167   : > { %v465_v20 = vsub.f32 %v423_v62, %v463_v48  ;;  %v492_v18 = vmul.f32 1.442695, %v470_v23  ;;  %v467_v13 = vsub.f32 %v425_v63, %v463_v48  ;;  %v496_v22 = vmul.f32 1.442695, %v472_v44 }
 0x168   : > { %5582 = vpow2.f32 %v480_v50  ;;  %v500_v8 = vmul.f32 1.442695, %v474_v57  ;;  %v469_v27 = vsub.f32 %v6553_v55, %v463_v48  ;;  %v471_v26 = vsub.f32 %v6556_v56, %v463_v48 }
 0x169   : > { %5584 = vpow2.f32 %v484_v51  ;;  %v482_v53 = vmul.f32 1.442695, %v465_v20  ;;  %v486_v25 = vmul.f32 1.442695, %v467_v13  ;;  %v504_v54 = vmul.f32 1.442695, %v476_v19 }
 0x16a   : > { %5586 = vpow2.f32 %v488_v16  ;;  %v473_v24 = vsub.f32 %v6567_v1, %v463_v48  ;;  %v490_v58 = vmul.f32 1.442695, %v469_v27  ;;  %v508_v23 = vmul.f32 1.442695, %v478_v28 }
 0x16b   : > { %5588 = vpow2.f32 %v492_v18  ;;  %v475_v59 = vsub.f32 %v6572_v11, %v463_v48  ;;  %v494_v57 = vmul.f32 1.442695, %v471_v26  ;;  %v477_v55 = vsub.f32 %v6580_v41, %v463_v48 }
 0x16c   : > { %5590 = vpow2.f32 %v496_v22  ;;  %v498_v60 = vmul.f32 1.442695, %v473_v24  ;;  %v479_v61 = vsub.f32 %v6588_v0, %v463_v48 }
 0x16d   : > { %5592 = vpow2.f32 %v500_v8  ;;  %v502_v62 = vmul.f32 1.442695, %v475_v59  ;;  %v506_v15 = vmul.f32 1.442695, %v477_v55 }
 0x16e   : > { %5594 = vpow2.f32 %v482_v53  ;;  %v510_v7 = vmul.f32 1.442695, %v479_v61 }
 0x16f   : > { %5596 = vpow2.f32 %v486_v25 }
 0x170   : > { %5598 = vpow2.f32 %v504_v54 }
 0x171   : > { %5600 = vpow2.f32 %v490_v58 }
 0x172   : > { %5602 = vpow2.f32 %v508_v23 }
 0x173   : > { %5604 = vpow2.f32 %v494_v57 }
 0x174   : > { %5606 = vpow2.f32 %v498_v60 }
 0x175   : > { %v5583_v56 = vpop.eup %5582  ;;  %5608 = vpow2.f32 %v502_v62 }
 0x176   : > { %v5585_v63 = vpop.eup %5584  ;;  %5610 = vpow2.f32 %v506_v15 }
 0x177   : > { %v512_v1 = vadd.f32 %v5585_v63, %v5583_v56  ;;  %v6598_v42 = vpop.eup %5586  ;;  %5612 = vpow2.f32 %v510_v7 }
 0x178   : > { %v6601_v10 = vpop.eup %5588 }
 0x179   : > { %v513_v11 = vadd.f32 %v6598_v42, %v512_v1  ;;  %v5591_v41 = vpop.eup %5590 }
 0x17a   : > { %v5593_v34 = vpop.eup %5592 }
 0x17b   : > { %v514_v32 = vadd.f32 %v6601_v10, %v513_v11  ;;  %v5595_v0 = vpop.eup %5594 }
 0x17c   : > { %v5597_v40 = vpop.eup %5596 }
 0x17d   : > { %v515_v38 = vadd.f32 %v5591_v41, %v514_v32  ;;  %v5599_v44 = vpop.eup %5598  ;;  %v525_v51 = vadd.f32 %v5597_v40, %v5595_v0 }
 0x17e   : > { %v5601_v48 = vpop.eup %5600 }
 0x17f   : > { %v516_v50 = vadd.f32 %v5593_v34, %v515_v38  ;;  %v5603_v16 = vpop.eup %5602  ;;  %v526_v18 = vadd.f32 %v5601_v48, %v525_v51 }
 0x180   : > { %v5605_v13 = vpop.eup %5604 }
 0x181   : > { %v517_v20 = vadd.f32 %v5599_v44, %v516_v50  ;;  %v527_v22 = vadd.f32 %v5605_v13, %v526_v18  ;;  %v5607_v8 = vpop.eup %5606 }
 0x182   : > { %v5609_v53 = vpop.eup %5608 }
 0x183   : > { %v518_v19 = vadd.f32 %v5603_v16, %v517_v20  ;;  %v528_v28 = vadd.f32 %v5607_v8, %v527_v22  ;;  %v5611_v54 = vpop.eup %5610 }
 0x184   : > { %v5613_v23 = vpop.eup %5612 }
 0x185   : > { %v519_v27 = vrot.slane %v518_v19, 4  ;;  %v529_v25 = vadd.f32 %v5609_v53, %v528_v28 }
 0x187   : > { %v520_v26 = vadd.f32 %v519_v27, %v518_v19  ;;  %v530_v58 = vadd.f32 %v5611_v54, %v529_v25 }
 0x189   : > { %v521_v24 = vrot.slane %v520_v26, 2  ;;  %v531_v57 = vadd.f32 %v5613_v23, %v530_v58 }
 0x18b   : > { %v522_v59 = vadd.f32 %v521_v24, %v520_v26  ;;  %v532_v60 = vrot.slane %v531_v57, 4 }
 0x18d   : > { %v523_v55 = vrot.slane %v522_v59, 1  ;;  %v533_v62 = vadd.f32 %v532_v60, %v531_v57 }
 0x18f   : > { %v524_v61 = vadd.f32 %v523_v55, %v522_v59  ;;  %v534_v1 = vrot.slane %v533_v62, 2 }
 0x191   : > { %5614 = vrcp.f32 %v524_v61  ;;  %v535_v15 = vadd.f32 %v534_v1, %v533_v62 }
 0x193   : > { %v536_v11 = vrot.slane %v535_v15, 1 }
 0x195   : > { %v537_v7 = vadd.f32 %v536_v11, %v535_v15 }
 0x197   : > { %5616 = vrcp.f32 %v537_v7 }
 0x19e   : > { %v5615_v32 = vpop.eup %5614 }
 0x19f   : > { %v6604_v38 = vmul.f32 %v5615_v32, %v5583_v56  ;;  %v6606_v50 = vmul.f32 %v5615_v32, %v5585_v63  ;;  %v6610_v18 = vmul.f32 %v5615_v32, %v5599_v44  ;;  %v6612_v19 = vmul.f32 %v5615_v32, %v5603_v16 }
 0x1a0   : > { %v6626_v25 = vmul.f32 %v5615_v32, %v5591_v41  ;;  %v6628_v44 = vmul.f32 %v5615_v32, %v5593_v34  ;;  %v6639_v24 = vmul.f32 %v5615_v32, %v6598_v42  ;;  %v6642_v41 = vmul.f32 %v5615_v32, %v6601_v10 }
 0x1a1   : > { %v625_v51 = vpack.c.bf16 %v6606_v50, %v6604_v38  ;;  %v631_v63 = vpack.c.bf16 %v6612_v19, %v6610_v18  ;;  %v8907_v42 = vmov 0  }
 0x1a4   : > { %v5617_v20 = vpop.eup %5616  ;;  %v657_v59 = vpop.trf.xlu0 }
 0x1a5   : > { %v6614_v22 = vmul.f32 %v5617_v20, %v5613_v23  ;;  %v6616_v27 = vmul.f32 %v5617_v20, %v5611_v54  ;;  %v6618_v28 = vmul.f32 %v5617_v20, %v5607_v8  ;;  %v6620_v26 = vmul.f32 %v5617_v20, %v5609_v53 }
 0x1a6   : > { %v6632_v54 = vmul.f32 %v5617_v20, %v5601_v48  ;;  %v6634_v8 = vmul.f32 %v5617_v20, %v5605_v13  ;;  %v629_v53 = vpack.c.bf16 %v6628_v44, %v6626_v25  ;;  %v541_v58 = vmul.f32 %v5617_v20, %v5595_v0 }
 0x1a7   : > { %v632_v56 = vpack.c.bf16 %v6614_v22, %v6616_v27  ;;  %v630_v16 = vpack.c.bf16 %v6620_v26, %v6618_v28  ;;  %v543_v23 = vmul.f32 %v5617_v20, %v5597_v40  ;;  %v627_v48 = vpack.c.bf16 %v6642_v41, %v6639_v24 }
 0x1a8   : > { %v628_v34 = vpack.c.bf16 %v6634_v8, %v6632_v54  ;;  %v658_v10 = vpop.trf.xlu0 }
 0x1a9   : > { %686 = vmatprep.subr.bf16.mxu1 %v632_v56  ;;  %v626_v13 = vpack.c.bf16 %v543_v23, %v541_v58 }
 0x1aa   : > { %687 = vmatpush1.bf16.msra.mxu1 %v631_v63 }
 0x1ab   : > { %688 = vmatprep.subr.bf16.mxu1 %v630_v16 }
 0x1ac   : > { %v659_v0 = vpop.trf.xlu0 }
 0x1ae   : > { %689 = vmatpush1.bf16.msra.mxu1 %v629_v53 }
 0x1af   : > { %690 = vmatprep.subr.bf16.mxu1 %v628_v34 }
 0x1b0   : > { %v660_v40 = vpop.trf.xlu0 }
 0x1b2   : > { %691 = vmatpush1.bf16.msra.mxu1 %v627_v48 }
 0x1b3   : > { %692 = vmatprep.subr.bf16.mxu1 %v626_v13 }
 0x1b6   : > { %693 = vmatpush1.bf16.msra.mxu1 %v625_v51 }
 0x1b9   : > { %5055 = vmatmul.mubr.msk.bf16.vlgmr.msra.gmra.mxu1 %vm665_vm0, %v657_v59 }
 0x1ba   : > { %720 = vmatprep.mubr.bf16.mxu1 %v8907_v42 }
 0x1c1   : > { %5056 = vmatmul.mubr.msk.bf16.gmra.mxu1 %vm665_vm0, %v658_v10 }
 0x1c2   : > { %730 = vmatprep.mubr.bf16.mxu1 %v8907_v42 }
 0x1c9   : > { %5057 = vmatmul.mubr.msk.bf16.gmra.mxu1 %vm665_vm0, %v659_v0  ;;  %v635_v0 = vmul.f32 %v6606_v50, %v6530_v31 }
 0x1ca   : > { %740 = vmatprep.mubr.bf16.mxu1 %v8907_v42 }
 0x1d1   : > { %5058 = vmatmul.mubr.msk.bf16.gmra.mxu1 %vm665_vm0, %v660_v40 }
 0x279   : > { %v712_v57 = vpop.f32.mrf.mxu1 }
 0x27a   : > { %v713_v61 = vadd.f32 1e-06, %v712_v57 }
 0x27b   : > { %v714_v55 = vpop.f32.mrf.mxu1 }
 0x27c   : > { %v715_v60 = vadd.f32 1e-06, %v714_v55 }
 0x27d   : > { %v716_v62 = vpop.f32.mrf.mxu1 }
 0x27e   : > { %v717_v1 = vadd.f32 1e-06, %v716_v62  ;;  %5618 = vrcp.f32 %v715_v60  ;;  %v634_v60 = vmul.f32 %v541_v58, %v6528_v30 }
 0x27f   : > { %v718_v15 = vpop.f32.mrf.mxu1 }
 0x280   : > { %5620 = vrcp.f32 %v717_v1  ;;  %v719_v11 = vadd.f32 1e-06, %v718_v15  ;;  %v633_v15 = vmul.f32 %v6604_v38, %v6526_v29 }
 0x281   : > { %5622 = vrcp.f32 %v713_v61  ;;  %v722_v7 = vpop.f32.mrf.mxu1  ;;  %v636_v61 = vmul.f32 %v543_v23, %v6532_v33 }
 0x282   : > { %5624 = vrcp.f32 %v719_v11  ;;  %v723_v20 = vadd.f32 1e-06, %v722_v7 }
 0x283   : > { %v724_v32 = vpop.f32.mrf.mxu1 }
 0x284   : > { %v725_v51 = vadd.f32 1e-06, %v724_v32 }
 0x285   : > { %v726_v56 = vpop.f32.mrf.mxu1 }
 0x286   : > { %v727_v63 = vadd.f32 1e-06, %v726_v56  ;;  %5626 = vrcp.f32 %v725_v51 }
 0x287   : > { %v728_v16 = vpop.f32.mrf.mxu1 }
 0x288   : > { %5628 = vrcp.f32 %v727_v63  ;;  %v729_v53 = vadd.f32 1e-06, %v728_v16  ;;  %v639_v16 = vmul.f32 %v6642_v41, %v6538_v39 }
 0x289   : > { %5630 = vrcp.f32 %v723_v20  ;;  %v732_v34 = vpop.f32.mrf.mxu1 }
 0x28a   : > { %5632 = vrcp.f32 %v729_v53  ;;  %v733_v40 = vadd.f32 1e-06, %v732_v34  ;;  %v638_v34 = vmul.f32 %v6632_v54, %v6536_v37 }
 0x28b   : > { %v734_v48 = vpop.f32.mrf.mxu1  ;;  %v5619_v13 = vpop.eup %5618 }
 0x28c   : > { %v735_v59 = vadd.f32 1e-06, %v734_v48  ;;  %v6663_v51 = vmul.f32 %v5619_v13, %v634_v60  ;;  %v640_v48 = vmul.f32 %v6634_v8, %v6540_v43  ;;  %v643_v8 = vmul.f32 %v6628_v44, %v6546_v49 }
 0x28d   : > { %v5621_v10 = vpop.eup %5620  ;;  %v736_v57 = vpop.f32.mrf.mxu1 }
 0x28e   : > { %v5623_v55 = vpop.eup %5622  ;;  %v737_v62 = vadd.f32 1e-06, %v736_v57  ;;  %5634 = vrcp.f32 %v735_v59  ;;  %v6661_v7 = vmul.f32 %v5621_v10, %v635_v0  ;;  %v637_v0 = vmul.f32 %v6639_v24, %v6534_v35 }
 0x28f   : > { %v5625_v1 = vpop.eup %5624  ;;  %v738_v11 = vpop.f32.mrf.mxu1  ;;  %v6667_v30 = vmul.f32 %v5623_v55, %v633_v15  ;;  %v642_v57 = vmul.f32 %v6618_v28, %v6544_v47  ;;  %v8909_v15 = vld [vmem:[#allocation21_spill] sm:$0xff] }
 0x290   : > { %5636 = vrcp.f32 %v737_v62  ;;  %v739_v32 = vadd.f32 1e-06, %v738_v11  ;;  %v6665_v31 = vmul.f32 %v5625_v1, %v636_v61 }
 0x291   : > { %5638 = vrcp.f32 %v733_v40  ;;  %v742_v50 = vpop.f32.mrf.mxu1  ;;  %v6675_v38 = vpack.c.bf16 %v6661_v7, %v6667_v30 }
 0x292   : > { %5640 = vrcp.f32 %v739_v32  ;;  %v6671_v33 = vpack.c.bf16 %v6665_v31, %v6663_v51  ;;  %v743_v56 = vadd.f32 1e-06, %v742_v50  ;;  %v8914_v32 = vld [vmem:[#allocation26_spill] sm:$0xff] }
 0x293   : > { %v744_v29 = vpop.f32.mrf.mxu1  ;;  %v5627_v58 = vpop.eup %5626  ;;  %v8915_v50 = vld [vmem:[#allocation14_spill] sm:$0xff] }
 0x294   : > { %v745_v23 = vadd.f32 1e-06, %v744_v29  ;;  %823 = vmatprep.mubr.bf16.mxu0 %v6671_v33  ;;  %888 = vmatprep.mubr.bf16.mxu1 %v6671_v33  ;;  %v6692_v41 = vmul.f32 %v5627_v58, %v638_v34  ;;  %v8916_v29 = vld [vmem:[#allocation15_spill] sm:$0xff]  ;;  %v8917_v58 = vld [vmem:[#allocation18_spill] sm:$0xff] }
 0x295   : > { %v5629_v20 = vpop.eup %5628  ;;  %v746_v63 = vpop.f32.mrf.mxu1  ;;  %824 = vmatmul.mubr.bf16.vlgmr.msra.gmra.mxu0 %v6675_v38 }
 0x296   : > { %v5631_v53 = vpop.eup %5630  ;;  %v747_v13 = vadd.f32 1e-06, %v746_v63  ;;  %1047 = vmatpush1.bf16.msra.mxu0 %v6404_v2  ;;  %5642 = vrcp.f32 %v745_v23  ;;  %v6689_v40 = vmul.f32 %v5629_v20, %v639_v16  ;;  %v8918_v23 = vld [vmem:[#allocation20_spill] sm:$0xff] }
 0x297   : > { %v5633_v59 = vpop.eup %5632  ;;  %v748_v10 = vpop.f32.mrf.mxu1  ;;  %1048 = vmatprep.subr.bf16.mxu0 %v6408_v3  ;;  %v6696_v43 = vmul.f32 %v5631_v53, %v637_v0 }
 0x298   : > { %5644 = vrcp.f32 %v747_v13  ;;  %v749_v39 = vadd.f32 1e-06, %v748_v10  ;;  %v6694_v37 = vmul.f32 %v5633_v59, %v640_v48 }
 0x299   : > { %5646 = vrcp.f32 %v743_v56  ;;  %v6705_v35 = vpack.c.bf16 %v6689_v40, %v6696_v43 }
 0x29a   : > { %5648 = vrcp.f32 %v749_v39  ;;  %v6700_v2 = vpack.c.bf16 %v6694_v37, %v6692_v41  ;;  %1049 = vmatpush1.bf16.msra.mxu0 %v6412_v4  ;;  %v644_v4 = vmul.f32 %v6620_v26, %v6548_v52  ;;  %v647_v52 = vmul.f32 %v6612_v19, %v6577_v36 }
 0x29b   : > { %1050 = vmatprep.subr.bf16.mxu0 %v6415_v5  ;;  %v5635_v3 = vpop.eup %5634  ;;  %v641_v5 = vmul.f32 %v6626_v25, %v6542_v45  ;;  %v648_v26 = vmul.f32 %v6614_v22, %v6584_v46  ;;  %v8912_v22 = vld [vmem:[#allocation24_spill] sm:$0xff] }
 0x29c   : > { %831 = vmatprep.mubr.bf16.mxu0 %v6700_v2  ;;  %v6722_v61 = vmul.f32 %v5635_v3, %v642_v57 }
 0x29d   : > { %v5637_v54 = vpop.eup %5636  ;;  %832 = vmatmul.mubr.bf16.gmra.mxu0 %v6705_v35 }
 0x29e   : > { %v5639_v24 = vpop.eup %5638  ;;  %1051 = vmatpush1.bf16.msra.mxu0 %v6424_v9  ;;  %v6719_v60 = vmul.f32 %v5637_v54, %v643_v8 }
 0x29f   : > { %v5641_v55 = vpop.eup %5640  ;;  %1052 = vmatprep.subr.bf16.mxu0 %v6432_v12  ;;  %v6726_v44 = vmul.f32 %v5639_v24, %v641_v5 }
 0x2a0   : > { %v6724_v49 = vmul.f32 %v5641_v55, %v644_v4 }
 0x2a1   : > { %v6735_v9 = vpack.c.bf16 %v6719_v60, %v6726_v44 }
 0x2a2   : > { %v6730_v47 = vpack.c.bf16 %v6724_v49, %v6722_v61  ;;  %1053 = vmatpush1.bf16.msra.mxu0 %v6437_v14  ;;  %v646_v14 = vmul.f32 %v6616_v27, %v6569_v6  ;;  %v8910_v6 = vld [vmem:[#allocation22_spill] sm:$0xff]  ;;  %v8913_v27 = vld [vmem:[#allocation25_spill] sm:$0xff] }
 0x2a3   : > { %1054 = vmatprep.subr.bf16.mxu0 %v6447_v17  ;;  %v5643_v45 = vpop.eup %5642  ;;  %v8908_v17 = vld [vmem:[#allocation27_spill] sm:$0xff] }
 0x2a4   : > { %839 = vmatprep.mubr.bf16.mxu0 %v6730_v47  ;;  %v645_v62 = vmul.f32 %v6610_v18, %v8908_v17  ;;  %v6752_v36 = vmul.f32 %v5643_v45, %v646_v14  ;;  %v8911_v18 = vld [vmem:[#allocation23_spill] sm:$0xff] }
 0x2a5   : > { %v5645_v12 = vpop.eup %5644  ;;  %840 = vmatmul.mubr.bf16.gmra.mxu0 %v6735_v9 }
 0x2a6   : > { %v5647_v28 = vpop.eup %5646  ;;  %1055 = vmatpush1.bf16.msra.mxu0 %v6460_v21  ;;  %v6749_v1 = vmul.f32 %v5645_v12, %v647_v52 }
 0x2a7   : > { %v5649_v25 = vpop.eup %5648  ;;  %1056 = vmatprep.subr.bf16.mxu0 %v8909_v15  ;;  %v6756_v11 = vmul.f32 %v5647_v28, %v645_v62 }
 0x2a8   : > { %v6754_v19 = vmul.f32 %v5649_v25, %v648_v26 }
 0x2a9   : > { %v6765_v21 = vpack.c.bf16 %v6749_v1, %v6756_v11 }
 0x2aa   : > { %v6760_v46 = vpack.c.bf16 %v6754_v19, %v6752_v36  ;;  %1057 = vmatpush1.bf16.msra.mxu0 %v8910_v6 }
 0x2ab   : > { %1058 = vmatprep.subr.bf16.mxu0 %v8911_v18 }
 0x2ac   : > { %847 = vmatprep.mubr.bf16.mxu0 %v6760_v46  ;;  %864 = vmatprep.subr.bf16.mxu1 %v6760_v46 }
 0x2ad   : > { %848 = vmatmul.mubr.bf16.gmra.mxu0 %v6765_v21  ;;  %865 = vmatpush1.bf16.xpose.msra.mxu1 %v6765_v21 }
 0x2ae   : > { %866 = vmatprep.subr.bf16.mxu1 %v6730_v47  ;;  %1059 = vmatpush1.bf16.msra.mxu0 %v8912_v22 }
 0x2af   : > { %1060 = vmatprep.subr.bf16.mxu0 %v8913_v27  ;;  %1078 = vmatprep.mubr.bf16.mxu0 %v8907_v42 }
 0x2b2   : > { %1061 = vmatpush1.bf16.msra.mxu0 %v8914_v32 }
 0x2b5   : > { %867 = vmatpush1.bf16.xpose.msra.mxu1 %v6735_v9 }
 0x2b6   : > { %868 = vmatprep.subr.bf16.mxu1 %v6700_v2 }
 0x2bd   : > { %869 = vmatpush1.bf16.xpose.msra.mxu1 %v6705_v35 }
 0x2be   : > { %870 = vmatprep.subr.bf16.mxu1 %v6671_v33 }
 0x2c5   : > { %871 = vmatpush1.bf16.xpose.msra.mxu1 %v6675_v38 }
 0x2c6   : > { %5271 = vmatprep.subr.bf16.mxu1 %v8915_v50 }
 0x2cc   : > { %889 = vmatmul.mubr.bf16.vlgmr.msra.gmra.mxu1 %v6675_v38 }
 0x2cd   : > { %896 = vmatprep.mubr.bf16.mxu1 %v6700_v2  ;;  %5272 = vmatpush3.bf16.msra.mxu1 %v8915_v50 }
 0x2ce   : > { %5273 = vmatprep.subr.bf16.mxu1 %v8916_v29 }
 0x2d1   : > { %5274 = vmatpush3.bf16.msra.mxu1 %v8916_v29 }
 0x2d2   : > { %5275 = vmatprep.subr.bf16.mxu1 %v8917_v58 }
 0x2d4   : > { %897 = vmatmul.mubr.bf16.gmra.mxu1 %v6705_v35 }
 0x2d5   : > { %904 = vmatprep.mubr.bf16.mxu1 %v6730_v47  ;;  %5276 = vmatpush3.bf16.msra.mxu1 %v8917_v58 }
 0x2d6   : > { %5277 = vmatprep.subr.bf16.mxu1 %v8918_v23 }
 0x2d9   : > { %5278 = vmatpush3.bf16.msra.mxu1 %v8918_v23 }
 0x2dc   : > { %905 = vmatmul.mubr.bf16.gmra.mxu1 %v6735_v9 }
 0x2dd   : > { %912 = vmatprep.mubr.bf16.mxu1 %v6760_v46 }
 0x2e4   : > { %913 = vmatmul.mubr.bf16.gmra.mxu1 %v6765_v21 }
 0x355   : > { %v6797_v20 = vpop.f32.mrf.mxu0 }
 0x357   : > { %v827_v56 = vpop.f32.mrf.mxu0 }
 0x359   : > { %v6799_v63 = vpop.f32.mrf.mxu0 }
 0x35b   : > { %v830_v16 = vpop.f32.mrf.mxu0 }
 0x35d   : > { %v6801_v53 = vpop.f32.mrf.mxu0 }
 0x35f   : > { %v835_v34 = vpop.f32.mrf.mxu0 }
 0x361   : > { %v6803_v48 = vpop.f32.mrf.mxu0 }
 0x363   : > { %v838_v13 = vpop.f32.mrf.mxu0 }
 0x365   : > { %v6805_v59 = vpop.f32.mrf.mxu0 }
 0x367   : > { %v843_v10 = vpop.f32.mrf.mxu0 }
 0x369   : > { %v6807_v0 = vpop.f32.mrf.mxu0 }
 0x36b   : > { %v846_v39 = vpop.f32.mrf.mxu0 }
 0x36d   : > { %v6809_v3 = vpop.f32.mrf.mxu0 }
 0x36f   : > { %v851_v54 = vpop.f32.mrf.mxu0 }
 0x371   : > { %v6811_v8 = vpop.f32.mrf.mxu0 }
 0x373   : > { %v854_v24 = vpop.f32.mrf.mxu0 }
 0x38c   : > { %v890_v57 = vpop.f32.mrf.mxu1 }
 0x38e   : > { %v892_v4 = vpop.f32.mrf.mxu1 }
 0x390   : > { %v893_v55 = vpop.f32.mrf.mxu1 }
 0x391   : > { %v921_v5 = vpack.c.bf16 %v893_v55, %v890_v57 }
 0x392   : > { %v895_v45 = vpop.f32.mrf.mxu1 }
 0x393   : > { %933 = vxpose.xlu1.c.b16.start [1/4] (short) (narrow) %v921_v5, 64 }
 0x394   : > { %v898_v12 = vpop.f32.mrf.mxu1 }
 0x396   : > { %v900_v52 = vpop.f32.mrf.mxu1 }
 0x398   : > { %v901_v28 = vpop.f32.mrf.mxu1 }
 0x399   : > { %v922_v26 = vpack.c.bf16 %v901_v28, %v898_v12 }
 0x39a   : > { %v903_v14 = vpop.f32.mrf.mxu1 }
 0x39b   : > { %934 = vxpose.xlu1.c.b16.cont [2/4] (short) (narrow) %v922_v26, 64 }
 0x39c   : > { %v906_v25 = vpop.f32.mrf.mxu1 }
 0x39e   : > { %v908_v17 = vpop.f32.mrf.mxu1 }
 0x3a0   : > { %v909_v62 = vpop.f32.mrf.mxu1 }
 0x3a1   : > { %v923_v15 = vpack.c.bf16 %v909_v62, %v906_v25  ;;  %v8919_v25 = vld [vmem:[#allocation17_spill] sm:$0xff]  ;;  %v8920_v62 = vld [vmem:[#allocation19_spill] sm:$0xff] }
 0x3a2   : > { %v911_v6 = vpop.f32.mrf.mxu1  ;;  %v925_v17 = vmul.f32 %v6797_v20, %v8919_v25  ;;  %v8924_v20 = vld [vmem:[#allocation16_spill] sm:$0xff] }
 0x3a3   : > { %935 = vxpose.xlu1.c.b16.cont [3/4] (short) (narrow) %v923_v15, 64  ;;  %v926_v15 = vmul.f32 %v6799_v63, %v8920_v62  ;;  %v5986_v63 = vld [vmem:[%s6393_s5 + $0x30] sm:$0xff] }
 0x3a4   : > { %v914_v18 = vpop.f32.mrf.mxu1  ;;  %v6900_v62 = vld [vmem:[%s6383_s29 + $0x70] ss:$8 sps:$4 sm:$0xff]  }
 0x3a6   : > { %v916_v22 = vpop.f32.mrf.mxu1 }
 0x3a8   : > { %v917_v27 = vpop.f32.mrf.mxu1 }
 0x3a9   : > { %v924_v32 = vpack.c.bf16 %v917_v27, %v914_v18 }
 0x3aa   : > { %v919_v50 = vpop.f32.mrf.mxu1 }
 0x3ab   : > { %936 = vxpose.xlu1.c.b16.end [4/4] (short) (narrow) %v924_v32, 64 }
 0x401   : > { %v941_v29 = vpop.trf.xlu1 }
 0x402   : > { %5279 = vmatprep.mubr.msk.bf16.mxu1 %vm665_vm0, %v941_v29 }
 0x405   : > { %v942_v58 = vpop.trf.xlu1 }
 0x406   : > { %5280 = vmatmul.mubr.msk.bf16.vlgmr.msra.gmra.mxu1 %vm665_vm0, %v942_v58 }
 0x409   : > { %v943_v23 = vpop.trf.xlu1 }
 0x40a   : > { %5283 = vmatprep.mubr.msk.bf16.mxu1 %vm665_vm0, %v943_v23  ;;  %v928_v23 = vmul.f32 %v6803_v48, %v8924_v20  ;;  %v5990_v48 = vld [vmem:[%s6393_s5 + $0x28] sm:$0xff] }
 0x40b   : > { %v6924_v20 = vld [vmem:[%s6383_s29 + $0x44] ss:$8 sps:$4 sm:$0xff]  }
 0x40d   : > { %v944_v56 = vpop.trf.xlu1 }
 0x40e   : > { %5284 = vmatmul.mubr.msk.bf16.gmra.mxu1 %vm665_vm0, %v944_v56  ;;  %v931_v56 = vmul.f32 %v5986_v63, %v6809_v3  ;;  %v6929_v63 = vld [vmem:[%s6383_s29 + $0x40] ss:$8 sps:$4 sm:$0xff]  }
 0x4c6   : > { %v5281_v16 = vpop.f32.mrf.mxu1 }
 0x4c7   : > { %v1004_v54 = vadd.f32 1e-06, %v5281_v16  ;;  %v5987_v16 = vld [vmem:[%s6393_s5 + $0x38] sm:$0xff] }
 0x4c8   : > { %v995_v34 = vpop.f32.mrf.mxu1 }
 0x4c9   : > { %v996_v13 = vadd.f32 1e-06, %v995_v34  ;;  %v932_v34 = vmul.f32 %v5987_v16, %v6811_v8  ;;  %v6937_v16 = vld [vmem:[%s6383_s29 + $0x30] ss:$8 sps:$4 sm:$0xff]  }
 0x4ca   : > { %v5282_v10 = vpop.f32.mrf.mxu1 }
 0x4cb   : > { %5650 = vrcp.f32 %v996_v13  ;;  %v1007_v57 = vadd.f32 1e-06, %v5282_v10  ;;  %v5988_v10 = vld [vmem:[%s6393_s5 + $0x10] sm:$0xff] }
 0x4cc   : > { %v998_v39 = vpop.f32.mrf.mxu1 }
 0x4cd   : > { %v999_v24 = vadd.f32 1e-06, %v998_v39  ;;  %v927_v39 = vmul.f32 %v5988_v10, %v6801_v53  ;;  %v6949_v10 = vld [vmem:[%s6383_s29 + $0x14] ss:$8 sps:$4 sm:$0xff]  }
 0x4ce   : > { %v5285_v4 = vpop.f32.mrf.mxu1 }
 0x4cf   : > { %5652 = vrcp.f32 %v999_v24  ;;  %v1020_v55 = vadd.f32 1e-06, %v5285_v4 }
 0x4d0   : > { %v1011_v5 = vpop.f32.mrf.mxu1  ;;  %5654 = vrcp.f32 %v1004_v54  ;;  %v5989_v54 = vld [vmem:[%s6393_s5 + $0x20] sm:$0xff] }
 0x4d1   : > { %v1012_v45 = vadd.f32 1e-06, %v1011_v5  ;;  %5656 = vrcp.f32 %v1007_v57  ;;  %v929_v24 = vmul.f32 %v5989_v54, %v6805_v59  ;;  %v930_v57 = vmul.f32 %v5990_v48, %v6807_v0  ;;  %v6957_v54 = vld [vmem:[%s6383_s29 + $0x4] ss:$8 sps:$4 sm:$0xff]  }
 0x4d2   : > { %v5286_v12 = vpop.f32.mrf.mxu1  ;;  %5658 = vrcp.f32 %v1020_v55 }
 0x4d3   : > { %v1023_v52 = vadd.f32 1e-06, %v5286_v12  ;;  %5660 = vrcp.f32 %v1012_v45 }
 0x4d4   : > { %v1014_v28 = vpop.f32.mrf.mxu1 }
 0x4d5   : > { %5662 = vrcp.f32 %v1023_v52  ;;  %v1015_v26 = vadd.f32 1e-06, %v1014_v28 }
 0x4d7   : > { %5664 = vrcp.f32 %v1015_v26 }
 0x4d8   : > { %v5651_v14 = vpop.eup %5650 }
 0x4d9   : > { %v6821_v18 = vmul.f32 %v5651_v14, %v925_v17 }
 0x4db   : > { %8921 = vst [vmem:[#allocation27_spill] sm:$0xff] %v6821_v18 }
 0x4dc   : > { %v5653_v6 = vpop.eup %5652 }
 0x4dd   : > { %v6823_v22 = vmul.f32 %v5653_v6, %v926_v15  ;;  %v5655_v27 = vpop.eup %5654  ;;  %v6904_v15 = vld [vmem:[%s6383_s29 + $0x64] ss:$8 sps:$4 sm:$0xff]  }
 0x4de   : > { %v5657_v32 = vpop.eup %5656  ;;  %v6850_v5 = vmul.f32 %v5655_v27, %v927_v39  ;;  %v6910_v27 = vld [vmem:[%s6383_s29 + $0x60] ss:$8 sps:$4 sm:$0xff]   ;;  %v6953_v39 = vld [vmem:[%s6383_s29 + $0x10] ss:$8 sps:$4 sm:$0xff]  }
 0x4df   : > { %8922 = vst [vmem:[#allocation21_spill] sm:$0xff] %v6823_v22  ;;  %v6827_v50 = vpack.c.bf16 %v6823_v22, %v6821_v18  ;;  %v5659_v29 = vpop.eup %5658  ;;  %v6844_v3 = vmul.f32 %v5657_v32, %v928_v23  ;;  %v6914_v32 = vld [vmem:[%s6383_s29 + $0x54] ss:$8 sps:$4 sm:$0xff]  }
 0x4e0   : > { %v5661_v58 = vpop.eup %5660  ;;  %v6846_v4 = vmul.f32 %v5659_v29, %v931_v56  ;;  %8928 = vst [vmem:[#allocation26_spill] sm:$0xff] %v6850_v5  ;;  %v6933_v56 = vld [vmem:[%s6383_s29 + $0x34] ss:$8 sps:$4 sm:$0xff]  }
 0x4e1   : > { %8923 = vst [vmem:[#allocation22_spill] sm:$0xff] %v6827_v50  ;;  %1079 = vmatmul.mubr.bf16.vlgmr.msra.gmra.mxu0 %v6827_v50  ;;  %5295 = vmatprep.mubr.bf16.mxu1 %v6827_v50  ;;  %8925 = vst [vmem:[#allocation23_spill] sm:$0xff] %v6844_v3  ;;  %v6852_v45 = vmul.f32 %v5661_v58, %v929_v24  ;;  %v6862_v0 = vpack.c.bf16 %v6844_v3, %v6850_v5  ;;  %v6920_v58 = vld [vmem:[%s6383_s29 + $0x50] ss:$8 sps:$4 sm:$0xff]   ;;  %v6961_v24 = vld [vmem:[%s6383_s29] ss:$8 sps:$4 sm:$0xff]  }
 0x4e2   : > { %v5663_v13 = vpop.eup %5662  ;;  %1088 = vmatprep.mubr.bf16.mxu0 %v8907_v42  ;;  %8926 = vst [vmem:[#allocation24_spill] sm:$0xff] %v6846_v4 }
 0x4e3   : > { %v6848_v8 = vmul.f32 %v5663_v13, %v932_v34  ;;  %8929 = vst [vmem:[#allocation14_spill] sm:$0xff] %v6852_v45  ;;  %v6941_v34 = vld [vmem:[%s6383_s29 + $0x24] ss:$8 sps:$4 sm:$0xff]   ;;  %v6945_v13 = vld [vmem:[%s6383_s29 + $0x20] ss:$8 sps:$4 sm:$0xff]  }
 0x4e4   : > { %v5665_v55 = vpop.eup %5664 }
 0x4e5   : > { %8927 = vst [vmem:[#allocation25_spill] sm:$0xff] %v6848_v8  ;;  %v6856_v53 = vpack.c.bf16 %v6848_v8, %v6846_v4  ;;  %v6858_v59 = vmul.f32 %v5665_v55, %v930_v57 }
 0x4e7   : > { %8930 = vst [vmem:[#allocation15_spill] sm:$0xff] %v6858_v59  ;;  %5287 = vmatprep.subr.bf16.mxu1 %v6856_v53  ;;  %v6867_v12 = vpack.c.bf16 %v6858_v59, %v6852_v45 }
 0x4e8   : > { %5288 = vmatpush3.bf16.xpose.msra.mxu1 %v6856_v53 }
 0x4e9   : > { %1089 = vmatmul.mubr.bf16.gmra.mxu0 %v6862_v0  ;;  %5289 = vmatprep.subr.bf16.mxu1 %v6867_v12 }
 0x4ea   : > { %1098 = vmatprep.mubr.bf16.mxu0 %v8907_v42 }
 0x4f0   : > { %5290 = vmatpush3.bf16.xpose.msra.mxu1 %v6867_v12 }
 0x4f1   : > { %1099 = vmatmul.mubr.bf16.gmra.mxu0 %v6867_v12  ;;  %5291 = vmatprep.subr.bf16.mxu1 %v6862_v0 }
 0x4f2   : > { %1108 = vmatprep.mubr.bf16.mxu0 %v8907_v42 }
 0x4f8   : > { %5292 = vmatpush3.bf16.xpose.msra.mxu1 %v6862_v0 }
 0x4f9   : > { %1109 = vmatmul.mubr.bf16.gmra.mxu0 %v6856_v53  ;;  %5293 = vmatprep.subr.bf16.mxu1 %v6827_v50 }
 0x500   : > { %5294 = vmatpush3.bf16.xpose.msra.mxu1 %v6827_v50 }
 0x501   : > { %1240 = vmatprep.subr.bf16.mxu1 %v6760_v46  ;;  %v6894_v46 = vld [vmem:[%s6383_s29 + $0x74] ss:$8 sps:$4 sm:$0xff]  }
 0x507   : > { %5296 = vmatmul.mubr.bf16.vlgmr.msra.gmra.mxu1 %v6862_v0 }
 0x508   : > { %5299 = vmatprep.mubr.bf16.mxu1 %v6867_v12  ;;  %1241 = vmatpush1.bf16.msra.mxu1 %v6765_v21 }
 0x509   : > { %1242 = vmatprep.subr.bf16.mxu1 %v6730_v47 }
 0x50c   : > { %1243 = vmatpush1.bf16.msra.mxu1 %v6735_v9 }
 0x50d   : > { %1244 = vmatprep.subr.bf16.mxu1 %v6700_v2 }
 0x50f   : > { %5300 = vmatmul.mubr.bf16.gmra.mxu1 %v6856_v53 }
 0x510   : > { %1245 = vmatpush1.bf16.msra.mxu1 %v6705_v35  ;;  %1264 = vmatprep.mubr.bf16.mxu1 %v8907_v42 }
 0x511   : > { %1246 = vmatprep.subr.bf16.mxu1 %v6671_v33 }
 0x514   : > { %1247 = vmatpush1.bf16.msra.mxu1 %v6675_v38 }
 0x515   : > { %1345 = vmatprep.subr.bf16.mxu1 %v6894_v46 }
 0x5a1   : > { %v1080_v48 = vpop.f32.mrf.mxu0 }
 0x5a3   : > { %v1082_v57 = vpop.f32.mrf.mxu0 }
 0x5a4   : > { %v1189_v3 = vmul.f32 %v1082_v57, %v6663_v51 }
 0x5a5   : > { %v1084_v55 = vpop.f32.mrf.mxu0 }
 0x5c7   : > { %v5297_v21 = vpop.f32.mrf.mxu1 }
 0x5c9   : > { %v1153_v47 = vpop.f32.mrf.mxu1 }
 0x5cb   : > { %v5298_v52 = vpop.f32.mrf.mxu1 }
 0x5cc   : > { %v1185_v26 = vpack.c.bf16 %v5298_v52, %v5297_v21  ;;  %v1086_v21 = vpop.f32.mrf.mxu0 }
 0x5cd   : > { %v1156_v9 = vpop.f32.mrf.mxu1 }
 0x5ce   : > { %v1184_v2 = vpack.c.bf16 %v1156_v9, %v1153_v47  ;;  %v6965_v47 = vpop.f32.mrf.mxu0 }
 0x5cf   : > { %v5301_v28 = vpop.f32.mrf.mxu1 }
 0x5d0   : > { %1204 = vxpose.xlu0.c.b16.start [1/4] (short) (narrow) %v1184_v2, 64  ;;  %v6967_v9 = vpop.f32.mrf.mxu0 }
 0x5d1   : > { %v1169_v35 = vpop.f32.mrf.mxu1 }
 0x5d3   : > { %v5302_v14 = vpop.f32.mrf.mxu1 }
 0x5d4   : > { %1205 = vxpose.xlu0.c.b16.cont [2/4] (short) (narrow) %v1185_v26, 64  ;;  %v1187_v25 = vpack.c.bf16 %v5302_v14, %v5301_v28 }
 0x5d5   : > { %v1172_v33 = vpop.f32.mrf.mxu1 }
 0x5d6   : > { %v1186_v38 = vpack.c.bf16 %v1172_v33, %v1169_v35  ;;  %v1094_v33 = vpop.f32.mrf.mxu0 }
 0x5d8   : > { %1206 = vxpose.xlu0.c.b16.cont [3/4] (short) (narrow) %v1186_v38, 64 }
 0x5dc   : > { %1207 = vxpose.xlu0.c.b16.end [4/4] (short) (narrow) %v1187_v25, 64 }
 0x632   : > { %v1212_v17 = vpop.trf.xlu0 }
 0x633   : > { %5063 = vmatmul.mubr.msk.bf16.vlgmr.msra.gmra.mxu1 %vm665_vm0, %v1212_v17 }
 0x634   : > { %1274 = vmatprep.mubr.bf16.mxu1 %v8907_v42  ;;  %1346 = vmatpush1.bf16.xpose.msra.mxu1 %v6900_v62 }
 0x635   : > { %1347 = vmatprep.subr.bf16.mxu1 %v6904_v15 }
 0x636   : > { %v1213_v6 = vpop.trf.xlu0 }
 0x63a   : > { %v1214_v29 = vpop.trf.xlu0 }
 0x63b   : > { %5064 = vmatmul.mubr.msk.bf16.gmra.mxu1 %vm665_vm0, %v1213_v6  ;;  %v1096_v6 = vpop.f32.mrf.mxu0 }
 0x63c   : > { %1284 = vmatprep.mubr.bf16.mxu1 %v8907_v42  ;;  %1348 = vmatpush1.bf16.xpose.msra.mxu1 %v6910_v27 }
 0x63d   : > { %1349 = vmatprep.subr.bf16.mxu1 %v6914_v32  ;;  %v6969_v8 = vpop.f32.mrf.mxu0 }
 0x63e   : > { %v1215_v23 = vpop.trf.xlu0 }
 0x643   : > { %5065 = vmatmul.mubr.msk.bf16.gmra.mxu1 %vm665_vm0, %v1214_v29 }
 0x644   : > { %1294 = vmatprep.mubr.bf16.mxu1 %v8907_v42  ;;  %1350 = vmatpush1.bf16.xpose.msra.mxu1 %v6920_v58 }
 0x645   : > { %1351 = vmatprep.subr.bf16.mxu1 %v6924_v20 }
 0x64b   : > { %5066 = vmatmul.mubr.msk.bf16.gmra.mxu1 %vm665_vm0, %v1215_v23 }
 0x64c   : > { %1352 = vmatpush1.bf16.xpose.msra.mxu1 %v6929_v63 }
 0x64d   : > { %1353 = vmatprep.subr.bf16.mxu1 %v6933_v56 }
 0x654   : > { %1354 = vmatpush1.bf16.xpose.msra.mxu1 %v6937_v16 }
 0x655   : > { %1355 = vmatprep.subr.bf16.mxu1 %v6941_v34 }
 0x65c   : > { %1356 = vmatpush1.bf16.xpose.msra.mxu1 %v6945_v13 }
 0x65d   : > { %1357 = vmatprep.subr.bf16.mxu1 %v6949_v10 }
 0x664   : > { %1358 = vmatpush1.bf16.xpose.msra.mxu1 %v6953_v39 }
 0x665   : > { %1359 = vmatprep.subr.bf16.mxu1 %v6957_v54 }
 0x66c   : > { %1360 = vmatpush1.bf16.xpose.msra.mxu1 %v6961_v24 }
 0x66d   : > { %1600 = vmatprep.subr.bf16.mxu1 %v6894_v46 }
 0x6f3   : > { %v1266_v52 = vpop.f32.mrf.mxu1 }
 0x6f4   : > { %v1267_v35 = vadd.f32 1e-06, %v1266_v52 }
 0x6f5   : > { %v1268_v2 = vpop.f32.mrf.mxu1 }
 0x6f6   : > { %v1269_v28 = vadd.f32 1e-06, %v1268_v2 }
 0x6f7   : > { %v1270_v26 = vpop.f32.mrf.mxu1 }
 0x6f8   : > { %v1271_v14 = vadd.f32 1e-06, %v1270_v26  ;;  %5666 = vrcp.f32 %v1269_v28  ;;  %v6971_v26 = vpop.f32.mrf.mxu0 }
 0x6f9   : > { %v1272_v38 = vpop.f32.mrf.mxu1 }
 0x6fa   : > { %5668 = vrcp.f32 %v1271_v14  ;;  %v1273_v25 = vadd.f32 1e-06, %v1272_v38 }
 0x6fb   : > { %5670 = vrcp.f32 %v1267_v35  ;;  %v1276_v17 = vpop.f32.mrf.mxu1 }
 0x6fc   : > { %5672 = vrcp.f32 %v1273_v25  ;;  %v1277_v59 = vadd.f32 1e-06, %v1276_v17 }
 0x6fd   : > { %v1278_v29 = vpop.f32.mrf.mxu1 }
 0x6fe   : > { %v1279_v23 = vadd.f32 1e-06, %v1278_v29  ;;  %v1190_v29 = vmul.f32 %v1084_v55, %v6661_v7 }
 0x6ff   : > { %v1280_v45 = vpop.f32.mrf.mxu1 }
 0x700   : > { %v1281_v5 = vadd.f32 1e-06, %v1280_v45  ;;  %5674 = vrcp.f32 %v1279_v23  ;;  %v1191_v23 = vmul.f32 %v1086_v21, %v6665_v31  ;;  %v1194_v21 = vmul.f32 %v1094_v33, %v6689_v40 }
 0x701   : > { %v1282_v52 = vpop.f32.mrf.mxu1 }
 0x702   : > { %5676 = vrcp.f32 %v1281_v5  ;;  %v1283_v2 = vadd.f32 1e-06, %v1282_v52 }
 0x703   : > { %5678 = vrcp.f32 %v1277_v59  ;;  %v1286_v28 = vpop.f32.mrf.mxu1  ;;  %v1188_v59 = vmul.f32 %v1080_v48, %v6667_v30 }
 0x704   : > { %5680 = vrcp.f32 %v1283_v2  ;;  %v1287_v17 = vadd.f32 1e-06, %v1286_v28  ;;  %v1104_v2 = vpop.f32.mrf.mxu0 }
 0x705   : > { %v1288_v35 = vpop.f32.mrf.mxu1  ;;  %v5667_v14 = vpop.eup %5666 }
 0x706   : > { %v1289_v38 = vadd.f32 1e-06, %v1288_v35  ;;  %v6979_v50 = vmul.f32 %v5667_v14, %v1189_v3  ;;  %v1106_v30 = vpop.f32.mrf.mxu0 }
 0x707   : > { %v5669_v25 = vpop.eup %5668  ;;  %v1290_v4 = vpop.f32.mrf.mxu1 }
 0x708   : > { %v5671_v45 = vpop.eup %5670  ;;  %v1291_v5 = vadd.f32 1e-06, %v1290_v4  ;;  %5682 = vrcp.f32 %v1289_v38  ;;  %v6977_v18 = vmul.f32 %v5669_v25, %v1190_v29  ;;  %v1193_v25 = vmul.f32 %v6967_v9, %v6692_v41 }
 0x709   : > { %v5673_v52 = vpop.eup %5672  ;;  %v1292_v22 = vpop.f32.mrf.mxu1  ;;  %v6983_v51 = vmul.f32 %v5671_v45, %v1188_v59  ;;  %v1195_v29 = vmul.f32 %v1096_v6, %v6694_v37 }
 0x70a   : > { %5684 = vrcp.f32 %v1291_v5  ;;  %v1293_v35 = vadd.f32 1e-06, %v1292_v22  ;;  %v6981_v7 = vmul.f32 %v5673_v52, %v1191_v23  ;;  %v1192_v23 = vmul.f32 %v6965_v47, %v6696_v43  ;;  %v1110_v5 = vpop.f32.mrf.mxu0 }
 0x70b   : > { %5686 = vrcp.f32 %v1287_v17  ;;  %v1296_v55 = vpop.f32.mrf.mxu1  ;;  %v6991_v48 = vpack.c.bf16 %v6977_v18, %v6983_v51 }
 0x70c   : > { %5688 = vrcp.f32 %v1293_v35  ;;  %v6987_v31 = vpack.c.bf16 %v6981_v7, %v6979_v50  ;;  %v1297_v28 = vadd.f32 1e-06, %v1296_v55  ;;  %v1112_v47 = vpop.f32.mrf.mxu0  ;;  %v1198_v55 = vmul.f32 %v1104_v2, %v6719_v60 }
 0x70d   : > { %v1298_v4 = vpop.f32.mrf.mxu1  ;;  %v5675_v22 = vpop.eup %5674 }
 0x70e   : > { %v1299_v3 = vadd.f32 1e-06, %v1298_v4  ;;  %1377 = vmatprep.mubr.bf16.mxu1 %v6987_v31  ;;  %1442 = vmatprep.mubr.bf16.mxu0 %v6987_v31  ;;  %v7006_v59 = vmul.f32 %v5675_v22, %v1193_v25  ;;  %v1197_v22 = vmul.f32 %v6971_v26, %v6722_v61 }
 0x70f   : > { %v5677_v57 = vpop.eup %5676  ;;  %v1300_v14 = vpop.f32.mrf.mxu1  ;;  %1378 = vmatmul.mubr.bf16.vlgmr.msra.gmra.mxu1 %v6991_v48 }
 0x710   : > { %v5679_v38 = vpop.eup %5678  ;;  %v1301_v17 = vadd.f32 1e-06, %v1300_v14  ;;  %1601 = vmatpush1.bf16.msra.mxu1 %v6900_v62  ;;  %5690 = vrcp.f32 %v1299_v3  ;;  %v7003_v33 = vmul.f32 %v5677_v57, %v1194_v21  ;;  %v1199_v3 = vmul.f32 %v1106_v30, %v6724_v49 }
 0x711   : > { %v5681_v45 = vpop.eup %5680  ;;  %v1302_v40 = vpop.f32.mrf.mxu1  ;;  %1602 = vmatprep.subr.bf16.mxu1 %v6904_v15  ;;  %v7010_v37 = vmul.f32 %v5679_v38, %v1192_v23  ;;  %v1196_v21 = vmul.f32 %v6969_v8, %v6726_v44  ;;  %v1200_v23 = vmul.f32 %v1110_v5, %v6756_v11  ;;  %v8935_v11 = vld [vmem:[#allocation22_spill] sm:$0xff] }
 0x712   : > { %5692 = vrcp.f32 %v1301_v17  ;;  %v1303_v52 = vadd.f32 1e-06, %v1302_v40  ;;  %v7008_v41 = vmul.f32 %v5681_v45, %v1195_v29  ;;  %v1201_v29 = vmul.f32 %v1112_v47, %v6752_v36 }
 0x713   : > { %5694 = vrcp.f32 %v1297_v28  ;;  %v7019_v9 = vpack.c.bf16 %v7003_v33, %v7010_v37  ;;  %v1114_v28 = vpop.f32.mrf.mxu0 }
 0x714   : > { %5696 = vrcp.f32 %v1303_v52  ;;  %v7014_v43 = vpack.c.bf16 %v7008_v41, %v7006_v59  ;;  %1603 = vmatpush1.bf16.msra.mxu1 %v6910_v27  ;;  %v1202_v30 = vmul.f32 %v1114_v28, %v6749_v1 }
 0x715   : > { %1604 = vmatprep.subr.bf16.mxu1 %v6914_v32  ;;  %v5683_v6 = vpop.eup %5682  ;;  %v1116_v49 = vpop.f32.mrf.mxu0 }
 0x716   : > { %1385 = vmatprep.mubr.bf16.mxu1 %v7014_v43  ;;  %v7034_v60 = vmul.f32 %v5683_v6, %v1197_v22  ;;  %v1203_v17 = vmul.f32 %v1116_v49, %v6754_v19 }
 0x717   : > { %v5685_v35 = vpop.eup %5684  ;;  %1386 = vmatmul.mubr.bf16.gmra.mxu1 %v7019_v9 }
 0x718   : > { %v5687_v4 = vpop.eup %5686  ;;  %1605 = vmatpush1.bf16.msra.mxu1 %v6920_v58  ;;  %v7031_v14 = vmul.f32 %v5685_v35, %v1198_v55 }
 0x719   : > { %v5689_v57 = vpop.eup %5688  ;;  %1606 = vmatprep.subr.bf16.mxu1 %v6924_v20  ;;  %v7038_v38 = vmul.f32 %v5687_v4, %v1196_v21 }
 0x71a   : > { %v7036_v2 = vmul.f32 %v5689_v57, %v1199_v3 }
 0x71b   : > { %v7047_v44 = vpack.c.bf16 %v7031_v14, %v7038_v38 }
 0x71c   : > { %v7042_v61 = vpack.c.bf16 %v7036_v2, %v7034_v60  ;;  %1607 = vmatpush1.bf16.msra.mxu1 %v6929_v63 }
 0x71d   : > { %1608 = vmatprep.subr.bf16.mxu1 %v6933_v56  ;;  %v5691_v8 = vpop.eup %5690 }
 0x71e   : > { %1393 = vmatprep.mubr.bf16.mxu1 %v7042_v61  ;;  %v7060_v52 = vmul.f32 %v5691_v8, %v1201_v29 }
 0x71f   : > { %v5693_v26 = vpop.eup %5692  ;;  %1394 = vmatmul.mubr.bf16.gmra.mxu1 %v7047_v44 }
 0x720   : > { %v5695_v25 = vpop.eup %5694  ;;  %1609 = vmatpush1.bf16.msra.mxu1 %v6937_v16  ;;  %v7057_v40 = vmul.f32 %v5693_v26, %v1202_v30  ;;  %8932 = vst [vmem:[#allocation20_spill] sm:$0xff] %v7060_v52 }
 0x721   : > { %v5697_v45 = vpop.eup %5696  ;;  %1610 = vmatprep.subr.bf16.mxu1 %v6941_v34  ;;  %v7064_v1 = vmul.f32 %v5695_v25, %v1200_v23 }
 0x722   : > { %8931 = vst [vmem:[#allocation18_spill] sm:$0xff] %v7057_v40  ;;  %v7062_v6 = vmul.f32 %v5697_v45, %v1203_v17 }
 0x723   : > { %8934 = vst [vmem:[#allocation19_spill] sm:$0xff] %v7064_v1  ;;  %v7073_v19 = vpack.c.bf16 %v7057_v40, %v7064_v1 }
 0x724   : > { %8933 = vst [vmem:[#allocation17_spill] sm:$0xff] %v7062_v6  ;;  %v7068_v36 = vpack.c.bf16 %v7062_v6, %v7060_v52  ;;  %1611 = vmatpush1.bf16.msra.mxu1 %v6945_v13 }
 0x725   : > { %1612 = vmatprep.subr.bf16.mxu1 %v6949_v10 }
 0x726   : > { %1401 = vmatprep.mubr.bf16.mxu1 %v7068_v36  ;;  %1418 = vmatprep.subr.bf16.mxu0 %v7068_v36 }
 0x727   : > { %1402 = vmatmul.mubr.bf16.gmra.mxu1 %v7073_v19  ;;  %1419 = vmatpush1.bf16.xpose.msra.mxu0 %v7073_v19 }
 0x728   : > { %1420 = vmatprep.subr.bf16.mxu0 %v7042_v61  ;;  %1613 = vmatpush1.bf16.msra.mxu1 %v6953_v39 }
 0x729   : > { %1614 = vmatprep.subr.bf16.mxu1 %v6957_v54  ;;  %1632 = vmatprep.mubr.bf16.mxu1 %v8907_v42 }
 0x72c   : > { %1615 = vmatpush1.bf16.msra.mxu1 %v6961_v24 }
 0x72d   : > { %1899 = vmatprep.subr.bf16.mxu1 %v6894_v46 }
 0x72f   : > { %1421 = vmatpush1.bf16.xpose.msra.mxu0 %v7047_v44 }
 0x730   : > { %1422 = vmatprep.subr.bf16.mxu0 %v7014_v43 }
 0x737   : > { %1423 = vmatpush1.bf16.xpose.msra.mxu0 %v7019_v9 }
 0x738   : > { %1424 = vmatprep.subr.bf16.mxu0 %v6987_v31 }
 0x73f   : > { %1425 = vmatpush1.bf16.xpose.msra.mxu0 %v6991_v48 }
 0x740   : > { %5303 = vmatprep.subr.bf16.mxu0 %v6856_v53 }
 0x746   : > { %1443 = vmatmul.mubr.bf16.vlgmr.msra.gmra.mxu0 %v6991_v48 }
 0x747   : > { %1450 = vmatprep.mubr.bf16.mxu0 %v7014_v43  ;;  %5304 = vmatpush3.bf16.msra.mxu0 %v6856_v53 }
 0x748   : > { %5305 = vmatprep.subr.bf16.mxu0 %v6867_v12 }
 0x74b   : > { %5306 = vmatpush3.bf16.msra.mxu0 %v6867_v12 }
 0x74c   : > { %5307 = vmatprep.subr.bf16.mxu0 %v6862_v0 }
 0x74e   : > { %1451 = vmatmul.mubr.bf16.gmra.mxu0 %v7019_v9 }
 0x74f   : > { %1458 = vmatprep.mubr.bf16.mxu0 %v7042_v61  ;;  %5308 = vmatpush3.bf16.msra.mxu0 %v6862_v0 }
 0x750   : > { %5309 = vmatprep.subr.bf16.mxu0 %v8935_v11 }
 0x753   : > { %5310 = vmatpush3.bf16.msra.mxu0 %v8935_v11 }
 0x756   : > { %1459 = vmatmul.mubr.bf16.gmra.mxu0 %v7047_v44 }
 0x757   : > { %1466 = vmatprep.mubr.bf16.mxu0 %v7068_v36 }
 0x75e   : > { %1467 = vmatmul.mubr.bf16.gmra.mxu0 %v7073_v19 }
 0x7cf   : > { %v7106_v53 = vpop.f32.mrf.mxu1 }
 0x7d1   : > { %v1381_v12 = vpop.f32.mrf.mxu1 }
 0x7d3   : > { %v7108_v5 = vpop.f32.mrf.mxu1 }
 0x7d5   : > { %v1384_v47 = vpop.f32.mrf.mxu1 }
 0x7d7   : > { %v7110_v35 = vpop.f32.mrf.mxu1 }
 0x7d9   : > { %v1389_v55 = vpop.f32.mrf.mxu1 }
 0x7db   : > { %v7112_v0 = vpop.f32.mrf.mxu1 }
 0x7dd   : > { %v1392_v4 = vpop.f32.mrf.mxu1 }
 0x7df   : > { %v7114_v22 = vpop.f32.mrf.mxu1 }
 0x7e1   : > { %v1397_v3 = vpop.f32.mrf.mxu1 }
 0x7e3   : > { %v7116_v57 = vpop.f32.mrf.mxu1 }
 0x7e5   : > { %v1400_v21 = vpop.f32.mrf.mxu1 }
 0x7e7   : > { %v7118_v28 = vpop.f32.mrf.mxu1 }
 0x7e9   : > { %v1405_v49 = vpop.f32.mrf.mxu1 }
 0x7eb   : > { %v7120_v8 = vpop.f32.mrf.mxu1 }
 0x7ed   : > { %v1408_v26 = vpop.f32.mrf.mxu1 }
 0x806   : > { %v1444_v30 = vpop.f32.mrf.mxu0 }
 0x808   : > { %v1446_v25 = vpop.f32.mrf.mxu0 }
 0x80a   : > { %v1447_v29 = vpop.f32.mrf.mxu0 }
 0x80b   : > { %v1475_v17 = vpack.c.bf16 %v1447_v29, %v1444_v30 }
 0x80c   : > { %v1449_v45 = vpop.f32.mrf.mxu0 }
 0x80d   : > { %1487 = vxpose.xlu1.c.b16.start [1/4] (short) (narrow) %v1475_v17, 64 }
 0x80e   : > { %v1452_v23 = vpop.f32.mrf.mxu0 }
 0x810   : > { %v1454_v11 = vpop.f32.mrf.mxu0 }
 0x812   : > { %v1455_v12 = vpop.f32.mrf.mxu0 }
 0x813   : > { %v1476_v47 = vpack.c.bf16 %v1455_v12, %v1452_v23 }
 0x814   : > { %v1457_v55 = vpop.f32.mrf.mxu0 }
 0x815   : > { %1488 = vxpose.xlu1.c.b16.cont [2/4] (short) (narrow) %v1476_v47, 64 }
 0x816   : > { %v1460_v4 = vpop.f32.mrf.mxu0 }
 0x818   : > { %v1462_v3 = vpop.f32.mrf.mxu0 }
 0x81a   : > { %v1463_v21 = vpop.f32.mrf.mxu0 }
 0x81b   : > { %v1477_v1 = vpack.c.bf16 %v1463_v21, %v1460_v4 }
 0x81c   : > { %v1465_v49 = vpop.f32.mrf.mxu0 }
 0x81d   : > { %1489 = vxpose.xlu1.c.b16.cont [3/4] (short) (narrow) %v1477_v1, 64 }
 0x81e   : > { %v1468_v6 = vpop.f32.mrf.mxu0 }
 0x820   : > { %v1470_v26 = vpop.f32.mrf.mxu0 }
 0x822   : > { %v1471_v52 = vpop.f32.mrf.mxu0 }
 0x823   : > { %v1478_v25 = vpack.c.bf16 %v1471_v52, %v1468_v6 }
 0x824   : > { %v1473_v40 = vpop.f32.mrf.mxu0 }
 0x825   : > { %1490 = vxpose.xlu1.c.b16.end [4/4] (short) (narrow) %v1478_v25, 64 }
 0x87b   : > { %v1495_v30 = vpop.trf.xlu1 }
 0x87c   : > { %5311 = vmatprep.mubr.msk.bf16.mxu0 %vm665_vm0, %v1495_v30 }
 0x87f   : > { %v1496_v29 = vpop.trf.xlu1 }
 0x880   : > { %5312 = vmatmul.mubr.msk.bf16.vlgmr.msra.gmra.mxu0 %vm665_vm0, %v1496_v29 }
 0x883   : > { %v1497_v17 = vpop.trf.xlu1 }
 0x884   : > { %5315 = vmatprep.mubr.msk.bf16.mxu0 %vm665_vm0, %v1497_v17  ;;  %v8936_v17 = vld [vmem:[#allocation27_spill] sm:$0xff] }
 0x887   : > { %v1498_v45 = vpop.trf.xlu1 }
 0x888   : > { %5316 = vmatmul.mubr.msk.bf16.gmra.mxu0 %vm665_vm0, %v1498_v45  ;;  %v1479_v45 = vmul.f32 %v7106_v53, %v8936_v17  ;;  %v8939_v53 = vld [vmem:[#allocation24_spill] sm:$0xff]  ;;  %v8942_v17 = vld [vmem:[#allocation14_spill] sm:$0xff] }
 0x940   : > { %v5313_v23 = vpop.f32.mrf.mxu0 }
 0x941   : > { %v1558_v52 = vadd.f32 1e-06, %v5313_v23  ;;  %v8937_v23 = vld [vmem:[#allocation21_spill] sm:$0xff] }
 0x942   : > { %v1549_v1 = vpop.f32.mrf.mxu0 }
 0x943   : > { %v1550_v11 = vadd.f32 1e-06, %v1549_v1  ;;  %v1480_v1 = vmul.f32 %v7108_v5, %v8937_v23  ;;  %v8940_v5 = vld [vmem:[#allocation25_spill] sm:$0xff] }
 0x944   : > { %v5314_v12 = vpop.f32.mrf.mxu0 }
 0x945   : > { %5698 = vrcp.f32 %v1550_v11  ;;  %v1561_v6 = vadd.f32 1e-06, %v5314_v12 }
 0x946   : > { %v1552_v47 = vpop.f32.mrf.mxu0 }
 0x947   : > { %v1553_v40 = vadd.f32 1e-06, %v1552_v47 }
 0x948   : > { %v5317_v55 = vpop.f32.mrf.mxu0 }
 0x949   : > { %5700 = vrcp.f32 %v1553_v40  ;;  %v1574_v4 = vadd.f32 1e-06, %v5317_v55 }
 0x94a   : > { %v1565_v3 = vpop.f32.mrf.mxu0  ;;  %5702 = vrcp.f32 %v1558_v52 }
 0x94b   : > { %v1566_v21 = vadd.f32 1e-06, %v1565_v3  ;;  %5704 = vrcp.f32 %v1561_v6  ;;  %v8938_v3 = vld [vmem:[#allocation23_spill] sm:$0xff] }
 0x94c   : > { %v5318_v49 = vpop.f32.mrf.mxu0  ;;  %5706 = vrcp.f32 %v1574_v4 }
 0x94d   : > { %v1577_v26 = vadd.f32 1e-06, %v5318_v49  ;;  %5708 = vrcp.f32 %v1566_v21  ;;  %v1482_v21 = vmul.f32 %v7112_v0, %v8938_v3  ;;  %v1485_v49 = vmul.f32 %v7118_v28, %v8939_v53  ;;  %v8943_v0 = vld [vmem:[#allocation15_spill] sm:$0xff] }
 0x94e   : > { %v1568_v25 = vpop.f32.mrf.mxu0  ;;  %v1484_v28 = vmul.f32 %v7116_v57, %v8943_v0 }
 0x94f   : > { %5710 = vrcp.f32 %v1577_v26  ;;  %v1569_v30 = vadd.f32 1e-06, %v1568_v25  ;;  %v1486_v26 = vmul.f32 %v7120_v8, %v8940_v5 }
 0x951   : > { %5712 = vrcp.f32 %v1569_v30  ;;  %v8941_v30 = vld [vmem:[#allocation26_spill] sm:$0xff] }
 0x952   : > { %v5699_v29 = vpop.eup %5698 }
 0x953   : > { %v7130_v12 = vmul.f32 %v5699_v29, %v1479_v45  ;;  %v1481_v29 = vmul.f32 %v7110_v35, %v8941_v30  ;;  %v1483_v45 = vmul.f32 %v7114_v22, %v8942_v17 }
 0x956   : > { %v5701_v11 = vpop.eup %5700 }
 0x957   : > { %v7132_v47 = vmul.f32 %v5701_v11, %v1480_v1  ;;  %v5703_v52 = vpop.eup %5702 }
 0x958   : > { %v5705_v40 = vpop.eup %5704  ;;  %v7161_v35 = vmul.f32 %v5703_v52, %v1481_v29 }
 0x959   : > { %v7136_v6 = vpack.c.bf16 %v7132_v47, %v7130_v12  ;;  %v5707_v55 = vpop.eup %5706  ;;  %v7154_v23 = vmul.f32 %v5705_v40, %v1482_v21 }
 0x95a   : > { %v5709_v4 = vpop.eup %5708  ;;  %v7156_v8 = vmul.f32 %v5707_v55, %v1485_v49  ;;  %8945 = vst [vmem:[#allocation22_spill] sm:$0xff] %v7161_v35 }
 0x95b   : > { %1633 = vmatmul.mubr.bf16.vlgmr.msra.gmra.mxu1 %v7136_v6  ;;  %5327 = vmatprep.mubr.bf16.mxu0 %v7136_v6  ;;  %v7163_v3 = vmul.f32 %v5709_v4, %v1483_v45  ;;  %v7173_v57 = vpack.c.bf16 %v7154_v23, %v7161_v35 }
 0x95c   : > { %v5711_v25 = vpop.eup %5710  ;;  %1642 = vmatprep.mubr.bf16.mxu1 %v8907_v42  ;;  %1900 = vmatpush1.bf16.xpose.msra.mxu1 %v6900_v62 }
 0x95d   : > { %v7158_v1 = vmul.f32 %v5711_v25, %v1486_v26  ;;  %1901 = vmatprep.subr.bf16.mxu1 %v6904_v15  ;;  %8946 = vst [vmem:[#allocation27_spill] sm:$0xff] %v7163_v3 }
 0x95e   : > { %v5713_v11 = vpop.eup %5712 }
 0x95f   : > { %8944 = vst [vmem:[#allocation16_spill] sm:$0xff] %v7158_v1  ;;  %v7167_v22 = vpack.c.bf16 %v7158_v1, %v7156_v8  ;;  %v7169_v53 = vmul.f32 %v5713_v11, %v1484_v28 }
 0x961   : > { %8947 = vst [vmem:[#allocation21_spill] sm:$0xff] %v7169_v53  ;;  %5319 = vmatprep.subr.bf16.mxu0 %v7167_v22  ;;  %v7178_v40 = vpack.c.bf16 %v7169_v53, %v7163_v3 }
 0x962   : > { %5320 = vmatpush3.bf16.xpose.msra.mxu0 %v7167_v22 }
 0x963   : > { %1643 = vmatmul.mubr.bf16.gmra.mxu1 %v7173_v57  ;;  %5321 = vmatprep.subr.bf16.mxu0 %v7178_v40 }
 0x964   : > { %1652 = vmatprep.mubr.bf16.mxu1 %v8907_v42  ;;  %1902 = vmatpush1.bf16.xpose.msra.mxu1 %v6910_v27 }
 0x965   : > { %1903 = vmatprep.subr.bf16.mxu1 %v6914_v32 }
 0x96a   : > { %5322 = vmatpush3.bf16.xpose.msra.mxu0 %v7178_v40 }
 0x96b   : > { %1653 = vmatmul.mubr.bf16.gmra.mxu1 %v7178_v40  ;;  %5323 = vmatprep.subr.bf16.mxu0 %v7173_v57 }
 0x96c   : > { %1662 = vmatprep.mubr.bf16.mxu1 %v8907_v42  ;;  %1904 = vmatpush1.bf16.xpose.msra.mxu1 %v6920_v58 }
 0x96d   : > { %1905 = vmatprep.subr.bf16.mxu1 %v6924_v20 }
 0x972   : > { %5324 = vmatpush3.bf16.xpose.msra.mxu0 %v7173_v57 }
 0x973   : > { %1663 = vmatmul.mubr.bf16.gmra.mxu1 %v7167_v22  ;;  %5325 = vmatprep.subr.bf16.mxu0 %v7136_v6 }
 0x974   : > { %1906 = vmatpush1.bf16.xpose.msra.mxu1 %v6929_v63 }
 0x975   : > { %1907 = vmatprep.subr.bf16.mxu1 %v6933_v56 }
 0x97a   : > { %5326 = vmatpush3.bf16.xpose.msra.mxu0 %v7136_v6 }
 0x97b   : > { %1794 = vmatprep.subr.bf16.mxu0 %v7068_v36 }
 0x97c   : > { %1908 = vmatpush1.bf16.xpose.msra.mxu1 %v6937_v16 }
 0x97d   : > { %1909 = vmatprep.subr.bf16.mxu1 %v6941_v34 }
 0x981   : > { %5328 = vmatmul.mubr.bf16.vlgmr.msra.gmra.mxu0 %v7173_v57 }
 0x982   : > { %5331 = vmatprep.mubr.bf16.mxu0 %v7178_v40  ;;  %1795 = vmatpush1.bf16.msra.mxu0 %v7073_v19 }
 0x983   : > { %1796 = vmatprep.subr.bf16.mxu0 %v7042_v61 }
 0x984   : > { %1910 = vmatpush1.bf16.xpose.msra.mxu1 %v6945_v13 }
 0x985   : > { %1911 = vmatprep.subr.bf16.mxu1 %v6949_v10 }
 0x986   : > { %1797 = vmatpush1.bf16.msra.mxu0 %v7047_v44 }
 0x987   : > { %1798 = vmatprep.subr.bf16.mxu0 %v7014_v43 }
 0x989   : > { %5332 = vmatmul.mubr.bf16.gmra.mxu0 %v7167_v22 }
 0x98a   : > { %1799 = vmatpush1.bf16.msra.mxu0 %v7019_v9  ;;  %1818 = vmatprep.mubr.bf16.mxu0 %v8907_v42 }
 0x98b   : > { %1800 = vmatprep.subr.bf16.mxu0 %v6987_v31 }
 0x98c   : > { %1912 = vmatpush1.bf16.xpose.msra.mxu1 %v6953_v39 }
 0x98d   : > { %1913 = vmatprep.subr.bf16.mxu1 %v6957_v54 }
 0x98e   : > { %1801 = vmatpush1.bf16.msra.mxu0 %v6991_v48 }
 0x994   : > { %1914 = vmatpush1.bf16.xpose.msra.mxu1 %v6961_v24 }
 0x995   : > { %2154 = vmatprep.subr.bf16.mxu1 %v6894_v46 }
 0xa1b   : > { %v1634_v25 = vpop.f32.mrf.mxu1 }
 0xa1d   : > { %v1636_v30 = vpop.f32.mrf.mxu1 }
 0xa1e   : > { %v1743_v53 = vmul.f32 %v1636_v30, %v6979_v50 }
 0xa1f   : > { %v1638_v29 = vpop.f32.mrf.mxu1 }
 0xa21   : > { %v1640_v17 = vpop.f32.mrf.mxu1 }
 0xa23   : > { %v7225_v45 = vpop.f32.mrf.mxu1 }
 0xa25   : > { %v7227_v28 = vpop.f32.mrf.mxu1 }
 0xa41   : > { %v5329_v61 = vpop.f32.mrf.mxu0 }
 0xa43   : > { %v1707_v43 = vpop.f32.mrf.mxu0 }
 0xa45   : > { %v5330_v44 = vpop.f32.mrf.mxu0 }
 0xa46   : > { %v1739_v55 = vpack.c.bf16 %v5330_v44, %v5329_v61 }
 0xa47   : > { %v1710_v36 = vpop.f32.mrf.mxu0 }
 0xa48   : > { %v1738_v19 = vpack.c.bf16 %v1710_v36, %v1707_v43 }
 0xa49   : > { %v5333_v9 = vpop.f32.mrf.mxu0 }
 0xa4a   : > { %1758 = vxpose.xlu0.c.b16.start [1/4] (short) (narrow) %v1738_v19, 64  ;;  %v1648_v19 = vpop.f32.mrf.mxu1 }
 0xa4b   : > { %v1723_v52 = vpop.f32.mrf.mxu0 }
 0xa4d   : > { %v5334_v31 = vpop.f32.mrf.mxu0 }
 0xa4e   : > { %1759 = vxpose.xlu0.c.b16.cont [2/4] (short) (narrow) %v1739_v55, 64  ;;  %v1741_v49 = vpack.c.bf16 %v5334_v31, %v5333_v9  ;;  %v1650_v31 = vpop.f32.mrf.mxu1 }
 0xa4f   : > { %v1726_v4 = vpop.f32.mrf.mxu0 }
 0xa50   : > { %v1740_v21 = vpack.c.bf16 %v1726_v4, %v1723_v52 }
 0xa52   : > { %1760 = vxpose.xlu0.c.b16.cont [3/4] (short) (narrow) %v1740_v21, 64 }
 0xa56   : > { %1761 = vxpose.xlu0.c.b16.end [4/4] (short) (narrow) %v1741_v49, 64 }
 0xaac   : > { %v1766_v48 = vpop.trf.xlu0 }
 0xaad   : > { %5071 = vmatmul.mubr.msk.bf16.vlgmr.msra.gmra.mxu0 %vm665_vm0, %v1766_v48 }
 0xaae   : > { %1828 = vmatprep.mubr.bf16.mxu0 %v8907_v42 }
 0xab0   : > { %v1767_v46 = vpop.trf.xlu0 }
 0xab4   : > { %v1768_v5 = vpop.trf.xlu0 }
 0xab5   : > { %5072 = vmatmul.mubr.msk.bf16.gmra.mxu0 %vm665_vm0, %v1767_v46 }
 0xab6   : > { %1838 = vmatprep.mubr.bf16.mxu0 %v8907_v42 }
 0xab8   : > { %v1769_v26 = vpop.trf.xlu0 }
 0xabd   : > { %5073 = vmatmul.mubr.msk.bf16.gmra.mxu0 %vm665_vm0, %v1768_v5  ;;  %v7229_v5 = vpop.f32.mrf.mxu1 }
 0xabe   : > { %1848 = vmatprep.mubr.bf16.mxu0 %v8907_v42 }
 0xac5   : > { %5074 = vmatmul.mubr.msk.bf16.gmra.mxu0 %vm665_vm0, %v1769_v26 }
 0xb6d   : > { %v1820_v0 = vpop.f32.mrf.mxu0 }
 0xb6e   : > { %v1821_v43 = vadd.f32 1e-06, %v1820_v0 }
 0xb6f   : > { %v1822_v11 = vpop.f32.mrf.mxu0 }
 0xb70   : > { %v1823_v61 = vadd.f32 1e-06, %v1822_v11 }
 0xb71   : > { %v1824_v44 = vpop.f32.mrf.mxu0 }
 0xb72   : > { %v1825_v36 = vadd.f32 1e-06, %v1824_v44  ;;  %5714 = vrcp.f32 %v1823_v61  ;;  %v7231_v61 = vpop.f32.mrf.mxu1 }
 0xb73   : > { %v1826_v9 = vpop.f32.mrf.mxu0 }
 0xb74   : > { %5716 = vrcp.f32 %v1825_v36  ;;  %v1827_v52 = vadd.f32 1e-06, %v1826_v9 }
 0xb75   : > { %5718 = vrcp.f32 %v1821_v43  ;;  %v1830_v55 = vpop.f32.mrf.mxu0 }
 0xb76   : > { %5720 = vrcp.f32 %v1827_v52  ;;  %v1831_v49 = vadd.f32 1e-06, %v1830_v55  ;;  %v1744_v52 = vmul.f32 %v1638_v29, %v6977_v18 }
 0xb77   : > { %v1832_v4 = vpop.f32.mrf.mxu0 }
 0xb78   : > { %v1833_v21 = vadd.f32 1e-06, %v1832_v4 }
 0xb79   : > { %v1834_v48 = vpop.f32.mrf.mxu0 }
 0xb7a   : > { %v1835_v46 = vadd.f32 1e-06, %v1834_v48  ;;  %5722 = vrcp.f32 %v1833_v21  ;;  %v1745_v21 = vmul.f32 %v1640_v17, %v6981_v7 }
 0xb7b   : > { %v1836_v26 = vpop.f32.mrf.mxu0 }
 0xb7c   : > { %5724 = vrcp.f32 %v1835_v46  ;;  %v1837_v0 = vadd.f32 1e-06, %v1836_v26 }
 0xb7d   : > { %5726 = vrcp.f32 %v1831_v49  ;;  %v1840_v11 = vpop.f32.mrf.mxu0  ;;  %v1742_v49 = vmul.f32 %v1634_v25, %v6983_v51 }
 0xb7e   : > { %5728 = vrcp.f32 %v1837_v0  ;;  %v1841_v55 = vadd.f32 1e-06, %v1840_v11  ;;  %v1658_v0 = vpop.f32.mrf.mxu1  ;;  %v1748_v11 = vmul.f32 %v1648_v19, %v7003_v33 }
 0xb7f   : > { %v1842_v43 = vpop.f32.mrf.mxu0  ;;  %v5715_v44 = vpop.eup %5714 }
 0xb80   : > { %v1843_v36 = vadd.f32 1e-06, %v1842_v43  ;;  %v7239_v1 = vmul.f32 %v5715_v44, %v1743_v53  ;;  %v1660_v51 = vpop.f32.mrf.mxu1 }
 0xb81   : > { %v5717_v9 = vpop.eup %5716  ;;  %v1844_v4 = vpop.f32.mrf.mxu0 }
 0xb82   : > { %v5719_v48 = vpop.eup %5718  ;;  %v1845_v46 = vadd.f32 1e-06, %v1844_v4  ;;  %5730 = vrcp.f32 %v1843_v36  ;;  %v7237_v35 = vmul.f32 %v5717_v9, %v1744_v52  ;;  %v1747_v52 = vmul.f32 %v7227_v28, %v7006_v59 }
 0xb83   : > { %v5721_v26 = vpop.eup %5720  ;;  %v1846_v3 = vpop.f32.mrf.mxu0  ;;  %v7243_v50 = vmul.f32 %v5719_v48, %v1742_v49 }
 0xb84   : > { %5732 = vrcp.f32 %v1845_v46  ;;  %v1847_v43 = vadd.f32 1e-06, %v1846_v3  ;;  %v7241_v18 = vmul.f32 %v5721_v26, %v1745_v21  ;;  %v1746_v21 = vmul.f32 %v7225_v45, %v7010_v37  ;;  %v1664_v46 = vpop.f32.mrf.mxu1 }
 0xb85   : > { %5734 = vrcp.f32 %v1841_v55  ;;  %v1850_v29 = vpop.f32.mrf.mxu0  ;;  %v7251_v30 = vpack.c.bf16 %v7237_v35, %v7243_v50  ;;  %v1749_v55 = vmul.f32 %v1650_v31, %v7008_v41  ;;  %v1752_v31 = vmul.f32 %v1658_v0, %v7031_v14 }
 0xb86   : > { %5736 = vrcp.f32 %v1847_v43  ;;  %v7247_v7 = vpack.c.bf16 %v7241_v18, %v7239_v1  ;;  %v1851_v44 = vadd.f32 1e-06, %v1850_v29  ;;  %v1666_v37 = vpop.f32.mrf.mxu1  ;;  %v1751_v43 = vmul.f32 %v7231_v61, %v7034_v60 }
 0xb87   : > { %v1852_v25 = vpop.f32.mrf.mxu0  ;;  %v5723_v3 = vpop.eup %5722  ;;  %v1753_v29 = vmul.f32 %v1660_v51, %v7036_v2  ;;  %v8949_v51 = vld [vmem:[#allocation20_spill] sm:$0xff] }
 0xb88   : > { %v1853_v53 = vadd.f32 1e-06, %v1852_v25  ;;  %1931 = vmatprep.mubr.bf16.mxu1 %v7247_v7  ;;  %1996 = vmatprep.mubr.bf16.mxu0 %v7247_v7  ;;  %v7266_v49 = vmul.f32 %v5723_v3, %v1747_v52  ;;  %v1750_v25 = vmul.f32 %v7229_v5, %v7038_v38  ;;  %v1668_v3 = vpop.f32.mrf.mxu1  ;;  %v8948_v5 = vld [vmem:[#allocation18_spill] sm:$0xff] }
 0xb89   : > { %v5725_v17 = vpop.eup %5724  ;;  %v1854_v36 = vpop.f32.mrf.mxu0  ;;  %1932 = vmatmul.mubr.bf16.vlgmr.msra.gmra.mxu1 %v7251_v30  ;;  %v1756_v61 = vmul.f32 %v1668_v3, %v8948_v5 }
 0xb8a   : > { %v5727_v9 = vpop.eup %5726  ;;  %v1855_v4 = vadd.f32 1e-06, %v1854_v36  ;;  %2155 = vmatpush1.bf16.msra.mxu1 %v6900_v62  ;;  %5738 = vrcp.f32 %v1853_v53  ;;  %v7264_v19 = vmul.f32 %v5725_v17, %v1748_v11  ;;  %v1670_v60 = vpop.f32.mrf.mxu1  ;;  %v1755_v11 = vmul.f32 %v1666_v37, %v8949_v51 }
 0xb8b   : > { %v5729_v48 = vpop.eup %5728  ;;  %v1856_v33 = vpop.f32.mrf.mxu0  ;;  %2156 = vmatprep.subr.bf16.mxu1 %v6904_v15  ;;  %v7270_v41 = vmul.f32 %v5727_v9, %v1746_v21  ;;  %v8951_v9 = vld [vmem:[#allocation19_spill] sm:$0xff] }
 0xb8c   : > { %5740 = vrcp.f32 %v1855_v4  ;;  %v1857_v26 = vadd.f32 1e-06, %v1856_v33  ;;  %v7268_v59 = vmul.f32 %v5729_v48, %v1749_v55  ;;  %v1754_v52 = vmul.f32 %v1664_v46, %v8951_v9 }
 0xb8d   : > { %5742 = vrcp.f32 %v1851_v44  ;;  %v7280_v15 = vpack.c.bf16 %v7264_v19, %v7270_v41  ;;  %v8950_v44 = vld [vmem:[#allocation17_spill] sm:$0xff] }
 0xb8e   : > { %5744 = vrcp.f32 %v1857_v26  ;;  %2157 = vmatpush1.bf16.msra.mxu1 %v6910_v27  ;;  %v7275_v62 = vpack.c.bf16 %v7268_v59, %v7266_v49  ;;  %v1757_v36 = vmul.f32 %v1670_v60, %v8950_v44 }
 0xb8f   : > { %2158 = vmatprep.subr.bf16.mxu1 %v6914_v32  ;;  %v5731_v45 = vpop.eup %5730 }
 0xb90   : > { %1939 = vmatprep.mubr.bf16.mxu1 %v7275_v62  ;;  %v7294_v14 = vmul.f32 %v5731_v45, %v1751_v43 }
 0xb91   : > { %v5733_v28 = vpop.eup %5732  ;;  %1940 = vmatmul.mubr.bf16.gmra.mxu1 %v7280_v15 }
 0xb92   : > { %v5735_v27 = vpop.eup %5734  ;;  %2159 = vmatpush1.bf16.msra.mxu1 %v6920_v58  ;;  %v7292_v53 = vmul.f32 %v5733_v28, %v1752_v31 }
 0xb93   : > { %v5737_v32 = vpop.eup %5736  ;;  %2160 = vmatprep.subr.bf16.mxu1 %v6924_v20  ;;  %v7298_v17 = vmul.f32 %v5735_v27, %v1750_v25 }
 0xb94   : > { %v7296_v0 = vmul.f32 %v5737_v32, %v1753_v29 }
 0xb95   : > { %v7308_v20 = vpack.c.bf16 %v7292_v53, %v7298_v17 }
 0xb96   : > { %2161 = vmatpush1.bf16.msra.mxu1 %v6929_v63  ;;  %v7303_v58 = vpack.c.bf16 %v7296_v0, %v7294_v14 }
 0xb97   : > { %2162 = vmatprep.subr.bf16.mxu1 %v6933_v56  ;;  %v5739_v2 = vpop.eup %5738 }
 0xb98   : > { %1947 = vmatprep.mubr.bf16.mxu1 %v7303_v58  ;;  %v7320_v4 = vmul.f32 %v5739_v2, %v1755_v11 }
 0xb99   : > { %v5741_v38 = vpop.eup %5740  ;;  %1948 = vmatmul.mubr.bf16.gmra.mxu1 %v7308_v20 }
 0xb9a   : > { %v5743_v63 = vpop.eup %5742  ;;  %2163 = vmatpush1.bf16.msra.mxu1 %v6937_v16  ;;  %v7318_v55 = vmul.f32 %v5741_v38, %v1756_v61 }
 0xb9b   : > { %v5745_v56 = vpop.eup %5744  ;;  %2164 = vmatprep.subr.bf16.mxu1 %v6941_v34  ;;  %v7324_v21 = vmul.f32 %v5743_v63, %v1754_v52 }
 0xb9c   : > { %v7322_v48 = vmul.f32 %v5745_v56, %v1757_v36 }
 0xb9d   : > { %v7332_v16 = vpack.c.bf16 %v7318_v55, %v7324_v21 }
 0xb9e   : > { %2165 = vmatpush1.bf16.msra.mxu1 %v6945_v13  ;;  %v1898_v33 = vpack.c.bf16 %v7322_v48, %v7320_v4 }
 0xb9f   : > { %2166 = vmatprep.subr.bf16.mxu1 %v6949_v10 }
 0xba0   : > { %1955 = vmatprep.mubr.bf16.mxu1 %v1898_v33  ;;  %1972 = vmatprep.subr.bf16.mxu0 %v1898_v33 }
 0xba1   : > { %1956 = vmatmul.mubr.bf16.gmra.mxu1 %v7332_v16  ;;  %1973 = vmatpush1.bf16.xpose.msra.mxu0 %v7332_v16 }
 0xba2   : > { %2167 = vmatpush1.bf16.msra.mxu1 %v6953_v39  ;;  %1974 = vmatprep.subr.bf16.mxu0 %v7303_v58 }
 0xba3   : > { %2168 = vmatprep.subr.bf16.mxu1 %v6957_v54  ;;  %2186 = vmatprep.mubr.bf16.mxu1 %v8907_v42 }
 0xba6   : > { %2169 = vmatpush1.bf16.msra.mxu1 %v6961_v24 }
 0xba7   : > { %2348 = vmatprep.subr.bf16.mxu1 %v1898_v33 }
 0xba9   : > { %1975 = vmatpush1.bf16.xpose.msra.mxu0 %v7308_v20 }
 0xbaa   : > { %1976 = vmatprep.subr.bf16.mxu0 %v7275_v62 }
 0xbb1   : > { %1977 = vmatpush1.bf16.xpose.msra.mxu0 %v7280_v15 }
 0xbb2   : > { %1978 = vmatprep.subr.bf16.mxu0 %v7247_v7 }
 0xbb9   : > { %1979 = vmatpush1.bf16.xpose.msra.mxu0 %v7251_v30 }
 0xbba   : > { %5335 = vmatprep.subr.bf16.mxu0 %v7167_v22 }
 0xbc0   : > { %1997 = vmatmul.mubr.bf16.vlgmr.msra.gmra.mxu0 %v7251_v30 }
 0xbc1   : > { %2004 = vmatprep.mubr.bf16.mxu0 %v7275_v62  ;;  %5336 = vmatpush3.bf16.msra.mxu0 %v7167_v22 }
 0xbc2   : > { %5337 = vmatprep.subr.bf16.mxu0 %v7178_v40 }
 0xbc5   : > { %5338 = vmatpush3.bf16.msra.mxu0 %v7178_v40 }
 0xbc6   : > { %5339 = vmatprep.subr.bf16.mxu0 %v7173_v57 }
 0xbc8   : > { %2005 = vmatmul.mubr.bf16.gmra.mxu0 %v7280_v15 }
 0xbc9   : > { %2012 = vmatprep.mubr.bf16.mxu0 %v7303_v58  ;;  %5340 = vmatpush3.bf16.msra.mxu0 %v7173_v57 }
 0xbca   : > { %5341 = vmatprep.subr.bf16.mxu0 %v7136_v6 }
 0xbcd   : > { %5342 = vmatpush3.bf16.msra.mxu0 %v7136_v6 }
 0xbd0   : > { %2013 = vmatmul.mubr.bf16.gmra.mxu0 %v7308_v20 }
 0xbd1   : > { %2020 = vmatprep.mubr.bf16.mxu0 %v1898_v33 }
 0xbd8   : > { %2021 = vmatmul.mubr.bf16.gmra.mxu0 %v7332_v16 }
 0xc49   : > { %v7360_v34 = vpop.f32.mrf.mxu1 }
 0xc4b   : > { %v1935_v13 = vpop.f32.mrf.mxu1 }
 0xc4d   : > { %v7362_v10 = vpop.f32.mrf.mxu1 }
 0xc4f   : > { %v1938_v39 = vpop.f32.mrf.mxu1 }
 0xc51   : > { %v7364_v54 = vpop.f32.mrf.mxu1 }
 0xc53   : > { %v1943_v24 = vpop.f32.mrf.mxu1 }
 0xc55   : > { %v7366_v22 = vpop.f32.mrf.mxu1 }
 0xc57   : > { %v1946_v57 = vpop.f32.mrf.mxu1 }
 0xc59   : > { %v7368_v40 = vpop.f32.mrf.mxu1 }
 0xc5b   : > { %v1951_v6 = vpop.f32.mrf.mxu1 }
 0xc5d   : > { %v7370_v46 = vpop.f32.mrf.mxu1 }
 0xc5f   : > { %v1954_v26 = vpop.f32.mrf.mxu1 }
 0xc61   : > { %v7372_v37 = vpop.f32.mrf.mxu1 }
 0xc63   : > { %v1959_v45 = vpop.f32.mrf.mxu1 }
 0xc65   : > { %v7374_v28 = vpop.f32.mrf.mxu1 }
 0xc67   : > { %v1962_v31 = vpop.f32.mrf.mxu1 }
 0xc80   : > { %v1998_v27 = vpop.f32.mrf.mxu0 }
 0xc82   : > { %v2000_v43 = vpop.f32.mrf.mxu0 }
 0xc84   : > { %v2001_v29 = vpop.f32.mrf.mxu0 }
 0xc85   : > { %v2029_v32 = vpack.c.bf16 %v2001_v29, %v1998_v27 }
 0xc86   : > { %v2003_v25 = vpop.f32.mrf.mxu0 }
 0xc87   : > { %2041 = vxpose.xlu1.c.b16.start [1/4] (short) (narrow) %v2029_v32, 64 }
 0xc88   : > { %v2006_v3 = vpop.f32.mrf.mxu0 }
 0xc8a   : > { %v2008_v60 = vpop.f32.mrf.mxu0 }
 0xc8c   : > { %v2009_v2 = vpop.f32.mrf.mxu0 }
 0xc8d   : > { %v2030_v38 = vpack.c.bf16 %v2009_v2, %v2006_v3 }
 0xc8e   : > { %v2011_v5 = vpop.f32.mrf.mxu0 }
 0xc8f   : > { %2042 = vxpose.xlu1.c.b16.cont [2/4] (short) (narrow) %v2030_v38, 64 }
 0xc90   : > { %v2014_v61 = vpop.f32.mrf.mxu0 }
 0xc92   : > { %v2016_v63 = vpop.f32.mrf.mxu0 }
 0xc94   : > { %v2017_v51 = vpop.f32.mrf.mxu0 }
 0xc95   : > { %v2031_v11 = vpack.c.bf16 %v2017_v51, %v2014_v61 }
 0xc96   : > { %v2019_v44 = vpop.f32.mrf.mxu0 }
 0xc97   : > { %2043 = vxpose.xlu1.c.b16.cont [3/4] (short) (narrow) %v2031_v11, 64  ;;  %v2033_v11 = vmul.f32 %v7360_v34, %v7130_v12  ;;  %v2034_v44 = vmul.f32 %v7362_v10, %v7132_v47  ;;  %v2039_v12 = vmul.f32 %v7372_v37, %v7156_v8  ;;  %v8955_v47 = vld [vmem:[#allocation16_spill] sm:$0xff] }
 0xc98   : > { %v2022_v36 = vpop.f32.mrf.mxu0  ;;  %v2040_v34 = vmul.f32 %v7374_v28, %v8955_v47 }
 0xc9a   : > { %v2024_v56 = vpop.f32.mrf.mxu0 }
 0xc9c   : > { %v2025_v9 = vpop.f32.mrf.mxu0 }
 0xc9d   : > { %v2032_v52 = vpack.c.bf16 %v2025_v9, %v2022_v36 }
 0xc9e   : > { %v2027_v33 = vpop.f32.mrf.mxu0 }
 0xc9f   : > { %2044 = vxpose.xlu1.c.b16.end [4/4] (short) (narrow) %v2032_v52, 64 }
 0xcf5   : > { %v2049_v13 = vpop.trf.xlu1 }
 0xcf6   : > { %5343 = vmatprep.mubr.msk.bf16.mxu0 %vm665_vm0, %v2049_v13 }
 0xcf9   : > { %v2050_v39 = vpop.trf.xlu1 }
 0xcfa   : > { %5344 = vmatmul.mubr.msk.bf16.vlgmr.msra.gmra.mxu0 %vm665_vm0, %v2050_v39 }
 0xcfd   : > { %v2051_v24 = vpop.trf.xlu1 }
 0xcfe   : > { %5347 = vmatprep.mubr.msk.bf16.mxu0 %vm665_vm0, %v2051_v24 }
 0xd01   : > { %v2052_v57 = vpop.trf.xlu1 }
 0xd02   : > { %5348 = vmatmul.mubr.msk.bf16.gmra.mxu0 %vm665_vm0, %v2052_v57  ;;  %v2036_v57 = vmul.f32 %v7366_v22, %v7154_v23  ;;  %v8958_v23 = vld [vmem:[#allocation21_spill] sm:$0xff] }
 0xd03   : > { %v2038_v8 = vmul.f32 %v7370_v46, %v8958_v23 }
 0xdba   : > { %v5345_v6 = vpop.f32.mrf.mxu0 }
 0xdbb   : > { %v2112_v43 = vadd.f32 1e-06, %v5345_v6  ;;  %v8956_v6 = vld [vmem:[#allocation22_spill] sm:$0xff] }
 0xdbc   : > { %v2103_v26 = vpop.f32.mrf.mxu0 }
 0xdbd   : > { %v2104_v45 = vadd.f32 1e-06, %v2103_v26  ;;  %v2035_v26 = vmul.f32 %v7364_v54, %v8956_v6 }
 0xdbe   : > { %v5346_v31 = vpop.f32.mrf.mxu0 }
 0xdbf   : > { %5746 = vrcp.f32 %v2104_v45  ;;  %v2115_v32 = vadd.f32 1e-06, %v5346_v31  ;;  %v8957_v45 = vld [vmem:[#allocation27_spill] sm:$0xff] }
 0xdc0   : > { %v2106_v27 = vpop.f32.mrf.mxu0  ;;  %v2037_v31 = vmul.f32 %v7368_v40, %v8957_v45 }
 0xdc1   : > { %v2107_v29 = vadd.f32 1e-06, %v2106_v27 }
 0xdc2   : > { %v5349_v25 = vpop.f32.mrf.mxu0 }
 0xdc3   : > { %5748 = vrcp.f32 %v2107_v29  ;;  %v2128_v3 = vadd.f32 1e-06, %v5349_v25  ;;  %v7476_v29 = vld [vmem:[%s6383_s29 + $0x50] ss:$8 sps:$4 sm:$0xff]   ;;  %v7484_v25 = vld [vmem:[%s6383_s29 + $0x40] ss:$8 sps:$4 sm:$0xff]  }
 0xdc4   : > { %v2119_v60 = vpop.f32.mrf.mxu0  ;;  %5750 = vrcp.f32 %v2112_v43 }
 0xdc5   : > { %v2120_v2 = vadd.f32 1e-06, %v2119_v60  ;;  %5752 = vrcp.f32 %v2115_v32  ;;  %v7480_v32 = vld [vmem:[%s6383_s29 + $0x44] ss:$8 sps:$4 sm:$0xff]   ;;  %v7492_v60 = vld [vmem:[%s6383_s29 + $0x30] ss:$8 sps:$4 sm:$0xff]  }
 0xdc6   : > { %v5350_v38 = vpop.f32.mrf.mxu0  ;;  %5754 = vrcp.f32 %v2128_v3  ;;  %v7488_v3 = vld [vmem:[%s6383_s29 + $0x34] ss:$8 sps:$4 sm:$0xff]  }
 0xdc7   : > { %v2131_v5 = vadd.f32 1e-06, %v5350_v38  ;;  %5756 = vrcp.f32 %v2120_v2  ;;  %v7496_v2 = vld [vmem:[%s6383_s29 + $0x24] ss:$8 sps:$4 sm:$0xff]   ;;  %v7500_v38 = vld [vmem:[%s6383_s29 + $0x20] ss:$8 sps:$4 sm:$0xff]  }
 0xdc8   : > { %v2122_v61 = vpop.f32.mrf.mxu0 }
 0xdc9   : > { %5758 = vrcp.f32 %v2131_v5  ;;  %v2123_v63 = vadd.f32 1e-06, %v2122_v61  ;;  %v7504_v5 = vld [vmem:[%s6383_s29 + $0x14] ss:$8 sps:$4 sm:$0xff]   ;;  %v7508_v61 = vld [vmem:[%s6383_s29 + $0x10] ss:$8 sps:$4 sm:$0xff]  }
 0xdcb   : > { %5760 = vrcp.f32 %v2123_v63  ;;  %v7512_v63 = vld [vmem:[%s6383_s29 + $0x4] ss:$8 sps:$4 sm:$0xff]  }
 0xdcc   : > { %v5747_v51 = vpop.eup %5746 }
 0xdcd   : > { %v7384_v56 = vmul.f32 %v5747_v51, %v2033_v11  ;;  %v7516_v51 = vld [vmem:[%s6383_s29] ss:$8 sps:$4 sm:$0xff]  }
 0xdce   : > { %8969 = vst [vmem:[#allocation21_spill] sm:$0xff] %v7516_v51 }
 0xdcf   : > { %8952 = vst [vmem:[#allocation23_spill] sm:$0xff] %v7384_v56 }
 0xdd0   : > { %v5749_v36 = vpop.eup %5748 }
 0xdd1   : > { %v7386_v9 = vmul.f32 %v5749_v36, %v2034_v44  ;;  %v5751_v52 = vpop.eup %5750 }
 0xdd2   : > { %v5753_v33 = vpop.eup %5752  ;;  %v7415_v54 = vmul.f32 %v5751_v52, %v2035_v26 }
 0xdd3   : > { %8953 = vst [vmem:[#allocation24_spill] sm:$0xff] %v7386_v9  ;;  %v7390_v13 = vpack.c.bf16 %v7386_v9, %v7384_v56  ;;  %v5755_v39 = vpop.eup %5754  ;;  %v7408_v22 = vmul.f32 %v5753_v33, %v2036_v57 }
 0xdd4   : > { %v5757_v24 = vpop.eup %5756  ;;  %v7410_v37 = vmul.f32 %v5755_v39, %v2039_v12  ;;  %8962 = vst [vmem:[#allocation18_spill] sm:$0xff] %v7415_v54 }
 0xdd5   : > { %8954 = vst [vmem:[#allocation25_spill] sm:$0xff] %v7390_v13  ;;  %2187 = vmatmul.mubr.bf16.vlgmr.msra.gmra.mxu1 %v7390_v13  ;;  %5359 = vmatprep.mubr.bf16.mxu0 %v7390_v13  ;;  %8959 = vst [vmem:[#allocation26_spill] sm:$0xff] %v7408_v22  ;;  %v7417_v43 = vmul.f32 %v5757_v24, %v2037_v31  ;;  %v7428_v46 = vpack.c.bf16 %v7408_v22, %v7415_v54 }
 0xdd6   : > { %v5759_v10 = vpop.eup %5758  ;;  %2349 = vmatpush1.bf16.msra.mxu1 %v7332_v16  ;;  %2196 = vmatprep.mubr.bf16.mxu1 %v8907_v42  ;;  %8960 = vst [vmem:[#allocation14_spill] sm:$0xff] %v7410_v37 }
 0xdd7   : > { %v7412_v28 = vmul.f32 %v5759_v10, %v2040_v34  ;;  %2350 = vmatprep.subr.bf16.mxu1 %v7303_v58  ;;  %8963 = vst [vmem:[#allocation20_spill] sm:$0xff] %v7417_v43  ;;  %8966 = vst [vmem:[#allocation16_spill] sm:$0xff] %v7428_v46 }
 0xdd8   : > { %v5761_v27 = vpop.eup %5760 }
 0xdd9   : > { %8961 = vst [vmem:[#allocation15_spill] sm:$0xff] %v7412_v28  ;;  %v7421_v16 = vpack.c.bf16 %v7412_v28, %v7410_v37  ;;  %v7423_v40 = vmul.f32 %v5761_v27, %v2038_v8 }
 0xdda   : > { %2351 = vmatpush1.bf16.msra.mxu1 %v7308_v20  ;;  %v7472_v20 = vld [vmem:[%s6383_s29 + $0x54] ss:$8 sps:$4 sm:$0xff]  }
 0xddb   : > { %8964 = vst [vmem:[#allocation17_spill] sm:$0xff] %v7421_v16  ;;  %8965 = vst [vmem:[#allocation19_spill] sm:$0xff] %v7423_v40  ;;  %2352 = vmatprep.subr.bf16.mxu1 %v7275_v62  ;;  %5351 = vmatprep.subr.bf16.mxu0 %v7421_v16  ;;  %v7434_v58 = vpack.c.bf16 %v7423_v40, %v7417_v43  ;;  %v7463_v62 = vld [vmem:[%s6383_s29 + $0x64] ss:$8 sps:$4 sm:$0xff]  }
 0xddc   : > { %5352 = vmatpush3.bf16.xpose.msra.mxu0 %v7421_v16 }
 0xddd   : > { %8967 = vst [vmem:[#allocation22_spill] sm:$0xff] %v7434_v58  ;;  %2197 = vmatmul.mubr.bf16.gmra.mxu1 %v7428_v46  ;;  %5353 = vmatprep.subr.bf16.mxu0 %v7434_v58 }
 0xdde   : > { %2353 = vmatpush1.bf16.msra.mxu1 %v7280_v15  ;;  %2206 = vmatprep.mubr.bf16.mxu1 %v8907_v42  ;;  %v7468_v15 = vld [vmem:[%s6383_s29 + $0x60] ss:$8 sps:$4 sm:$0xff]  }
 0xddf   : > { %2354 = vmatprep.subr.bf16.mxu1 %v7247_v7  ;;  %v7453_v7 = vld [vmem:[%s6383_s29 + $0x74] ss:$8 sps:$4 sm:$0xff]  }
 0xde0   : > { %8968 = vst [vmem:[#allocation27_spill] sm:$0xff] %v7453_v7 }
 0xde2   : > { %2355 = vmatpush1.bf16.msra.mxu1 %v7251_v30  ;;  %v7459_v30 = vld [vmem:[%s6383_s29 + $0x70] ss:$8 sps:$4 sm:$0xff]  }
 0xde4   : > { %5354 = vmatpush3.bf16.xpose.msra.mxu0 %v7434_v58 }
 0xde5   : > { %2207 = vmatmul.mubr.bf16.gmra.mxu1 %v7434_v58  ;;  %5355 = vmatprep.subr.bf16.mxu0 %v7428_v46 }
 0xde6   : > { %2216 = vmatprep.mubr.bf16.mxu1 %v8907_v42 }
 0xdec   : > { %5356 = vmatpush3.bf16.xpose.msra.mxu0 %v7428_v46 }
 0xded   : > { %2217 = vmatmul.mubr.bf16.gmra.mxu1 %v7421_v16  ;;  %5357 = vmatprep.subr.bf16.mxu0 %v7390_v13 }
 0xdee   : > { %2372 = vmatprep.mubr.bf16.mxu1 %v8907_v42 }
 0xdf4   : > { %5358 = vmatpush3.bf16.xpose.msra.mxu0 %v7390_v13 }
 0xdf5   : > { %2453 = vmatprep.subr.bf16.mxu0 %v7453_v7 }
 0xdfb   : > { %5360 = vmatmul.mubr.bf16.vlgmr.msra.gmra.mxu0 %v7428_v46 }
 0xdfc   : > { %5363 = vmatprep.mubr.bf16.mxu0 %v7434_v58  ;;  %2454 = vmatpush1.bf16.xpose.msra.mxu0 %v7459_v30 }
 0xdfd   : > { %2455 = vmatprep.subr.bf16.mxu0 %v7463_v62 }
 0xe03   : > { %5364 = vmatmul.mubr.bf16.gmra.mxu0 %v7421_v16 }
 0xe04   : > { %2456 = vmatpush1.bf16.xpose.msra.mxu0 %v7468_v15 }
 0xe05   : > { %2457 = vmatprep.subr.bf16.mxu0 %v7472_v20 }
 0xe0c   : > { %2458 = vmatpush1.bf16.xpose.msra.mxu0 %v7476_v29 }
 0xe0d   : > { %2459 = vmatprep.subr.bf16.mxu0 %v7480_v32 }
 0xe14   : > { %2460 = vmatpush1.bf16.xpose.msra.mxu0 %v7484_v25 }
 0xe15   : > { %2461 = vmatprep.subr.bf16.mxu0 %v7488_v3 }
 0xe1c   : > { %2462 = vmatpush1.bf16.xpose.msra.mxu0 %v7492_v60 }
 0xe1d   : > { %2463 = vmatprep.subr.bf16.mxu0 %v7496_v2 }
 0xe24   : > { %2464 = vmatpush1.bf16.xpose.msra.mxu0 %v7500_v38 }
 0xe25   : > { %2465 = vmatprep.subr.bf16.mxu0 %v7504_v5 }
 0xe2c   : > { %2466 = vmatpush1.bf16.xpose.msra.mxu0 %v7508_v61 }
 0xe2d   : > { %2467 = vmatprep.subr.bf16.mxu0 %v7512_v63 }
 0xe34   : > { %2468 = vmatpush1.bf16.xpose.msra.mxu0 %v7516_v51 }
 0xe35   : > { %2708 = vmatprep.subr.bf16.mxu0 %v7453_v7 }
 0xe95   : > { %v2188_v23 = vpop.f32.mrf.mxu1 }
 0xe97   : > { %v2190_v8 = vpop.f32.mrf.mxu1 }
 0xe99   : > { %v2192_v27 = vpop.f32.mrf.mxu1 }
 0xebb   : > { %v5361_v11 = vpop.f32.mrf.mxu0 }
 0xebd   : > { %v2261_v44 = vpop.f32.mrf.mxu0 }
 0xebf   : > { %v5362_v36 = vpop.f32.mrf.mxu0 }
 0xec0   : > { %v2293_v57 = vpack.c.bf16 %v5362_v36, %v5361_v11  ;;  %v2194_v11 = vpop.f32.mrf.mxu1 }
 0xec1   : > { %v2264_v52 = vpop.f32.mrf.mxu0 }
 0xec2   : > { %v2292_v33 = vpack.c.bf16 %v2264_v52, %v2261_v44  ;;  %v7527_v44 = vpop.f32.mrf.mxu1 }
 0xec3   : > { %v5365_v39 = vpop.f32.mrf.mxu0 }
 0xec4   : > { %2312 = vxpose.xlu0.c.b16.start [1/4] (short) (narrow) %v2292_v33, 64  ;;  %v7529_v36 = vpop.f32.mrf.mxu1 }
 0xec5   : > { %v2277_v24 = vpop.f32.mrf.mxu0 }
 0xec6   : > { %v7531_v52 = vpop.f32.mrf.mxu1 }
 0xec7   : > { %v5366_v12 = vpop.f32.mrf.mxu0 }
 0xec8   : > { %2313 = vxpose.xlu0.c.b16.cont [2/4] (short) (narrow) %v2293_v57, 64  ;;  %v2295_v10 = vpack.c.bf16 %v5366_v12, %v5365_v39  ;;  %v7533_v33 = vpop.f32.mrf.mxu1 }
 0xec9   : > { %v2280_v47 = vpop.f32.mrf.mxu0 }
 0xeca   : > { %v2294_v34 = vpack.c.bf16 %v2280_v47, %v2277_v24  ;;  %v7535_v39 = vpop.f32.mrf.mxu1 }
 0xecc   : > { %2314 = vxpose.xlu0.c.b16.cont [3/4] (short) (narrow) %v2294_v34, 64  ;;  %v7537_v24 = vpop.f32.mrf.mxu1 }
 0xece   : > { %v7539_v57 = vpop.f32.mrf.mxu1 }
 0xed0   : > { %2315 = vxpose.xlu0.c.b16.end [4/4] (short) (narrow) %v2295_v10, 64  ;;  %v7541_v12 = vpop.f32.mrf.mxu1 }
 0xed2   : > { %v7543_v47 = vpop.f32.mrf.mxu1 }
 0xed4   : > { %v7545_v34 = vpop.f32.mrf.mxu1 }
 0xed6   : > { %v7547_v10 = vpop.f32.mrf.mxu1 }
 0xf26   : > { %v2320_v6 = vpop.trf.xlu0 }
 0xf27   : > { %5079 = vmatmul.mubr.msk.bf16.vlgmr.msra.gmra.mxu1 %vm665_vm0, %v2320_v6  ;;  %v7549_v6 = vpop.f32.mrf.mxu1 }
 0xf28   : > { %2382 = vmatprep.mubr.bf16.mxu1 %v8907_v42 }
 0xf2a   : > { %v2321_v26 = vpop.trf.xlu0 }
 0xf2e   : > { %v2322_v45 = vpop.trf.xlu0 }
 0xf2f   : > { %5080 = vmatmul.mubr.msk.bf16.gmra.mxu1 %vm665_vm0, %v2321_v26 }
 0xf30   : > { %2392 = vmatprep.mubr.bf16.mxu1 %v8907_v42 }
 0xf32   : > { %v2323_v31 = vpop.trf.xlu0 }
 0xf37   : > { %5081 = vmatmul.mubr.msk.bf16.gmra.mxu1 %vm665_vm0, %v2322_v45 }
 0xf38   : > { %2402 = vmatprep.mubr.bf16.mxu1 %v8907_v42 }
 0xf3f   : > { %5082 = vmatmul.mubr.msk.bf16.gmra.mxu1 %vm665_vm0, %v2323_v31 }
 0xfe7   : > { %v2374_v26 = vpop.f32.mrf.mxu1 }
 0xfe8   : > { %v2375_v40 = vadd.f32 1e-06, %v2374_v26 }
 0xfe9   : > { %v2376_v45 = vpop.f32.mrf.mxu1 }
 0xfea   : > { %v2377_v31 = vadd.f32 1e-06, %v2376_v45 }
 0xfeb   : > { %v2378_v43 = vpop.f32.mrf.mxu1 }
 0xfec   : > { %v2379_v54 = vadd.f32 1e-06, %v2378_v43  ;;  %5762 = vrcp.f32 %v2377_v31 }
 0xfed   : > { %v2380_v28 = vpop.f32.mrf.mxu1 }
 0xfee   : > { %5764 = vrcp.f32 %v2379_v54  ;;  %v2381_v37 = vadd.f32 1e-06, %v2380_v28  ;;  %v2298_v28 = vmul.f32 %v2192_v27, %v7237_v35 }
 0xfef   : > { %5766 = vrcp.f32 %v2375_v40  ;;  %v2384_v22 = vpop.f32.mrf.mxu1 }
 0xff0   : > { %5768 = vrcp.f32 %v2381_v37  ;;  %v2385_v13 = vadd.f32 1e-06, %v2384_v22  ;;  %v2299_v22 = vmul.f32 %v2194_v11, %v7241_v18 }
 0xff1   : > { %v2386_v9 = vpop.f32.mrf.mxu1 }
 0xff2   : > { %v2387_v56 = vadd.f32 1e-06, %v2386_v9  ;;  %v2297_v9 = vmul.f32 %v2190_v8, %v7239_v1 }
 0xff3   : > { %v2388_v46 = vpop.f32.mrf.mxu1 }
 0xff4   : > { %v2389_v58 = vadd.f32 1e-06, %v2388_v46  ;;  %5770 = vrcp.f32 %v2387_v56 }
 0xff5   : > { %v2390_v16 = vpop.f32.mrf.mxu1 }
 0xff6   : > { %5772 = vrcp.f32 %v2389_v58  ;;  %v2391_v7 = vadd.f32 1e-06, %v2390_v16  ;;  %v2296_v16 = vmul.f32 %v2188_v23, %v7243_v50 }
 0xff7   : > { %5774 = vrcp.f32 %v2385_v13  ;;  %v2394_v26 = vpop.f32.mrf.mxu1 }
 0xff8   : > { %5776 = vrcp.f32 %v2391_v7  ;;  %v2395_v40 = vadd.f32 1e-06, %v2394_v26  ;;  %v2302_v26 = vmul.f32 %v7531_v52, %v7264_v19 }
 0xff9   : > { %v2396_v43 = vpop.f32.mrf.mxu1  ;;  %v5763_v45 = vpop.eup %5762 }
 0xffa   : > { %v2397_v31 = vadd.f32 1e-06, %v2396_v43  ;;  %v7557_v43 = vmul.f32 %v5763_v45, %v2297_v9 }
 0xffb   : > { %v5765_v54 = vpop.eup %5764  ;;  %v2398_v37 = vpop.f32.mrf.mxu1 }
 0xffc   : > { %v5767_v51 = vpop.eup %5766  ;;  %v2399_v56 = vadd.f32 1e-06, %v2398_v37  ;;  %v7555_v13 = vmul.f32 %v5765_v54, %v2298_v28  ;;  %5778 = vrcp.f32 %v2397_v31  ;;  %v2301_v28 = vmul.f32 %v7529_v36, %v7266_v49 }
 0xffd   : > { %v5769_v46 = vpop.eup %5768  ;;  %v2400_v58 = vpop.f32.mrf.mxu1  ;;  %v7561_v27 = vmul.f32 %v5767_v51, %v2296_v16  ;;  %v2306_v16 = vmul.f32 %v7539_v57, %v7292_v53 }
 0xffe   : > { %5780 = vrcp.f32 %v2399_v56  ;;  %v2401_v7 = vadd.f32 1e-06, %v2400_v58  ;;  %v7559_v35 = vmul.f32 %v5769_v46, %v2299_v22  ;;  %v2300_v22 = vmul.f32 %v7527_v44, %v7270_v41 }
 0xfff   : > { %5782 = vrcp.f32 %v2395_v40  ;;  %v2404_v1 = vpop.f32.mrf.mxu1  ;;  %v7569_v50 = vpack.c.bf16 %v7555_v13, %v7561_v27  ;;  %v2303_v40 = vmul.f32 %v7533_v33, %v7268_v59 }
0x1000   : > { %5784 = vrcp.f32 %v2401_v7  ;;  %v7565_v18 = vpack.c.bf16 %v7559_v35, %v7557_v43  ;;  %v2405_v45 = vadd.f32 1e-06, %v2404_v1  ;;  %v2305_v7 = vmul.f32 %v7537_v24, %v7294_v14 }
0x1001   : > { %v2406_v23 = vpop.f32.mrf.mxu1  ;;  %v5771_v8 = vpop.eup %5770  ;;  %v2307_v1 = vmul.f32 %v7541_v12, %v7296_v0  ;;  %v2310_v24 = vmul.f32 %v7547_v10, %v7318_v55 }
0x1002   : > { %v2407_v11 = vadd.f32 1e-06, %v2406_v23  ;;  %2485 = vmatprep.mubr.bf16.mxu0 %v7565_v18  ;;  %2550 = vmatprep.mubr.bf16.mxu1 %v7565_v18  ;;  %v7586_v46 = vmul.f32 %v5771_v8, %v2301_v28  ;;  %v2304_v8 = vmul.f32 %v7535_v39, %v7298_v17 }
0x1003   : > { %v5773_v51 = vpop.eup %5772  ;;  %v2408_v31 = vpop.f32.mrf.mxu1  ;;  %2486 = vmatmul.mubr.bf16.vlgmr.msra.gmra.mxu0 %v7569_v50 }
0x1004   : > { %v5775_v54 = vpop.eup %5774  ;;  %v2409_v37 = vadd.f32 1e-06, %v2408_v31  ;;  %2709 = vmatpush1.bf16.msra.mxu0 %v7459_v30  ;;  %5786 = vrcp.f32 %v2407_v11  ;;  %v7583_v52 = vmul.f32 %v5773_v51, %v2302_v26  ;;  %v2309_v26 = vmul.f32 %v7545_v34, %v7320_v4  ;;  %v8976_v34 = vld [vmem:[#allocation17_spill] sm:$0xff] }
0x1005   : > { %v5777_v9 = vpop.eup %5776  ;;  %v2410_v19 = vpop.f32.mrf.mxu1  ;;  %2710 = vmatprep.subr.bf16.mxu0 %v7463_v62  ;;  %v7590_v59 = vmul.f32 %v5775_v54, %v2300_v22  ;;  %v2308_v54 = vmul.f32 %v7543_v47, %v7324_v21  ;;  %v8974_v21 = vld [vmem:[#allocation21_spill] sm:$0xff]  ;;  %v8975_v47 = vld [vmem:[#allocation27_spill] sm:$0xff] }
0x1006   : > { %5788 = vrcp.f32 %v2409_v37  ;;  %v2411_v56 = vadd.f32 1e-06, %v2410_v19  ;;  %v7588_v49 = vmul.f32 %v5777_v9, %v2303_v40  ;;  %v8978_v37 = vld [vmem:[#allocation16_spill] sm:$0xff]  ;;  %v8979_v9 = vld [vmem:[#allocation25_spill] sm:$0xff] }
0x1007   : > { %5790 = vrcp.f32 %v2405_v45  ;;  %v7599_v41 = vpack.c.bf16 %v7583_v52, %v7590_v59  ;;  %v2311_v45 = vmul.f32 %v7549_v6, %v7322_v48  ;;  %v8977_v6 = vld [vmem:[#allocation22_spill] sm:$0xff] }
0x1008   : > { %5792 = vrcp.f32 %v2411_v56  ;;  %v7594_v36 = vpack.c.bf16 %v7588_v49, %v7586_v46  ;;  %2711 = vmatpush1.bf16.msra.mxu0 %v7468_v15 }
0x1009   : > { %2712 = vmatprep.subr.bf16.mxu0 %v7472_v20  ;;  %v5779_v44 = vpop.eup %5778 }
0x100a   : > { %2493 = vmatprep.mubr.bf16.mxu0 %v7594_v36  ;;  %v7616_v53 = vmul.f32 %v5779_v44, %v2305_v7 }
0x100b   : > { %v5781_v33 = vpop.eup %5780  ;;  %2494 = vmatmul.mubr.bf16.gmra.mxu0 %v7599_v41 }
0x100c   : > { %v5783_v58 = vpop.eup %5782  ;;  %2713 = vmatpush1.bf16.msra.mxu0 %v7476_v29  ;;  %v7613_v11 = vmul.f32 %v5781_v33, %v2306_v16 }
0x100d   : > { %v5785_v23 = vpop.eup %5784  ;;  %2714 = vmatprep.subr.bf16.mxu0 %v7480_v32  ;;  %v7620_v51 = vmul.f32 %v5783_v58, %v2304_v8 }
0x100e   : > { %v7618_v57 = vmul.f32 %v5785_v23, %v2307_v1 }
0x100f   : > { %v7629_v0 = vpack.c.bf16 %v7613_v11, %v7620_v51 }
0x1010   : > { %v7624_v14 = vpack.c.bf16 %v7618_v57, %v7616_v53  ;;  %2715 = vmatpush1.bf16.msra.mxu0 %v7484_v25 }
0x1011   : > { %2716 = vmatprep.subr.bf16.mxu0 %v7488_v3  ;;  %v5787_v17 = vpop.eup %5786 }
0x1012   : > { %2501 = vmatprep.mubr.bf16.mxu0 %v7624_v14  ;;  %v7646_v55 = vmul.f32 %v5787_v17, %v2309_v26 }
0x1013   : > { %v5789_v39 = vpop.eup %5788  ;;  %2502 = vmatmul.mubr.bf16.gmra.mxu0 %v7629_v0 }
0x1014   : > { %v5791_v12 = vpop.eup %5790  ;;  %2717 = vmatpush1.bf16.msra.mxu0 %v7492_v60  ;;  %v7643_v28 = vmul.f32 %v5789_v39, %v2310_v24  ;;  %8971 = vst [vmem:[#allocation29_spill] sm:$0xff] %v7646_v55 }
0x1015   : > { %v5793_v31 = vpop.eup %5792  ;;  %2718 = vmatprep.subr.bf16.mxu0 %v7496_v2  ;;  %v7650_v40 = vmul.f32 %v5791_v12, %v2308_v54 }
0x1016   : > { %8970 = vst [vmem:[#allocation28_spill] sm:$0xff] %v7643_v28  ;;  %v7648_v10 = vmul.f32 %v5793_v31, %v2311_v45 }
0x1017   : > { %8973 = vst [vmem:[#allocation31_spill] sm:$0xff] %v7650_v40  ;;  %v7659_v48 = vpack.c.bf16 %v7643_v28, %v7650_v40 }
0x1018   : > { %8972 = vst [vmem:[#allocation30_spill] sm:$0xff] %v7648_v10  ;;  %v7654_v4 = vpack.c.bf16 %v7648_v10, %v7646_v55  ;;  %2719 = vmatpush1.bf16.msra.mxu0 %v7500_v38 }
0x1019   : > { %2720 = vmatprep.subr.bf16.mxu0 %v7504_v5 }
0x101a   : > { %2509 = vmatprep.mubr.bf16.mxu0 %v7654_v4  ;;  %2526 = vmatprep.subr.bf16.mxu1 %v7654_v4 }
0x101b   : > { %2510 = vmatmul.mubr.bf16.gmra.mxu0 %v7659_v48  ;;  %2527 = vmatpush1.bf16.xpose.msra.mxu1 %v7659_v48 }
0x101c   : > { %2528 = vmatprep.subr.bf16.mxu1 %v7624_v14  ;;  %2721 = vmatpush1.bf16.msra.mxu0 %v7508_v61 }
0x101d   : > { %2722 = vmatprep.subr.bf16.mxu0 %v7512_v63  ;;  %2740 = vmatprep.mubr.bf16.mxu0 %v8907_v42 }
0x1020   : > { %2723 = vmatpush1.bf16.msra.mxu0 %v8974_v21 }
0x1021   : > { %3007 = vmatprep.subr.bf16.mxu0 %v8975_v47 }
0x1023   : > { %2529 = vmatpush1.bf16.xpose.msra.mxu1 %v7629_v0 }
0x1024   : > { %2530 = vmatprep.subr.bf16.mxu1 %v7594_v36 }
0x102b   : > { %2531 = vmatpush1.bf16.xpose.msra.mxu1 %v7599_v41 }
0x102c   : > { %2532 = vmatprep.subr.bf16.mxu1 %v7565_v18 }
0x1033   : > { %2533 = vmatpush1.bf16.xpose.msra.mxu1 %v7569_v50 }
0x1034   : > { %5367 = vmatprep.subr.bf16.mxu1 %v8976_v34 }
0x103a   : > { %2551 = vmatmul.mubr.bf16.vlgmr.msra.gmra.mxu1 %v7569_v50 }
0x103b   : > { %2558 = vmatprep.mubr.bf16.mxu1 %v7594_v36  ;;  %5368 = vmatpush3.bf16.msra.mxu1 %v8976_v34 }
0x103c   : > { %5369 = vmatprep.subr.bf16.mxu1 %v8977_v6 }
0x103f   : > { %5370 = vmatpush3.bf16.msra.mxu1 %v8977_v6 }
0x1040   : > { %5371 = vmatprep.subr.bf16.mxu1 %v8978_v37 }
0x1042   : > { %2559 = vmatmul.mubr.bf16.gmra.mxu1 %v7599_v41 }
0x1043   : > { %2566 = vmatprep.mubr.bf16.mxu1 %v7624_v14  ;;  %5372 = vmatpush3.bf16.msra.mxu1 %v8978_v37 }
0x1044   : > { %5373 = vmatprep.subr.bf16.mxu1 %v8979_v9 }
0x1047   : > { %5374 = vmatpush3.bf16.msra.mxu1 %v8979_v9 }
0x104a   : > { %2567 = vmatmul.mubr.bf16.gmra.mxu1 %v7629_v0 }
0x104b   : > { %2574 = vmatprep.mubr.bf16.mxu1 %v7654_v4 }
0x1052   : > { %2575 = vmatmul.mubr.bf16.gmra.mxu1 %v7659_v48 }
0x10c3   : > { %v7692_v22 = vpop.f32.mrf.mxu0 }
0x10c5   : > { %v2489_v19 = vpop.f32.mrf.mxu0 }
0x10c7   : > { %v7694_v56 = vpop.f32.mrf.mxu0 }
0x10c9   : > { %v2492_v44 = vpop.f32.mrf.mxu0 }
0x10cb   : > { %v7696_v33 = vpop.f32.mrf.mxu0 }
0x10cd   : > { %v2497_v16 = vpop.f32.mrf.mxu0 }
0x10cf   : > { %v7698_v58 = vpop.f32.mrf.mxu0 }
0x10d1   : > { %v2500_v7 = vpop.f32.mrf.mxu0 }
0x10d3   : > { %v7700_v1 = vpop.f32.mrf.mxu0 }
0x10d5   : > { %v2505_v23 = vpop.f32.mrf.mxu0 }
0x10d7   : > { %v7702_v8 = vpop.f32.mrf.mxu0 }
0x10d9   : > { %v2508_v17 = vpop.f32.mrf.mxu0 }
0x10db   : > { %v7704_v39 = vpop.f32.mrf.mxu0 }
0x10dd   : > { %v2513_v24 = vpop.f32.mrf.mxu0 }
0x10df   : > { %v7706_v12 = vpop.f32.mrf.mxu0 }
0x10e1   : > { %v2516_v26 = vpop.f32.mrf.mxu0 }
0x10fa   : > { %v2552_v45 = vpop.f32.mrf.mxu1 }
0x10fc   : > { %v2554_v31 = vpop.f32.mrf.mxu1 }
0x10fe   : > { %v2555_v54 = vpop.f32.mrf.mxu1 }
0x10ff   : > { %v2583_v34 = vpack.c.bf16 %v2555_v54, %v2552_v45 }
0x1100   : > { %v2557_v6 = vpop.f32.mrf.mxu1 }
0x1101   : > { %2595 = vxpose.xlu1.c.b16.start [1/4] (short) (narrow) %v2583_v34, 64 }
0x1102   : > { %v2560_v37 = vpop.f32.mrf.mxu1 }
0x1104   : > { %v2562_v9 = vpop.f32.mrf.mxu1 }
0x1106   : > { %v2563_v19 = vpop.f32.mrf.mxu1 }
0x1107   : > { %v2584_v44 = vpack.c.bf16 %v2563_v19, %v2560_v37 }
0x1108   : > { %v2565_v16 = vpop.f32.mrf.mxu1 }
0x1109   : > { %2596 = vxpose.xlu1.c.b16.cont [2/4] (short) (narrow) %v2584_v44, 64 }
0x110a   : > { %v2568_v7 = vpop.f32.mrf.mxu1 }
0x110c   : > { %v2570_v23 = vpop.f32.mrf.mxu1 }
0x110e   : > { %v2571_v17 = vpop.f32.mrf.mxu1 }
0x110f   : > { %v2585_v40 = vpack.c.bf16 %v2571_v17, %v2568_v7 }
0x1110   : > { %v2573_v24 = vpop.f32.mrf.mxu1 }
0x1111   : > { %2597 = vxpose.xlu1.c.b16.cont [3/4] (short) (narrow) %v2585_v40, 64 }
0x1112   : > { %v2576_v10 = vpop.f32.mrf.mxu1 }
0x1114   : > { %v2578_v26 = vpop.f32.mrf.mxu1 }
0x1116   : > { %v2579_v55 = vpop.f32.mrf.mxu1 }
0x1117   : > { %v2586_v31 = vpack.c.bf16 %v2579_v55, %v2576_v10 }
0x1118   : > { %v2581_v28 = vpop.f32.mrf.mxu1 }
0x1119   : > { %2598 = vxpose.xlu1.c.b16.end [4/4] (short) (narrow) %v2586_v31, 64 }
0x116f   : > { %v2603_v45 = vpop.trf.xlu1 }
0x1170   : > { %5375 = vmatprep.mubr.msk.bf16.mxu1 %vm665_vm0, %v2603_v45 }
0x1173   : > { %v2604_v54 = vpop.trf.xlu1 }
0x1174   : > { %5376 = vmatmul.mubr.msk.bf16.vlgmr.msra.gmra.mxu1 %vm665_vm0, %v2604_v54 }
0x1177   : > { %v2605_v34 = vpop.trf.xlu1 }
0x1178   : > { %5379 = vmatprep.mubr.msk.bf16.mxu1 %vm665_vm0, %v2605_v34  ;;  %v8980_v34 = vld [vmem:[#allocation23_spill] sm:$0xff] }
0x117b   : > { %v2606_v6 = vpop.trf.xlu1 }
0x117c   : > { %5380 = vmatmul.mubr.msk.bf16.gmra.mxu1 %vm665_vm0, %v2606_v6  ;;  %v2587_v6 = vmul.f32 %v7692_v22, %v8980_v34  ;;  %v8983_v22 = vld [vmem:[#allocation14_spill] sm:$0xff]  ;;  %v8986_v34 = vld [vmem:[#allocation20_spill] sm:$0xff] }
0x1234   : > { %v5377_v37 = vpop.f32.mrf.mxu1 }
0x1235   : > { %v2666_v55 = vadd.f32 1e-06, %v5377_v37  ;;  %v8981_v37 = vld [vmem:[#allocation24_spill] sm:$0xff] }
0x1236   : > { %v2657_v40 = vpop.f32.mrf.mxu1 }
0x1237   : > { %v2658_v9 = vadd.f32 1e-06, %v2657_v40  ;;  %v2588_v40 = vmul.f32 %v7694_v56, %v8981_v37  ;;  %v8984_v56 = vld [vmem:[#allocation15_spill] sm:$0xff] }
0x1238   : > { %v5378_v19 = vpop.f32.mrf.mxu1 }
0x1239   : > { %5794 = vrcp.f32 %v2658_v9  ;;  %v2669_v10 = vadd.f32 1e-06, %v5378_v19 }
0x123a   : > { %v2660_v44 = vpop.f32.mrf.mxu1 }
0x123b   : > { %v2661_v28 = vadd.f32 1e-06, %v2660_v44 }
0x123c   : > { %v5381_v16 = vpop.f32.mrf.mxu1 }
0x123d   : > { %5796 = vrcp.f32 %v2661_v28  ;;  %v2682_v7 = vadd.f32 1e-06, %v5381_v16 }
0x123e   : > { %v2673_v23 = vpop.f32.mrf.mxu1  ;;  %5798 = vrcp.f32 %v2666_v55 }
0x123f   : > { %v2674_v17 = vadd.f32 1e-06, %v2673_v23  ;;  %5800 = vrcp.f32 %v2669_v10  ;;  %v8982_v23 = vld [vmem:[#allocation26_spill] sm:$0xff] }
0x1240   : > { %v5382_v24 = vpop.f32.mrf.mxu1  ;;  %5802 = vrcp.f32 %v2682_v7 }
0x1241   : > { %v2685_v26 = vadd.f32 1e-06, %v5382_v24  ;;  %5804 = vrcp.f32 %v2674_v17  ;;  %v2590_v17 = vmul.f32 %v7698_v58, %v8982_v23  ;;  %v2593_v24 = vmul.f32 %v7704_v39, %v8983_v22  ;;  %v8987_v58 = vld [vmem:[#allocation19_spill] sm:$0xff] }
0x1242   : > { %v2676_v31 = vpop.f32.mrf.mxu1  ;;  %v2592_v39 = vmul.f32 %v7702_v8, %v8987_v58 }
0x1243   : > { %5806 = vrcp.f32 %v2685_v26  ;;  %v2677_v45 = vadd.f32 1e-06, %v2676_v31  ;;  %v2594_v26 = vmul.f32 %v7706_v12, %v8984_v56 }
0x1245   : > { %5808 = vrcp.f32 %v2677_v45  ;;  %v8985_v45 = vld [vmem:[#allocation18_spill] sm:$0xff] }
0x1246   : > { %v5795_v54 = vpop.eup %5794 }
0x1247   : > { %v7716_v19 = vmul.f32 %v5795_v54, %v2587_v6  ;;  %v2589_v54 = vmul.f32 %v7696_v33, %v8985_v45  ;;  %v2591_v6 = vmul.f32 %v7700_v1, %v8986_v34 }
0x124a   : > { %v5797_v9 = vpop.eup %5796 }
0x124b   : > { %v7718_v44 = vmul.f32 %v5797_v9, %v2588_v40  ;;  %v5799_v55 = vpop.eup %5798 }
0x124c   : > { %v5801_v28 = vpop.eup %5800  ;;  %v7747_v33 = vmul.f32 %v5799_v55, %v2589_v54 }
0x124d   : > { %v7722_v10 = vpack.c.bf16 %v7718_v44, %v7716_v19  ;;  %v5803_v16 = vpop.eup %5802  ;;  %v7740_v37 = vmul.f32 %v5801_v28, %v2590_v17 }
0x124e   : > { %v5805_v7 = vpop.eup %5804  ;;  %v7742_v12 = vmul.f32 %v5803_v16, %v2593_v24 }
0x124f   : > { %2741 = vmatmul.mubr.bf16.vlgmr.msra.gmra.mxu0 %v7722_v10  ;;  %5391 = vmatprep.mubr.bf16.mxu1 %v7722_v10  ;;  %v7749_v23 = vmul.f32 %v5805_v7, %v2591_v6  ;;  %v7759_v8 = vpack.c.bf16 %v7740_v37, %v7747_v33 }
0x1250   : > { %v5807_v31 = vpop.eup %5806  ;;  %2750 = vmatprep.mubr.bf16.mxu0 %v8907_v42  ;;  %3008 = vmatpush1.bf16.xpose.msra.mxu0 %v7459_v30 }
0x1251   : > { %v7744_v40 = vmul.f32 %v5807_v31, %v2594_v26  ;;  %3009 = vmatprep.subr.bf16.mxu0 %v7463_v62 }
0x1252   : > { %v5809_v9 = vpop.eup %5808 }
0x1253   : > { %v7753_v1 = vpack.c.bf16 %v7744_v40, %v7742_v12  ;;  %v7755_v22 = vmul.f32 %v5809_v9, %v2592_v39 }
0x1255   : > { %8988 = vst [vmem:[#allocation21_spill] sm:$0xff] %v7755_v22  ;;  %5383 = vmatprep.subr.bf16.mxu1 %v7753_v1  ;;  %v7764_v28 = vpack.c.bf16 %v7755_v22, %v7749_v23 }
0x1256   : > { %5384 = vmatpush3.bf16.xpose.msra.mxu1 %v7753_v1 }
0x1257   : > { %2751 = vmatmul.mubr.bf16.gmra.mxu0 %v7759_v8  ;;  %5385 = vmatprep.subr.bf16.mxu1 %v7764_v28 }
0x1258   : > { %2760 = vmatprep.mubr.bf16.mxu0 %v8907_v42  ;;  %3010 = vmatpush1.bf16.xpose.msra.mxu0 %v7468_v15 }
0x1259   : > { %3011 = vmatprep.subr.bf16.mxu0 %v7472_v20 }
0x125e   : > { %5386 = vmatpush3.bf16.xpose.msra.mxu1 %v7764_v28 }
0x125f   : > { %2761 = vmatmul.mubr.bf16.gmra.mxu0 %v7764_v28  ;;  %5387 = vmatprep.subr.bf16.mxu1 %v7759_v8 }
0x1260   : > { %2770 = vmatprep.mubr.bf16.mxu0 %v8907_v42  ;;  %3012 = vmatpush1.bf16.xpose.msra.mxu0 %v7476_v29 }
0x1261   : > { %3013 = vmatprep.subr.bf16.mxu0 %v7480_v32 }
0x1266   : > { %5388 = vmatpush3.bf16.xpose.msra.mxu1 %v7759_v8 }
0x1267   : > { %2771 = vmatmul.mubr.bf16.gmra.mxu0 %v7753_v1  ;;  %5389 = vmatprep.subr.bf16.mxu1 %v7722_v10 }
0x1268   : > { %3014 = vmatpush1.bf16.xpose.msra.mxu0 %v7484_v25 }
0x1269   : > { %3015 = vmatprep.subr.bf16.mxu0 %v7488_v3 }
0x126e   : > { %5390 = vmatpush3.bf16.xpose.msra.mxu1 %v7722_v10 }
0x126f   : > { %2902 = vmatprep.subr.bf16.mxu1 %v7654_v4 }
0x1270   : > { %3016 = vmatpush1.bf16.xpose.msra.mxu0 %v7492_v60 }
0x1271   : > { %3017 = vmatprep.subr.bf16.mxu0 %v7496_v2 }
0x1275   : > { %5392 = vmatmul.mubr.bf16.vlgmr.msra.gmra.mxu1 %v7759_v8 }
0x1276   : > { %5395 = vmatprep.mubr.bf16.mxu1 %v7764_v28  ;;  %2903 = vmatpush1.bf16.msra.mxu1 %v7659_v48 }
0x1277   : > { %2904 = vmatprep.subr.bf16.mxu1 %v7624_v14 }
0x1278   : > { %3018 = vmatpush1.bf16.xpose.msra.mxu0 %v7500_v38 }
0x1279   : > { %3019 = vmatprep.subr.bf16.mxu0 %v7504_v5 }
0x127a   : > { %2905 = vmatpush1.bf16.msra.mxu1 %v7629_v0 }
0x127b   : > { %2906 = vmatprep.subr.bf16.mxu1 %v7594_v36 }
0x127d   : > { %5396 = vmatmul.mubr.bf16.gmra.mxu1 %v7753_v1 }
0x127e   : > { %2907 = vmatpush1.bf16.msra.mxu1 %v7599_v41  ;;  %2926 = vmatprep.mubr.bf16.mxu1 %v8907_v42 }
0x127f   : > { %2908 = vmatprep.subr.bf16.mxu1 %v7565_v18 }
0x1280   : > { %3020 = vmatpush1.bf16.xpose.msra.mxu0 %v7508_v61 }
0x1281   : > { %3021 = vmatprep.subr.bf16.mxu0 %v7512_v63 }
0x1282   : > { %2909 = vmatpush1.bf16.msra.mxu1 %v7569_v50 }
0x1288   : > { %3022 = vmatpush1.bf16.xpose.msra.mxu0 %v8974_v21 }
0x1289   : > { %3262 = vmatprep.subr.bf16.mxu0 %v8975_v47 }
0x130f   : > { %v2742_v24 = vpop.f32.mrf.mxu0 }
0x1311   : > { %v2744_v56 = vpop.f32.mrf.mxu0 }
0x1313   : > { %v2746_v26 = vpop.f32.mrf.mxu0 }
0x1315   : > { %v2748_v31 = vpop.f32.mrf.mxu0 }
0x1317   : > { %v7811_v45 = vpop.f32.mrf.mxu0 }
0x1319   : > { %v7813_v34 = vpop.f32.mrf.mxu0 }
0x1335   : > { %v5393_v14 = vpop.f32.mrf.mxu1 }
0x1337   : > { %v2815_v36 = vpop.f32.mrf.mxu1 }
0x1339   : > { %v5394_v0 = vpop.f32.mrf.mxu1 }
0x133a   : > { %v2847_v16 = vpack.c.bf16 %v5394_v0, %v5393_v14 }
0x133b   : > { %v2818_v4 = vpop.f32.mrf.mxu1 }
0x133c   : > { %v2846_v48 = vpack.c.bf16 %v2818_v4, %v2815_v36  ;;  %v2756_v36 = vpop.f32.mrf.mxu0 }
0x133d   : > { %v5397_v41 = vpop.f32.mrf.mxu1 }
0x133e   : > { %2866 = vxpose.xlu0.c.b16.start [1/4] (short) (narrow) %v2846_v48, 64 }
0x133f   : > { %v2831_v55 = vpop.f32.mrf.mxu1 }
0x1341   : > { %v5398_v18 = vpop.f32.mrf.mxu1 }
0x1342   : > { %2867 = vxpose.xlu0.c.b16.cont [2/4] (short) (narrow) %v2847_v16, 64  ;;  %v2849_v63 = vpack.c.bf16 %v5398_v18, %v5397_v41  ;;  %v2758_v41 = vpop.f32.mrf.mxu0 }
0x1343   : > { %v2834_v61 = vpop.f32.mrf.mxu1 }
0x1344   : > { %v2848_v7 = vpack.c.bf16 %v2834_v61, %v2831_v55 }
0x1346   : > { %2868 = vxpose.xlu0.c.b16.cont [3/4] (short) (narrow) %v2848_v7, 64 }
0x134a   : > { %2869 = vxpose.xlu0.c.b16.end [4/4] (short) (narrow) %v2849_v63, 64  ;;  %v7815_v63 = vpop.f32.mrf.mxu0 }
0x13a0   : > { %v2874_v50 = vpop.trf.xlu0 }
0x13a1   : > { %5087 = vmatmul.mubr.msk.bf16.vlgmr.msra.gmra.mxu1 %vm665_vm0, %v2874_v50 }
0x13a2   : > { %2936 = vmatprep.mubr.bf16.mxu1 %v8907_v42 }
0x13a4   : > { %v2875_v21 = vpop.trf.xlu0 }
0x13a8   : > { %v2876_v47 = vpop.trf.xlu0 }
0x13a9   : > { %5088 = vmatmul.mubr.msk.bf16.gmra.mxu1 %vm665_vm0, %v2875_v21 }
0x13aa   : > { %2946 = vmatprep.mubr.bf16.mxu1 %v8907_v42 }
0x13ac   : > { %v2877_v17 = vpop.trf.xlu0 }
0x13b1   : > { %5089 = vmatmul.mubr.msk.bf16.gmra.mxu1 %vm665_vm0, %v2876_v47 }
0x13b2   : > { %2956 = vmatprep.mubr.bf16.mxu1 %v8907_v42 }
0x13b9   : > { %5090 = vmatmul.mubr.msk.bf16.gmra.mxu1 %vm665_vm0, %v2877_v17  ;;  %v7817_v17 = vpop.f32.mrf.mxu0 }
0x1461   : > { %v2928_v54 = vpop.f32.mrf.mxu1 }
0x1462   : > { %v2929_v39 = vadd.f32 1e-06, %v2928_v54 }
0x1463   : > { %v2930_v6 = vpop.f32.mrf.mxu1 }
0x1464   : > { %v2931_v58 = vadd.f32 1e-06, %v2930_v6 }
0x1465   : > { %v2932_v9 = vpop.f32.mrf.mxu1 }
0x1466   : > { %v2933_v14 = vadd.f32 1e-06, %v2932_v9  ;;  %5810 = vrcp.f32 %v2931_v58  ;;  %v2852_v9 = vmul.f32 %v2746_v26, %v7555_v13 }
0x1467   : > { %v2934_v0 = vpop.f32.mrf.mxu1 }
0x1468   : > { %5812 = vrcp.f32 %v2933_v14  ;;  %v2935_v4 = vadd.f32 1e-06, %v2934_v0 }
0x1469   : > { %5814 = vrcp.f32 %v2929_v39  ;;  %v2938_v48 = vpop.f32.mrf.mxu1 }
0x146a   : > { %5816 = vrcp.f32 %v2935_v4  ;;  %v2939_v18 = vadd.f32 1e-06, %v2938_v48  ;;  %v2851_v48 = vmul.f32 %v2744_v56, %v7557_v43 }
0x146b   : > { %v2940_v55 = vpop.f32.mrf.mxu1 }
0x146c   : > { %v2941_v16 = vadd.f32 1e-06, %v2940_v55  ;;  %v2853_v55 = vmul.f32 %v2748_v31, %v7559_v35 }
0x146d   : > { %v2942_v61 = vpop.f32.mrf.mxu1 }
0x146e   : > { %v2943_v7 = vadd.f32 1e-06, %v2942_v61  ;;  %5818 = vrcp.f32 %v2941_v16 }
0x146f   : > { %v2944_v50 = vpop.f32.mrf.mxu1 }
0x1470   : > { %5820 = vrcp.f32 %v2943_v7  ;;  %v2945_v21 = vadd.f32 1e-06, %v2944_v50  ;;  %v2766_v7 = vpop.f32.mrf.mxu0 }
0x1471   : > { %5822 = vrcp.f32 %v2939_v18  ;;  %v2948_v47 = vpop.f32.mrf.mxu1  ;;  %v2850_v18 = vmul.f32 %v2742_v24, %v7561_v27 }
0x1472   : > { %5824 = vrcp.f32 %v2945_v21  ;;  %v2949_v14 = vadd.f32 1e-06, %v2948_v47  ;;  %v2768_v27 = vpop.f32.mrf.mxu0 }
0x1473   : > { %v2950_v54 = vpop.f32.mrf.mxu1  ;;  %v5811_v6 = vpop.eup %5810 }
0x1474   : > { %v2951_v58 = vadd.f32 1e-06, %v2950_v54  ;;  %v7825_v22 = vmul.f32 %v5811_v6, %v2851_v48 }
0x1475   : > { %v5813_v39 = vpop.eup %5812  ;;  %v2952_v0 = vpop.f32.mrf.mxu1 }
0x1476   : > { %v5815_v4 = vpop.eup %5814  ;;  %v2953_v16 = vadd.f32 1e-06, %v2952_v0  ;;  %v7823_v50 = vmul.f32 %v5813_v39, %v2852_v9  ;;  %5826 = vrcp.f32 %v2951_v58  ;;  %v2856_v58 = vmul.f32 %v2756_v36, %v7583_v52 }
0x1477   : > { %v5817_v61 = vpop.eup %5816  ;;  %v2954_v21 = vpop.f32.mrf.mxu1  ;;  %v7829_v26 = vmul.f32 %v5815_v4, %v2850_v18  ;;  %v2855_v0 = vmul.f32 %v7813_v34, %v7586_v46  ;;  %v2857_v4 = vmul.f32 %v2758_v41, %v7588_v49  ;;  %v2860_v41 = vmul.f32 %v2766_v7, %v7613_v11 }
0x1478   : > { %5828 = vrcp.f32 %v2953_v16  ;;  %v2955_v54 = vadd.f32 1e-06, %v2954_v21  ;;  %v7827_v13 = vmul.f32 %v5817_v61, %v2853_v55  ;;  %v2854_v16 = vmul.f32 %v7811_v45, %v7590_v59  ;;  %v2772_v61 = vpop.f32.mrf.mxu0 }
0x1479   : > { %5830 = vrcp.f32 %v2949_v14  ;;  %v2958_v43 = vpop.f32.mrf.mxu1  ;;  %v7837_v24 = vpack.c.bf16 %v7823_v50, %v7829_v26 }
0x147a   : > { %5832 = vrcp.f32 %v2955_v54  ;;  %v7833_v35 = vpack.c.bf16 %v7827_v13, %v7825_v22  ;;  %v2959_v39 = vadd.f32 1e-06, %v2958_v43  ;;  %v2774_v59 = vpop.f32.mrf.mxu0  ;;  %v2859_v54 = vmul.f32 %v7817_v17, %v7616_v53 }
0x147b   : > { %v2960_v56 = vpop.f32.mrf.mxu1  ;;  %v5819_v31 = vpop.eup %5818  ;;  %v2861_v43 = vmul.f32 %v2768_v27, %v7618_v57  ;;  %v8990_v27 = vld [vmem:[#allocation29_spill] sm:$0xff] }
0x147c   : > { %v2961_v47 = vadd.f32 1e-06, %v2960_v56  ;;  %3039 = vmatprep.mubr.bf16.mxu0 %v7833_v35  ;;  %3104 = vmatprep.mubr.bf16.mxu1 %v7833_v35  ;;  %v7852_v21 = vmul.f32 %v5819_v31, %v2855_v0  ;;  %v2858_v56 = vmul.f32 %v7815_v63, %v7620_v51  ;;  %v2776_v31 = vpop.f32.mrf.mxu0  ;;  %v8989_v63 = vld [vmem:[#allocation28_spill] sm:$0xff] }
0x147d   : > { %v5821_v6 = vpop.eup %5820  ;;  %v2962_v9 = vpop.f32.mrf.mxu1  ;;  %3040 = vmatmul.mubr.bf16.vlgmr.msra.gmra.mxu0 %v7837_v24  ;;  %v2864_v17 = vmul.f32 %v2776_v31, %v8989_v63 }
0x147e   : > { %v5823_v14 = vpop.eup %5822  ;;  %v2963_v48 = vadd.f32 1e-06, %v2962_v9  ;;  %3263 = vmatpush1.bf16.msra.mxu0 %v7459_v30  ;;  %5834 = vrcp.f32 %v2961_v47  ;;  %v7850_v36 = vmul.f32 %v5821_v6, %v2856_v58  ;;  %v2778_v53 = vpop.f32.mrf.mxu0  ;;  %v2863_v58 = vmul.f32 %v2774_v59, %v8990_v27 }
0x147f   : > { %v5825_v55 = vpop.eup %5824  ;;  %v2964_v52 = vpop.f32.mrf.mxu1  ;;  %3264 = vmatprep.subr.bf16.mxu0 %v7463_v62  ;;  %v7856_v49 = vmul.f32 %v5823_v14, %v2854_v16  ;;  %v8992_v14 = vld [vmem:[#allocation31_spill] sm:$0xff] }
0x1480   : > { %5836 = vrcp.f32 %v2963_v48  ;;  %v2965_v18 = vadd.f32 1e-06, %v2964_v52  ;;  %v7854_v46 = vmul.f32 %v5825_v55, %v2857_v4  ;;  %v2862_v0 = vmul.f32 %v2772_v61, %v8992_v14  ;;  %v7923_v61 = vld [vmem:[%s6383_s29 + $0x10] ss:$8 sps:$4 sm:$0xff]  }
0x1481   : > { %5838 = vrcp.f32 %v2959_v39  ;;  %v7866_v62 = vpack.c.bf16 %v7850_v36, %v7856_v49  ;;  %v8991_v39 = vld [vmem:[#allocation30_spill] sm:$0xff] }
0x1482   : > { %5840 = vrcp.f32 %v2965_v18  ;;  %3265 = vmatpush1.bf16.msra.mxu0 %v7468_v15  ;;  %v7861_v30 = vpack.c.bf16 %v7854_v46, %v7852_v21  ;;  %v2865_v9 = vmul.f32 %v2778_v53, %v8991_v39 }
0x1483   : > { %3266 = vmatprep.subr.bf16.mxu0 %v7472_v20  ;;  %v5827_v45 = vpop.eup %5826 }
0x1484   : > { %3047 = vmatprep.mubr.bf16.mxu0 %v7861_v30  ;;  %v7880_v11 = vmul.f32 %v5827_v45, %v2859_v54 }
0x1485   : > { %v5829_v34 = vpop.eup %5828  ;;  %3048 = vmatmul.mubr.bf16.gmra.mxu0 %v7866_v62 }
0x1486   : > { %v5831_v15 = vpop.eup %5830  ;;  %3267 = vmatpush1.bf16.msra.mxu0 %v7476_v29  ;;  %v7878_v47 = vmul.f32 %v5829_v34, %v2860_v41 }
0x1487   : > { %v5833_v20 = vpop.eup %5832  ;;  %3268 = vmatprep.subr.bf16.mxu0 %v7480_v32  ;;  %v7884_v6 = vmul.f32 %v5831_v15, %v2858_v56 }
0x1488   : > { %v7882_v7 = vmul.f32 %v5833_v20, %v2861_v43 }
0x1489   : > { %v7894_v32 = vpack.c.bf16 %v7878_v47, %v7884_v6 }
0x148a   : > { %3269 = vmatpush1.bf16.msra.mxu0 %v7484_v25  ;;  %v7889_v29 = vpack.c.bf16 %v7882_v7, %v7880_v11 }
0x148b   : > { %3270 = vmatprep.subr.bf16.mxu0 %v7488_v3  ;;  %v5835_v57 = vpop.eup %5834 }
0x148c   : > { %3055 = vmatprep.mubr.bf16.mxu0 %v7889_v29  ;;  %v7906_v48 = vmul.f32 %v5835_v57, %v2863_v58 }
0x148d   : > { %v5837_v51 = vpop.eup %5836  ;;  %3056 = vmatmul.mubr.bf16.gmra.mxu0 %v7894_v32 }
0x148e   : > { %v5839_v25 = vpop.eup %5838  ;;  %3271 = vmatpush1.bf16.msra.mxu0 %v7492_v60  ;;  %v7904_v4 = vmul.f32 %v5837_v51, %v2864_v17 }
0x148f   : > { %v5841_v3 = vpop.eup %5840  ;;  %3272 = vmatprep.subr.bf16.mxu0 %v7496_v2  ;;  %v7910_v16 = vmul.f32 %v5839_v25, %v2862_v0 }
0x1490   : > { %v7908_v55 = vmul.f32 %v5841_v3, %v2865_v9 }
0x1491   : > { %v7918_v2 = vpack.c.bf16 %v7904_v4, %v7910_v16 }
0x1492   : > { %3273 = vmatpush1.bf16.msra.mxu0 %v7500_v38  ;;  %v3006_v60 = vpack.c.bf16 %v7908_v55, %v7906_v48  ;;  %v7928_v38 = vld [vmem:[%s6383_s29 + $0x4] ss:$8 sps:$4 sm:$0xff]  }
0x1493   : > { %3274 = vmatprep.subr.bf16.mxu0 %v7504_v5  ;;  %v7933_v5 = vld [vmem:[%s6383_s29] ss:$8 sps:$4 sm:$0xff]  }
0x1494   : > { %3063 = vmatprep.mubr.bf16.mxu0 %v3006_v60  ;;  %3080 = vmatprep.subr.bf16.mxu1 %v3006_v60  ;;  %8993 = vst [vmem:[#allocation27_spill] sm:$0xff] %v7933_v5 }
0x1495   : > { %3064 = vmatmul.mubr.bf16.gmra.mxu0 %v7918_v2  ;;  %3081 = vmatpush1.bf16.xpose.msra.mxu1 %v7918_v2 }
0x1496   : > { %3275 = vmatpush1.bf16.msra.mxu0 %v7923_v61  ;;  %3082 = vmatprep.subr.bf16.mxu1 %v7889_v29 }
0x1497   : > { %3276 = vmatprep.subr.bf16.mxu0 %v7928_v38  ;;  %3294 = vmatprep.mubr.bf16.mxu0 %v8907_v42 }
0x149a   : > { %3277 = vmatpush1.bf16.msra.mxu0 %v7933_v5 }
0x149b   : > { %3456 = vmatprep.subr.bf16.mxu0 %v3006_v60 }
0x149d   : > { %3083 = vmatpush1.bf16.xpose.msra.mxu1 %v7894_v32 }
0x149e   : > { %3084 = vmatprep.subr.bf16.mxu1 %v7861_v30 }
0x14a5   : > { %3085 = vmatpush1.bf16.xpose.msra.mxu1 %v7866_v62 }
0x14a6   : > { %3086 = vmatprep.subr.bf16.mxu1 %v7833_v35 }
0x14ad   : > { %3087 = vmatpush1.bf16.xpose.msra.mxu1 %v7837_v24 }
0x14ae   : > { %5399 = vmatprep.subr.bf16.mxu1 %v7753_v1 }
0x14b4   : > { %3105 = vmatmul.mubr.bf16.vlgmr.msra.gmra.mxu1 %v7837_v24 }
0x14b5   : > { %3112 = vmatprep.mubr.bf16.mxu1 %v7861_v30  ;;  %5400 = vmatpush3.bf16.msra.mxu1 %v7753_v1 }
0x14b6   : > { %5401 = vmatprep.subr.bf16.mxu1 %v7764_v28 }
0x14b9   : > { %5402 = vmatpush3.bf16.msra.mxu1 %v7764_v28 }
0x14ba   : > { %5403 = vmatprep.subr.bf16.mxu1 %v7759_v8 }
0x14bc   : > { %3113 = vmatmul.mubr.bf16.gmra.mxu1 %v7866_v62 }
0x14bd   : > { %3120 = vmatprep.mubr.bf16.mxu1 %v7889_v29  ;;  %5404 = vmatpush3.bf16.msra.mxu1 %v7759_v8 }
0x14be   : > { %5405 = vmatprep.subr.bf16.mxu1 %v7722_v10 }
0x14c1   : > { %5406 = vmatpush3.bf16.msra.mxu1 %v7722_v10 }
0x14c4   : > { %3121 = vmatmul.mubr.bf16.gmra.mxu1 %v7894_v32 }
0x14c5   : > { %3128 = vmatprep.mubr.bf16.mxu1 %v3006_v60 }
0x14cc   : > { %3129 = vmatmul.mubr.bf16.gmra.mxu1 %v7918_v2 }
0x153d   : > { %v7955_v1 = vpop.f32.mrf.mxu0 }
0x153f   : > { %v3043_v28 = vpop.f32.mrf.mxu0 }
0x1541   : > { %v7957_v52 = vpop.f32.mrf.mxu0 }
0x1543   : > { %v3046_v18 = vpop.f32.mrf.mxu0 }
0x1545   : > { %v7959_v59 = vpop.f32.mrf.mxu0 }
0x1547   : > { %v3051_v45 = vpop.f32.mrf.mxu0 }
0x1549   : > { %v7961_v34 = vpop.f32.mrf.mxu0 }
0x154b   : > { %v3054_v8 = vpop.f32.mrf.mxu0 }
0x154d   : > { %v7963_v41 = vpop.f32.mrf.mxu0 }
0x154f   : > { %v3059_v10 = vpop.f32.mrf.mxu0 }
0x1551   : > { %v7965_v15 = vpop.f32.mrf.mxu0 }
0x1553   : > { %v3062_v54 = vpop.f32.mrf.mxu0 }
0x1555   : > { %v7967_v43 = vpop.f32.mrf.mxu0 }
0x1557   : > { %v3067_v20 = vpop.f32.mrf.mxu0 }
0x1559   : > { %v7969_v56 = vpop.f32.mrf.mxu0 }
0x155b   : > { %v3070_v31 = vpop.f32.mrf.mxu0 }
0x1574   : > { %v3106_v53 = vpop.f32.mrf.mxu1 }
0x1576   : > { %v3108_v57 = vpop.f32.mrf.mxu1 }
0x1578   : > { %v3109_v51 = vpop.f32.mrf.mxu1 }
0x1579   : > { %v3137_v63 = vpack.c.bf16 %v3109_v51, %v3106_v53 }
0x157a   : > { %v3111_v17 = vpop.f32.mrf.mxu1 }
0x157b   : > { %3149 = vxpose.xlu1.c.b16.start [1/4] (short) (narrow) %v3137_v63, 64 }
0x157c   : > { %v3114_v25 = vpop.f32.mrf.mxu1 }
0x157e   : > { %v3116_v27 = vpop.f32.mrf.mxu1 }
0x1580   : > { %v3117_v58 = vpop.f32.mrf.mxu1 }
0x1581   : > { %v3138_v39 = vpack.c.bf16 %v3117_v58, %v3114_v25 }
0x1582   : > { %v3119_v9 = vpop.f32.mrf.mxu1 }
0x1583   : > { %3150 = vxpose.xlu1.c.b16.cont [2/4] (short) (narrow) %v3138_v39, 64 }
0x1584   : > { %v3122_v3 = vpop.f32.mrf.mxu1 }
0x1586   : > { %v3124_v14 = vpop.f32.mrf.mxu1 }
0x1588   : > { %v3125_v0 = vpop.f32.mrf.mxu1 }
0x1589   : > { %v3139_v60 = vpack.c.bf16 %v3125_v0, %v3122_v3 }
0x158a   : > { %v3127_v28 = vpop.f32.mrf.mxu1 }
0x158b   : > { %3151 = vxpose.xlu1.c.b16.cont [3/4] (short) (narrow) %v3139_v60, 64 }
0x158c   : > { %v3130_v18 = vpop.f32.mrf.mxu1 }
0x158e   : > { %v3132_v45 = vpop.f32.mrf.mxu1 }
0x1590   : > { %v3133_v8 = vpop.f32.mrf.mxu1 }
0x1591   : > { %v3140_v10 = vpack.c.bf16 %v3133_v8, %v3130_v18 }
0x1592   : > { %v3135_v54 = vpop.f32.mrf.mxu1 }
0x1593   : > { %3152 = vxpose.xlu1.c.b16.end [4/4] (short) (narrow) %v3140_v10, 64  ;;  %v3141_v54 = vmul.f32 %v7955_v1, %v7716_v19  ;;  %v3147_v19 = vmul.f32 %v7967_v43, %v7742_v12 }
0x15e9   : > { %v3157_v20 = vpop.trf.xlu1 }
0x15ea   : > { %5407 = vmatprep.mubr.msk.bf16.mxu1 %vm665_vm0, %v3157_v20  ;;  %v3142_v20 = vmul.f32 %v7957_v52, %v7718_v44  ;;  %v3148_v44 = vmul.f32 %v7969_v56, %v7744_v40  ;;  %v3143_v52 = vmul.f32 %v7959_v59, %v7747_v33 }
0x15ed   : > { %v3158_v31 = vpop.trf.xlu1 }
0x15ee   : > { %5408 = vmatmul.mubr.msk.bf16.vlgmr.msra.gmra.mxu1 %vm665_vm0, %v3158_v31 }
0x15f1   : > { %v3159_v53 = vpop.trf.xlu1 }
0x15f2   : > { %5411 = vmatprep.mubr.msk.bf16.mxu1 %vm665_vm0, %v3159_v53 }
0x15f5   : > { %v3160_v57 = vpop.trf.xlu1 }
0x15f6   : > { %5412 = vmatmul.mubr.msk.bf16.gmra.mxu1 %vm665_vm0, %v3160_v57 }
0x16ae   : > { %v5409_v51 = vpop.f32.mrf.mxu1 }
0x16af   : > { %v3220_v58 = vadd.f32 1e-06, %v5409_v51 }
0x16b0   : > { %v3211_v63 = vpop.f32.mrf.mxu1 }
0x16b1   : > { %v3212_v17 = vadd.f32 1e-06, %v3211_v63 }
0x16b2   : > { %v5410_v25 = vpop.f32.mrf.mxu1 }
0x16b3   : > { %5842 = vrcp.f32 %v3212_v17  ;;  %v3223_v9 = vadd.f32 1e-06, %v5410_v25 }
0x16b4   : > { %v3214_v27 = vpop.f32.mrf.mxu1 }
0x16b5   : > { %v3215_v39 = vadd.f32 1e-06, %v3214_v27 }
0x16b6   : > { %v5413_v3 = vpop.f32.mrf.mxu1 }
0x16b7   : > { %5844 = vrcp.f32 %v3215_v39  ;;  %v3236_v14 = vadd.f32 1e-06, %v5413_v3  ;;  %v3145_v39 = vmul.f32 %v7963_v41, %v7749_v23  ;;  %v8079_v3 = vld [vmem:[%s6383_s29 + $0x40] ss:$8 sps:$4 sm:$0xff]  }
0x16b8   : > { %v3227_v0 = vpop.f32.mrf.mxu1  ;;  %5846 = vrcp.f32 %v3220_v58  ;;  %v3144_v58 = vmul.f32 %v7961_v34, %v7740_v37  ;;  %v8997_v37 = vld [vmem:[#allocation21_spill] sm:$0xff] }
0x16b9   : > { %v3228_v60 = vadd.f32 1e-06, %v3227_v0  ;;  %5848 = vrcp.f32 %v3223_v9  ;;  %v3146_v12 = vmul.f32 %v7965_v15, %v8997_v37  ;;  %v8071_v15 = vld [vmem:[%s6383_s29 + $0x50] ss:$8 sps:$4 sm:$0xff]   ;;  %v8075_v9 = vld [vmem:[%s6383_s29 + $0x44] ss:$8 sps:$4 sm:$0xff]  }
0x16ba   : > { %v5414_v28 = vpop.f32.mrf.mxu1  ;;  %5850 = vrcp.f32 %v3236_v14  ;;  %v8083_v14 = vld [vmem:[%s6383_s29 + $0x34] ss:$8 sps:$4 sm:$0xff]   ;;  %v8087_v0 = vld [vmem:[%s6383_s29 + $0x30] ss:$8 sps:$4 sm:$0xff]  }
0x16bb   : > { %v3239_v18 = vadd.f32 1e-06, %v5414_v28  ;;  %5852 = vrcp.f32 %v3228_v60  ;;  %v8091_v60 = vld [vmem:[%s6383_s29 + $0x24] ss:$8 sps:$4 sm:$0xff]   ;;  %v8095_v28 = vld [vmem:[%s6383_s29 + $0x20] ss:$8 sps:$4 sm:$0xff]  }
0x16bc   : > { %v3230_v45 = vpop.f32.mrf.mxu1 }
0x16bd   : > { %5854 = vrcp.f32 %v3239_v18  ;;  %v3231_v8 = vadd.f32 1e-06, %v3230_v45  ;;  %v8099_v18 = vld [vmem:[%s6383_s29 + $0x14] ss:$8 sps:$4 sm:$0xff]  }
0x16bf   : > { %5856 = vrcp.f32 %v3231_v8 }
0x16c0   : > { %v5843_v10 = vpop.eup %5842 }
0x16c1   : > { %v7979_v53 = vmul.f32 %v5843_v10, %v3141_v54 }
0x16c3   : > { %8994 = vst [vmem:[#allocation17_spill] sm:$0xff] %v7979_v53 }
0x16c4   : > { %v5845_v31 = vpop.eup %5844 }
0x16c5   : > { %v7981_v57 = vmul.f32 %v5845_v31, %v3142_v20  ;;  %v5847_v51 = vpop.eup %5846 }
0x16c6   : > { %v5849_v63 = vpop.eup %5848  ;;  %v8010_v33 = vmul.f32 %v5847_v51, %v3143_v52 }
0x16c7   : > { %8995 = vst [vmem:[#allocation22_spill] sm:$0xff] %v7981_v57  ;;  %v7985_v17 = vpack.c.bf16 %v7981_v57, %v7979_v53  ;;  %v5851_v25 = vpop.eup %5850  ;;  %v8003_v34 = vmul.f32 %v5849_v63, %v3144_v58 }
0x16c8   : > { %v5853_v27 = vpop.eup %5852  ;;  %v8005_v40 = vmul.f32 %v5851_v25, %v3147_v19  ;;  %9001 = vst [vmem:[#allocation26_spill] sm:$0xff] %v8010_v33 }
0x16c9   : > { %8996 = vst [vmem:[#allocation16_spill] sm:$0xff] %v7985_v17  ;;  %3295 = vmatmul.mubr.bf16.vlgmr.msra.gmra.mxu0 %v7985_v17  ;;  %5423 = vmatprep.mubr.bf16.mxu1 %v7985_v17  ;;  %8998 = vst [vmem:[#allocation25_spill] sm:$0xff] %v8003_v34  ;;  %v8012_v59 = vmul.f32 %v5853_v27, %v3145_v39  ;;  %v8023_v41 = vpack.c.bf16 %v8003_v34, %v8010_v33 }
0x16ca   : > { %v5855_v1 = vpop.eup %5854  ;;  %3457 = vmatpush1.bf16.msra.mxu0 %v7918_v2  ;;  %3304 = vmatprep.mubr.bf16.mxu0 %v8907_v42  ;;  %8999 = vst [vmem:[#allocation23_spill] sm:$0xff] %v8005_v40 }
0x16cb   : > { %v8007_v43 = vmul.f32 %v5855_v1, %v3148_v44  ;;  %3458 = vmatprep.subr.bf16.mxu0 %v7889_v29  ;;  %9002 = vst [vmem:[#allocation14_spill] sm:$0xff] %v8012_v59  ;;  %9005 = vst [vmem:[#allocation20_spill] sm:$0xff] %v8023_v41 }
0x16cc   : > { %v5857_v56 = vpop.eup %5856 }
0x16cd   : > { %9000 = vst [vmem:[#allocation24_spill] sm:$0xff] %v8007_v43  ;;  %v8016_v23 = vpack.c.bf16 %v8007_v43, %v8005_v40  ;;  %v8018_v2 = vmul.f32 %v5857_v56, %v3146_v12 }
0x16ce   : > { %3459 = vmatpush1.bf16.msra.mxu0 %v7894_v32  ;;  %v8067_v32 = vld [vmem:[%s6383_s29 + $0x54] ss:$8 sps:$4 sm:$0xff]  }
0x16cf   : > { %9003 = vst [vmem:[#allocation15_spill] sm:$0xff] %v8016_v23  ;;  %9004 = vst [vmem:[#allocation18_spill] sm:$0xff] %v8018_v2  ;;  %v8027_v29 = vpack.c.bf16 %v8018_v2, %v8012_v59  ;;  %3460 = vmatprep.subr.bf16.mxu0 %v7861_v30  ;;  %5415 = vmatprep.subr.bf16.mxu1 %v8016_v23  ;;  %v8058_v30 = vld [vmem:[%s6383_s29 + $0x64] ss:$8 sps:$4 sm:$0xff]  }
0x16d0   : > { %5416 = vmatpush3.bf16.xpose.msra.mxu1 %v8016_v23 }
0x16d1   : > { %9006 = vst [vmem:[#allocation19_spill] sm:$0xff] %v8027_v29  ;;  %3305 = vmatmul.mubr.bf16.gmra.mxu0 %v8023_v41  ;;  %5417 = vmatprep.subr.bf16.mxu1 %v8027_v29 }
0x16d2   : > { %3461 = vmatpush1.bf16.msra.mxu0 %v7866_v62  ;;  %3314 = vmatprep.mubr.bf16.mxu0 %v8907_v42  ;;  %v8063_v62 = vld [vmem:[%s6383_s29 + $0x60] ss:$8 sps:$4 sm:$0xff]  }
0x16d3   : > { %3462 = vmatprep.subr.bf16.mxu0 %v7833_v35  ;;  %v8048_v35 = vld [vmem:[%s6383_s29 + $0x74] ss:$8 sps:$4 sm:$0xff]  }
0x16d4   : > { %9007 = vst [vmem:[#allocation28_spill] sm:$0xff] %v8048_v35 }
0x16d6   : > { %3463 = vmatpush1.bf16.msra.mxu0 %v7837_v24  ;;  %v8054_v24 = vld [vmem:[%s6383_s29 + $0x70] ss:$8 sps:$4 sm:$0xff]  }
0x16d8   : > { %5418 = vmatpush3.bf16.xpose.msra.mxu1 %v8027_v29 }
0x16d9   : > { %3315 = vmatmul.mubr.bf16.gmra.mxu0 %v8027_v29  ;;  %5419 = vmatprep.subr.bf16.mxu1 %v8023_v41 }
0x16da   : > { %3324 = vmatprep.mubr.bf16.mxu0 %v8907_v42 }
0x16e0   : > { %5420 = vmatpush3.bf16.xpose.msra.mxu1 %v8023_v41 }
0x16e1   : > { %3325 = vmatmul.mubr.bf16.gmra.mxu0 %v8016_v23  ;;  %5421 = vmatprep.subr.bf16.mxu1 %v7985_v17 }
0x16e2   : > { %3480 = vmatprep.mubr.bf16.mxu0 %v8907_v42 }
0x16e8   : > { %5422 = vmatpush3.bf16.xpose.msra.mxu1 %v7985_v17 }
0x16e9   : > { %3561 = vmatprep.subr.bf16.mxu1 %v8048_v35 }
0x16ef   : > { %5424 = vmatmul.mubr.bf16.vlgmr.msra.gmra.mxu1 %v8023_v41 }
0x16f0   : > { %5427 = vmatprep.mubr.bf16.mxu1 %v8027_v29  ;;  %3562 = vmatpush1.bf16.xpose.msra.mxu1 %v8054_v24 }
0x16f1   : > { %3563 = vmatprep.subr.bf16.mxu1 %v8058_v30 }
0x16f7   : > { %5428 = vmatmul.mubr.bf16.gmra.mxu1 %v8016_v23 }
0x16f8   : > { %3564 = vmatpush1.bf16.xpose.msra.mxu1 %v8063_v62 }
0x16f9   : > { %3565 = vmatprep.subr.bf16.mxu1 %v8067_v32 }
0x1700   : > { %3566 = vmatpush1.bf16.xpose.msra.mxu1 %v8071_v15 }
0x1701   : > { %3567 = vmatprep.subr.bf16.mxu1 %v8075_v9 }
0x1708   : > { %3568 = vmatpush1.bf16.xpose.msra.mxu1 %v8079_v3 }
0x1709   : > { %3569 = vmatprep.subr.bf16.mxu1 %v8083_v14 }
0x1710   : > { %3570 = vmatpush1.bf16.xpose.msra.mxu1 %v8087_v0 }
0x1711   : > { %3571 = vmatprep.subr.bf16.mxu1 %v8091_v60 }
0x1718   : > { %3572 = vmatpush1.bf16.xpose.msra.mxu1 %v8095_v28 }
0x1719   : > { %3573 = vmatprep.subr.bf16.mxu1 %v8099_v18 }
0x1720   : > { %3574 = vmatpush1.bf16.xpose.msra.mxu1 %v7923_v61 }
0x1721   : > { %3575 = vmatprep.subr.bf16.mxu1 %v7928_v38 }
0x1728   : > { %3576 = vmatpush1.bf16.xpose.msra.mxu1 %v7933_v5 }
0x1729   : > { %3816 = vmatprep.subr.bf16.mxu1 %v8048_v35 }
0x1789   : > { %v3296_v37 = vpop.f32.mrf.mxu0 }
0x178b   : > { %v3298_v12 = vpop.f32.mrf.mxu0 }
0x178d   : > { %v3300_v56 = vpop.f32.mrf.mxu0 }
0x17af   : > { %v5425_v45 = vpop.f32.mrf.mxu1 }
0x17b1   : > { %v3369_v8 = vpop.f32.mrf.mxu1 }
0x17b3   : > { %v5426_v10 = vpop.f32.mrf.mxu1 }
0x17b4   : > { %v3401_v63 = vpack.c.bf16 %v5426_v10, %v5425_v45  ;;  %v3302_v45 = vpop.f32.mrf.mxu0 }
0x17b5   : > { %v3372_v54 = vpop.f32.mrf.mxu1 }
0x17b6   : > { %v3400_v20 = vpack.c.bf16 %v3372_v54, %v3369_v8  ;;  %v8113_v8 = vpop.f32.mrf.mxu0 }
0x17b7   : > { %v5429_v31 = vpop.f32.mrf.mxu1 }
0x17b8   : > { %3420 = vxpose.xlu0.c.b16.start [1/4] (short) (narrow) %v3400_v20, 64  ;;  %v8115_v10 = vpop.f32.mrf.mxu0 }
0x17b9   : > { %v3385_v51 = vpop.f32.mrf.mxu1 }
0x17ba   : > { %v8117_v54 = vpop.f32.mrf.mxu0 }
0x17bb   : > { %v5430_v25 = vpop.f32.mrf.mxu1 }
0x17bc   : > { %3421 = vxpose.xlu0.c.b16.cont [2/4] (short) (narrow) %v3401_v63, 64  ;;  %v3403_v19 = vpack.c.bf16 %v5430_v25, %v5429_v31  ;;  %v8119_v20 = vpop.f32.mrf.mxu0 }
0x17bd   : > { %v3388_v27 = vpop.f32.mrf.mxu1 }
0x17be   : > { %v3402_v58 = vpack.c.bf16 %v3388_v27, %v3385_v51  ;;  %v8121_v31 = vpop.f32.mrf.mxu0 }
0x17c0   : > { %3422 = vxpose.xlu0.c.b16.cont [3/4] (short) (narrow) %v3402_v58, 64  ;;  %v8123_v51 = vpop.f32.mrf.mxu0 }
0x17c2   : > { %v8125_v63 = vpop.f32.mrf.mxu0 }
0x17c4   : > { %3423 = vxpose.xlu0.c.b16.end [4/4] (short) (narrow) %v3403_v19, 64  ;;  %v8127_v25 = vpop.f32.mrf.mxu0 }
0x17c6   : > { %v8129_v27 = vpop.f32.mrf.mxu0 }
0x17c8   : > { %v8131_v58 = vpop.f32.mrf.mxu0 }
0x17ca   : > { %v8133_v19 = vpop.f32.mrf.mxu0 }
0x181a   : > { %v3428_v44 = vpop.trf.xlu0 }
0x181b   : > { %5095 = vmatmul.mubr.msk.bf16.vlgmr.msra.gmra.mxu0 %vm665_vm0, %v3428_v44  ;;  %v8135_v44 = vpop.f32.mrf.mxu0 }
0x181c   : > { %3490 = vmatprep.mubr.bf16.mxu0 %v8907_v42 }
0x181e   : > { %v3429_v1 = vpop.trf.xlu0 }
0x1822   : > { %v3430_v52 = vpop.trf.xlu0 }
0x1823   : > { %5096 = vmatmul.mubr.msk.bf16.gmra.mxu0 %vm665_vm0, %v3429_v1 }
0x1824   : > { %3500 = vmatprep.mubr.bf16.mxu0 %v8907_v42 }
0x1826   : > { %v3431_v39 = vpop.trf.xlu0 }
0x182b   : > { %5097 = vmatmul.mubr.msk.bf16.gmra.mxu0 %vm665_vm0, %v3430_v52 }
0x182c   : > { %3510 = vmatprep.mubr.bf16.mxu0 %v8907_v42 }
0x1833   : > { %5098 = vmatmul.mubr.msk.bf16.gmra.mxu0 %vm665_vm0, %v3431_v39 }
0x18db   : > { %v3482_v1 = vpop.f32.mrf.mxu0 }
0x18dc   : > { %v3483_v2 = vadd.f32 1e-06, %v3482_v1 }
0x18dd   : > { %v3484_v52 = vpop.f32.mrf.mxu0 }
0x18de   : > { %v3485_v39 = vadd.f32 1e-06, %v3484_v52 }
0x18df   : > { %v3486_v59 = vpop.f32.mrf.mxu0 }
0x18e0   : > { %v3487_v33 = vadd.f32 1e-06, %v3486_v59  ;;  %5858 = vrcp.f32 %v3485_v39 }
0x18e1   : > { %v3488_v43 = vpop.f32.mrf.mxu0 }
0x18e2   : > { %5860 = vrcp.f32 %v3487_v33  ;;  %v3489_v40 = vadd.f32 1e-06, %v3488_v43  ;;  %v3406_v43 = vmul.f32 %v3300_v56, %v7823_v50 }
0x18e3   : > { %5862 = vrcp.f32 %v3483_v2  ;;  %v3492_v34 = vpop.f32.mrf.mxu0 }
0x18e4   : > { %5864 = vrcp.f32 %v3489_v40  ;;  %v3493_v17 = vadd.f32 1e-06, %v3492_v34  ;;  %v3407_v34 = vmul.f32 %v3302_v45, %v7827_v13 }
0x18e5   : > { %v3494_v57 = vpop.f32.mrf.mxu0 }
0x18e6   : > { %v3495_v53 = vadd.f32 1e-06, %v3494_v57  ;;  %v3405_v57 = vmul.f32 %v3298_v12, %v7825_v22 }
0x18e7   : > { %v3496_v41 = vpop.f32.mrf.mxu0 }
0x18e8   : > { %v3497_v29 = vadd.f32 1e-06, %v3496_v41  ;;  %5866 = vrcp.f32 %v3495_v53 }
0x18e9   : > { %v3498_v23 = vpop.f32.mrf.mxu0 }
0x18ea   : > { %5868 = vrcp.f32 %v3497_v29  ;;  %v3499_v35 = vadd.f32 1e-06, %v3498_v23  ;;  %v3404_v23 = vmul.f32 %v3296_v37, %v7829_v26 }
0x18eb   : > { %5870 = vrcp.f32 %v3493_v17  ;;  %v3502_v1 = vpop.f32.mrf.mxu0 }
0x18ec   : > { %5872 = vrcp.f32 %v3499_v35  ;;  %v3503_v2 = vadd.f32 1e-06, %v3502_v1  ;;  %v3410_v1 = vmul.f32 %v8117_v54, %v7850_v36 }
0x18ed   : > { %v3504_v59 = vpop.f32.mrf.mxu0  ;;  %v5859_v52 = vpop.eup %5858 }
0x18ee   : > { %v3505_v39 = vadd.f32 1e-06, %v3504_v59  ;;  %v8143_v59 = vmul.f32 %v5859_v52, %v3405_v57 }
0x18ef   : > { %v5861_v33 = vpop.eup %5860  ;;  %v3506_v40 = vpop.f32.mrf.mxu0 }
0x18f0   : > { %v5863_v5 = vpop.eup %5862  ;;  %v3507_v53 = vadd.f32 1e-06, %v3506_v40  ;;  %v8141_v17 = vmul.f32 %v5861_v33, %v3406_v43  ;;  %5874 = vrcp.f32 %v3505_v39  ;;  %v3409_v43 = vmul.f32 %v8115_v10, %v7852_v21 }
0x18f1   : > { %v5865_v41 = vpop.eup %5864  ;;  %v3508_v29 = vpop.f32.mrf.mxu0  ;;  %v8147_v56 = vmul.f32 %v5863_v5, %v3404_v23  ;;  %v3414_v23 = vmul.f32 %v8125_v63, %v7878_v47 }
0x18f2   : > { %5876 = vrcp.f32 %v3507_v53  ;;  %v3509_v35 = vadd.f32 1e-06, %v3508_v29  ;;  %v8145_v50 = vmul.f32 %v5865_v41, %v3407_v34  ;;  %v3408_v34 = vmul.f32 %v8113_v8, %v7856_v49 }
0x18f3   : > { %5878 = vrcp.f32 %v3503_v2  ;;  %v3512_v22 = vpop.f32.mrf.mxu0  ;;  %v8155_v26 = vpack.c.bf16 %v8141_v17, %v8147_v56  ;;  %v3411_v2 = vmul.f32 %v8119_v20, %v7854_v46 }
0x18f4   : > { %5880 = vrcp.f32 %v3509_v35  ;;  %v8151_v13 = vpack.c.bf16 %v8145_v50, %v8143_v59  ;;  %v3513_v52 = vadd.f32 1e-06, %v3512_v22  ;;  %v3413_v35 = vmul.f32 %v8123_v51, %v7880_v11 }
0x18f5   : > { %v3514_v37 = vpop.f32.mrf.mxu0  ;;  %v5867_v12 = vpop.eup %5866  ;;  %v3415_v22 = vmul.f32 %v8127_v25, %v7882_v7  ;;  %v3418_v51 = vmul.f32 %v8133_v19, %v7904_v4 }
0x18f6   : > { %v3515_v45 = vadd.f32 1e-06, %v3514_v37  ;;  %3593 = vmatprep.mubr.bf16.mxu1 %v8151_v13  ;;  %3658 = vmatprep.mubr.bf16.mxu0 %v8151_v13  ;;  %v8172_v41 = vmul.f32 %v5867_v12, %v3409_v43  ;;  %v3412_v12 = vmul.f32 %v8121_v31, %v7884_v6 }
0x18f7   : > { %v5869_v5 = vpop.eup %5868  ;;  %v3516_v39 = vpop.f32.mrf.mxu0  ;;  %3594 = vmatmul.mubr.bf16.vlgmr.msra.gmra.mxu1 %v8155_v26 }
0x18f8   : > { %v5871_v33 = vpop.eup %5870  ;;  %v3517_v40 = vadd.f32 1e-06, %v3516_v39  ;;  %3817 = vmatpush1.bf16.msra.mxu1 %v8054_v24  ;;  %5882 = vrcp.f32 %v3515_v45  ;;  %v8169_v54 = vmul.f32 %v5869_v5, %v3410_v1  ;;  %v3417_v1 = vmul.f32 %v8131_v58, %v7906_v48  ;;  %v9014_v58 = vld [vmem:[#allocation15_spill] sm:$0xff] }
0x18f9   : > { %v5873_v57 = vpop.eup %5872  ;;  %v3518_v36 = vpop.f32.mrf.mxu0  ;;  %3818 = vmatprep.subr.bf16.mxu1 %v8058_v30  ;;  %v8176_v46 = vmul.f32 %v5871_v33, %v3408_v34  ;;  %v3416_v33 = vmul.f32 %v8129_v27, %v7910_v16  ;;  %v9012_v16 = vld [vmem:[#allocation27_spill] sm:$0xff]  ;;  %v9013_v27 = vld [vmem:[#allocation28_spill] sm:$0xff] }
0x18fa   : > { %5884 = vrcp.f32 %v3517_v40  ;;  %v3519_v53 = vadd.f32 1e-06, %v3518_v36  ;;  %v8174_v21 = vmul.f32 %v5873_v57, %v3411_v2  ;;  %v9016_v40 = vld [vmem:[#allocation20_spill] sm:$0xff] }
0x18fb   : > { %5886 = vrcp.f32 %v3513_v52  ;;  %v8185_v49 = vpack.c.bf16 %v8169_v54, %v8176_v46  ;;  %v3419_v52 = vmul.f32 %v8135_v44, %v7908_v55  ;;  %v9015_v44 = vld [vmem:[#allocation19_spill] sm:$0xff]  ;;  %v9017_v57 = vld [vmem:[#allocation16_spill] sm:$0xff] }
0x18fc   : > { %5888 = vrcp.f32 %v3519_v53  ;;  %v8180_v10 = vpack.c.bf16 %v8174_v21, %v8172_v41  ;;  %3819 = vmatpush1.bf16.msra.mxu1 %v8063_v62 }
0x18fd   : > { %3820 = vmatprep.subr.bf16.mxu1 %v8067_v32  ;;  %v5875_v8 = vpop.eup %5874 }
0x18fe   : > { %3601 = vmatprep.mubr.bf16.mxu1 %v8180_v10  ;;  %v8202_v47 = vmul.f32 %v5875_v8, %v3413_v35 }
0x18ff   : > { %v5877_v20 = vpop.eup %5876  ;;  %3602 = vmatmul.mubr.bf16.gmra.mxu1 %v8185_v49 }
0x1900   : > { %v5879_v29 = vpop.eup %5878  ;;  %3821 = vmatpush1.bf16.msra.mxu1 %v8071_v15  ;;  %v8199_v45 = vmul.f32 %v5877_v20, %v3414_v23 }
0x1901   : > { %v5881_v37 = vpop.eup %5880  ;;  %3822 = vmatprep.subr.bf16.mxu1 %v8075_v9  ;;  %v8206_v5 = vmul.f32 %v5879_v29, %v3412_v12 }
0x1902   : > { %v8204_v63 = vmul.f32 %v5881_v37, %v3415_v22 }
0x1903   : > { %v8215_v7 = vpack.c.bf16 %v8199_v45, %v8206_v5 }
0x1904   : > { %v8210_v11 = vpack.c.bf16 %v8204_v63, %v8202_v47  ;;  %3823 = vmatpush1.bf16.msra.mxu1 %v8079_v3 }
0x1905   : > { %3824 = vmatprep.subr.bf16.mxu1 %v8083_v14  ;;  %v5883_v6 = vpop.eup %5882 }
0x1906   : > { %3609 = vmatprep.mubr.bf16.mxu1 %v8210_v11  ;;  %v8232_v4 = vmul.f32 %v5883_v6, %v3417_v1 }
0x1907   : > { %v5885_v31 = vpop.eup %5884  ;;  %3610 = vmatmul.mubr.bf16.gmra.mxu1 %v8215_v7 }
0x1908   : > { %v5887_v25 = vpop.eup %5886  ;;  %3825 = vmatpush1.bf16.msra.mxu1 %v8087_v0  ;;  %v8229_v43 = vmul.f32 %v5885_v31, %v3418_v51  ;;  %9009 = vst [vmem:[#allocation30_spill] sm:$0xff] %v8232_v4 }
0x1909   : > { %v5889_v39 = vpop.eup %5888  ;;  %3826 = vmatprep.subr.bf16.mxu1 %v8091_v60  ;;  %v8236_v2 = vmul.f32 %v5887_v25, %v3416_v33 }
0x190a   : > { %9008 = vst [vmem:[#allocation29_spill] sm:$0xff] %v8229_v43  ;;  %v8234_v19 = vmul.f32 %v5889_v39, %v3419_v52 }
0x190b   : > { %9011 = vst [vmem:[#allocation21_spill] sm:$0xff] %v8236_v2  ;;  %v8245_v55 = vpack.c.bf16 %v8229_v43, %v8236_v2 }
0x190c   : > { %9010 = vst [vmem:[#allocation31_spill] sm:$0xff] %v8234_v19  ;;  %v8240_v48 = vpack.c.bf16 %v8234_v19, %v8232_v4  ;;  %3827 = vmatpush1.bf16.msra.mxu1 %v8095_v28 }
0x190d   : > { %3828 = vmatprep.subr.bf16.mxu1 %v8099_v18 }
0x190e   : > { %3617 = vmatprep.mubr.bf16.mxu1 %v8240_v48  ;;  %3634 = vmatprep.subr.bf16.mxu0 %v8240_v48 }
0x190f   : > { %3618 = vmatmul.mubr.bf16.gmra.mxu1 %v8245_v55  ;;  %3635 = vmatpush1.bf16.xpose.msra.mxu0 %v8245_v55 }
0x1910   : > { %3636 = vmatprep.subr.bf16.mxu0 %v8210_v11  ;;  %3829 = vmatpush1.bf16.msra.mxu1 %v7923_v61 }
0x1911   : > { %3830 = vmatprep.subr.bf16.mxu1 %v7928_v38  ;;  %3848 = vmatprep.mubr.bf16.mxu1 %v8907_v42 }
0x1914   : > { %3831 = vmatpush1.bf16.msra.mxu1 %v9012_v16 }
0x1915   : > { %4115 = vmatprep.subr.bf16.mxu1 %v9013_v27 }
0x1917   : > { %3637 = vmatpush1.bf16.xpose.msra.mxu0 %v8215_v7 }
0x1918   : > { %3638 = vmatprep.subr.bf16.mxu0 %v8180_v10 }
0x191f   : > { %3639 = vmatpush1.bf16.xpose.msra.mxu0 %v8185_v49 }
0x1920   : > { %3640 = vmatprep.subr.bf16.mxu0 %v8151_v13 }
0x1927   : > { %3641 = vmatpush1.bf16.xpose.msra.mxu0 %v8155_v26 }
0x1928   : > { %5431 = vmatprep.subr.bf16.mxu0 %v9014_v58 }
0x192e   : > { %3659 = vmatmul.mubr.bf16.vlgmr.msra.gmra.mxu0 %v8155_v26 }
0x192f   : > { %3666 = vmatprep.mubr.bf16.mxu0 %v8180_v10  ;;  %5432 = vmatpush3.bf16.msra.mxu0 %v9014_v58 }
0x1930   : > { %5433 = vmatprep.subr.bf16.mxu0 %v9015_v44 }
0x1933   : > { %5434 = vmatpush3.bf16.msra.mxu0 %v9015_v44 }
0x1934   : > { %5435 = vmatprep.subr.bf16.mxu0 %v9016_v40 }
0x1936   : > { %3667 = vmatmul.mubr.bf16.gmra.mxu0 %v8185_v49 }
0x1937   : > { %3674 = vmatprep.mubr.bf16.mxu0 %v8210_v11  ;;  %5436 = vmatpush3.bf16.msra.mxu0 %v9016_v40 }
0x1938   : > { %5437 = vmatprep.subr.bf16.mxu0 %v9017_v57 }
0x193b   : > { %5438 = vmatpush3.bf16.msra.mxu0 %v9017_v57 }
0x193e   : > { %3675 = vmatmul.mubr.bf16.gmra.mxu0 %v8215_v7 }
0x193f   : > { %3682 = vmatprep.mubr.bf16.mxu0 %v8240_v48 }
0x1946   : > { %3683 = vmatmul.mubr.bf16.gmra.mxu0 %v8245_v55 }
0x19b7   : > { %v8278_v34 = vpop.f32.mrf.mxu1 }
0x19b9   : > { %v3597_v36 = vpop.f32.mrf.mxu1 }
0x19bb   : > { %v8280_v53 = vpop.f32.mrf.mxu1 }
0x19bd   : > { %v3600_v8 = vpop.f32.mrf.mxu1 }
0x19bf   : > { %v8282_v20 = vpop.f32.mrf.mxu1 }
0x19c1   : > { %v3605_v23 = vpop.f32.mrf.mxu1 }
0x19c3   : > { %v8284_v29 = vpop.f32.mrf.mxu1 }
0x19c5   : > { %v3608_v35 = vpop.f32.mrf.mxu1 }
0x19c7   : > { %v8286_v22 = vpop.f32.mrf.mxu1 }
0x19c9   : > { %v3613_v37 = vpop.f32.mrf.mxu1 }
0x19cb   : > { %v8288_v12 = vpop.f32.mrf.mxu1 }
0x19cd   : > { %v3616_v6 = vpop.f32.mrf.mxu1 }
0x19cf   : > { %v8290_v31 = vpop.f32.mrf.mxu1 }
0x19d1   : > { %v3621_v51 = vpop.f32.mrf.mxu1 }
0x19d3   : > { %v8292_v25 = vpop.f32.mrf.mxu1 }
0x19d5   : > { %v3624_v1 = vpop.f32.mrf.mxu1 }
0x19ee   : > { %v3660_v52 = vpop.f32.mrf.mxu0 }
0x19f0   : > { %v3662_v39 = vpop.f32.mrf.mxu0 }
0x19f2   : > { %v3663_v33 = vpop.f32.mrf.mxu0 }
0x19f3   : > { %v3691_v58 = vpack.c.bf16 %v3663_v33, %v3660_v52 }
0x19f4   : > { %v3665_v44 = vpop.f32.mrf.mxu0 }
0x19f5   : > { %3703 = vxpose.xlu1.c.b16.start [1/4] (short) (narrow) %v3691_v58, 64 }
0x19f6   : > { %v3668_v40 = vpop.f32.mrf.mxu0 }
0x19f8   : > { %v3670_v57 = vpop.f32.mrf.mxu0 }
0x19fa   : > { %v3671_v36 = vpop.f32.mrf.mxu0 }
0x19fb   : > { %v3692_v8 = vpack.c.bf16 %v3671_v36, %v3668_v40 }
0x19fc   : > { %v3673_v23 = vpop.f32.mrf.mxu0 }
0x19fd   : > { %3704 = vxpose.xlu1.c.b16.cont [2/4] (short) (narrow) %v3692_v8, 64 }
0x19fe   : > { %v3676_v35 = vpop.f32.mrf.mxu0 }
0x1a00   : > { %v3678_v37 = vpop.f32.mrf.mxu0 }
0x1a02   : > { %v3679_v6 = vpop.f32.mrf.mxu0 }
0x1a03   : > { %v3693_v2 = vpack.c.bf16 %v3679_v6, %v3676_v35 }
0x1a04   : > { %v3681_v51 = vpop.f32.mrf.mxu0 }
0x1a05   : > { %3705 = vxpose.xlu1.c.b16.cont [3/4] (short) (narrow) %v3693_v2, 64 }
0x1a06   : > { %v3684_v19 = vpop.f32.mrf.mxu0 }
0x1a08   : > { %v3686_v1 = vpop.f32.mrf.mxu0 }
0x1a0a   : > { %v3687_v4 = vpop.f32.mrf.mxu0 }
0x1a0b   : > { %v3694_v39 = vpack.c.bf16 %v3687_v4, %v3684_v19 }
0x1a0c   : > { %v3689_v43 = vpop.f32.mrf.mxu0 }
0x1a0d   : > { %3706 = vxpose.xlu1.c.b16.end [4/4] (short) (narrow) %v3694_v39, 64 }
0x1a63   : > { %v3711_v52 = vpop.trf.xlu1 }
0x1a64   : > { %5439 = vmatprep.mubr.msk.bf16.mxu0 %vm665_vm0, %v3711_v52 }
0x1a67   : > { %v3712_v33 = vpop.trf.xlu1 }
0x1a68   : > { %5440 = vmatmul.mubr.msk.bf16.vlgmr.msra.gmra.mxu0 %vm665_vm0, %v3712_v33 }
0x1a6b   : > { %v3713_v58 = vpop.trf.xlu1 }
0x1a6c   : > { %5443 = vmatprep.mubr.msk.bf16.mxu0 %vm665_vm0, %v3713_v58  ;;  %v9018_v58 = vld [vmem:[#allocation17_spill] sm:$0xff] }
0x1a6f   : > { %v3714_v44 = vpop.trf.xlu1 }
0x1a70   : > { %5444 = vmatmul.mubr.msk.bf16.gmra.mxu0 %vm665_vm0, %v3714_v44  ;;  %v3695_v44 = vmul.f32 %v8278_v34, %v9018_v58  ;;  %v9021_v34 = vld [vmem:[#allocation23_spill] sm:$0xff]  ;;  %v9024_v58 = vld [vmem:[#allocation14_spill] sm:$0xff] }
0x1b28   : > { %v5441_v40 = vpop.f32.mrf.mxu0 }
0x1b29   : > { %v3774_v4 = vadd.f32 1e-06, %v5441_v40  ;;  %v9019_v40 = vld [vmem:[#allocation22_spill] sm:$0xff] }
0x1b2a   : > { %v3765_v2 = vpop.f32.mrf.mxu0 }
0x1b2b   : > { %v3766_v57 = vadd.f32 1e-06, %v3765_v2  ;;  %v3696_v2 = vmul.f32 %v8280_v53, %v9019_v40  ;;  %v9022_v53 = vld [vmem:[#allocation24_spill] sm:$0xff] }
0x1b2c   : > { %v5442_v36 = vpop.f32.mrf.mxu0 }
0x1b2d   : > { %5890 = vrcp.f32 %v3766_v57  ;;  %v3777_v19 = vadd.f32 1e-06, %v5442_v36 }
0x1b2e   : > { %v3768_v8 = vpop.f32.mrf.mxu0 }
0x1b2f   : > { %v3769_v43 = vadd.f32 1e-06, %v3768_v8 }
0x1b30   : > { %v5445_v23 = vpop.f32.mrf.mxu0 }
0x1b31   : > { %5892 = vrcp.f32 %v3769_v43  ;;  %v3790_v35 = vadd.f32 1e-06, %v5445_v23 }
0x1b32   : > { %v3781_v37 = vpop.f32.mrf.mxu0  ;;  %5894 = vrcp.f32 %v3774_v4 }
0x1b33   : > { %v3782_v6 = vadd.f32 1e-06, %v3781_v37  ;;  %5896 = vrcp.f32 %v3777_v19  ;;  %v9020_v37 = vld [vmem:[#allocation25_spill] sm:$0xff] }
0x1b34   : > { %v5446_v51 = vpop.f32.mrf.mxu0  ;;  %5898 = vrcp.f32 %v3790_v35 }
0x1b35   : > { %v3793_v1 = vadd.f32 1e-06, %v5446_v51  ;;  %5900 = vrcp.f32 %v3782_v6  ;;  %v3698_v6 = vmul.f32 %v8284_v29, %v9020_v37  ;;  %v3701_v51 = vmul.f32 %v8290_v31, %v9021_v34  ;;  %v9025_v29 = vld [vmem:[#allocation18_spill] sm:$0xff] }
0x1b36   : > { %v3784_v39 = vpop.f32.mrf.mxu0  ;;  %v3700_v31 = vmul.f32 %v8288_v12, %v9025_v29 }
0x1b37   : > { %5902 = vrcp.f32 %v3793_v1  ;;  %v3785_v52 = vadd.f32 1e-06, %v3784_v39  ;;  %v3702_v1 = vmul.f32 %v8292_v25, %v9022_v53 }
0x1b39   : > { %5904 = vrcp.f32 %v3785_v52  ;;  %v9023_v52 = vld [vmem:[#allocation26_spill] sm:$0xff] }
0x1b3a   : > { %v5891_v33 = vpop.eup %5890 }
0x1b3b   : > { %v8302_v36 = vmul.f32 %v5891_v33, %v3695_v44  ;;  %v3697_v33 = vmul.f32 %v8282_v20, %v9023_v52  ;;  %v3699_v44 = vmul.f32 %v8286_v22, %v9024_v58 }
0x1b3e   : > { %v5893_v57 = vpop.eup %5892 }
0x1b3f   : > { %v8304_v8 = vmul.f32 %v5893_v57, %v3696_v2  ;;  %v5895_v4 = vpop.eup %5894 }
0x1b40   : > { %v5897_v43 = vpop.eup %5896  ;;  %v8333_v20 = vmul.f32 %v5895_v4, %v3697_v33 }
0x1b41   : > { %v8308_v19 = vpack.c.bf16 %v8304_v8, %v8302_v36  ;;  %v5899_v23 = vpop.eup %5898  ;;  %v8326_v40 = vmul.f32 %v5897_v43, %v3698_v6 }
0x1b42   : > { %v5901_v35 = vpop.eup %5900  ;;  %v8328_v25 = vmul.f32 %v5899_v23, %v3701_v51 }
0x1b43   : > { %3849 = vmatmul.mubr.bf16.vlgmr.msra.gmra.mxu1 %v8308_v19  ;;  %5455 = vmatprep.mubr.bf16.mxu0 %v8308_v19  ;;  %v8335_v37 = vmul.f32 %v5901_v35, %v3699_v44  ;;  %v8345_v12 = vpack.c.bf16 %v8326_v40, %v8333_v20 }
0x1b44   : > { %v5903_v39 = vpop.eup %5902  ;;  %3858 = vmatprep.mubr.bf16.mxu1 %v8907_v42  ;;  %4116 = vmatpush1.bf16.xpose.msra.mxu1 %v8054_v24 }
0x1b45   : > { %v8330_v2 = vmul.f32 %v5903_v39, %v3702_v1  ;;  %4117 = vmatprep.subr.bf16.mxu1 %v8058_v30 }
0x1b46   : > { %v5905_v57 = vpop.eup %5904 }
0x1b47   : > { %v8339_v22 = vpack.c.bf16 %v8330_v2, %v8328_v25  ;;  %v8341_v34 = vmul.f32 %v5905_v57, %v3700_v31 }
0x1b49   : > { %9026 = vst [vmem:[#allocation27_spill] sm:$0xff] %v8341_v34  ;;  %v8349_v43 = vpack.c.bf16 %v8341_v34, %v8335_v37  ;;  %5447 = vmatprep.subr.bf16.mxu0 %v8339_v22 }
0x1b4a   : > { %5448 = vmatpush3.bf16.xpose.msra.mxu0 %v8339_v22 }
0x1b4b   : > { %3859 = vmatmul.mubr.bf16.gmra.mxu1 %v8345_v12  ;;  %5449 = vmatprep.subr.bf16.mxu0 %v8349_v43 }
0x1b4c   : > { %3868 = vmatprep.mubr.bf16.mxu1 %v8907_v42  ;;  %4118 = vmatpush1.bf16.xpose.msra.mxu1 %v8063_v62 }
0x1b4d   : > { %4119 = vmatprep.subr.bf16.mxu1 %v8067_v32 }
0x1b52   : > { %5450 = vmatpush3.bf16.xpose.msra.mxu0 %v8349_v43 }
0x1b53   : > { %3869 = vmatmul.mubr.bf16.gmra.mxu1 %v8349_v43  ;;  %5451 = vmatprep.subr.bf16.mxu0 %v8345_v12 }
0x1b54   : > { %3878 = vmatprep.mubr.bf16.mxu1 %v8907_v42  ;;  %4120 = vmatpush1.bf16.xpose.msra.mxu1 %v8071_v15 }
0x1b55   : > { %4121 = vmatprep.subr.bf16.mxu1 %v8075_v9 }
0x1b5a   : > { %5452 = vmatpush3.bf16.xpose.msra.mxu0 %v8345_v12 }
0x1b5b   : > { %3879 = vmatmul.mubr.bf16.gmra.mxu1 %v8339_v22  ;;  %5453 = vmatprep.subr.bf16.mxu0 %v8308_v19 }
0x1b5c   : > { %4122 = vmatpush1.bf16.xpose.msra.mxu1 %v8079_v3 }
0x1b5d   : > { %4123 = vmatprep.subr.bf16.mxu1 %v8083_v14 }
0x1b62   : > { %5454 = vmatpush3.bf16.xpose.msra.mxu0 %v8308_v19 }
0x1b63   : > { %4010 = vmatprep.subr.bf16.mxu0 %v8240_v48 }
0x1b64   : > { %4124 = vmatpush1.bf16.xpose.msra.mxu1 %v8087_v0 }
0x1b65   : > { %4125 = vmatprep.subr.bf16.mxu1 %v8091_v60 }
0x1b69   : > { %5456 = vmatmul.mubr.bf16.vlgmr.msra.gmra.mxu0 %v8345_v12 }
0x1b6a   : > { %5459 = vmatprep.mubr.bf16.mxu0 %v8349_v43  ;;  %4011 = vmatpush1.bf16.msra.mxu0 %v8245_v55 }
0x1b6b   : > { %4012 = vmatprep.subr.bf16.mxu0 %v8210_v11 }
0x1b6c   : > { %4126 = vmatpush1.bf16.xpose.msra.mxu1 %v8095_v28 }
0x1b6d   : > { %4127 = vmatprep.subr.bf16.mxu1 %v8099_v18 }
0x1b6e   : > { %4013 = vmatpush1.bf16.msra.mxu0 %v8215_v7 }
0x1b6f   : > { %4014 = vmatprep.subr.bf16.mxu0 %v8180_v10 }
0x1b71   : > { %5460 = vmatmul.mubr.bf16.gmra.mxu0 %v8339_v22 }
0x1b72   : > { %4015 = vmatpush1.bf16.msra.mxu0 %v8185_v49  ;;  %4034 = vmatprep.mubr.bf16.mxu0 %v8907_v42 }
0x1b73   : > { %4016 = vmatprep.subr.bf16.mxu0 %v8151_v13 }
0x1b74   : > { %4128 = vmatpush1.bf16.xpose.msra.mxu1 %v7923_v61 }
0x1b75   : > { %4129 = vmatprep.subr.bf16.mxu1 %v7928_v38 }
0x1b76   : > { %4017 = vmatpush1.bf16.msra.mxu0 %v8155_v26 }
0x1b7c   : > { %4130 = vmatpush1.bf16.xpose.msra.mxu1 %v9012_v16 }
0x1b7d   : > { %4370 = vmatprep.subr.bf16.mxu1 %v9013_v27 }
0x1c03   : > { %v3850_v51 = vpop.f32.mrf.mxu1 }
0x1c05   : > { %v3852_v53 = vpop.f32.mrf.mxu1 }
0x1c07   : > { %v3854_v1 = vpop.f32.mrf.mxu1 }
0x1c09   : > { %v3856_v39 = vpop.f32.mrf.mxu1 }
0x1c0b   : > { %v8397_v52 = vpop.f32.mrf.mxu1 }
0x1c0d   : > { %v8399_v58 = vpop.f32.mrf.mxu1 }
0x1c29   : > { %v5457_v11 = vpop.f32.mrf.mxu0 }
0x1c2b   : > { %v3923_v10 = vpop.f32.mrf.mxu0 }
0x1c2d   : > { %v5458_v7 = vpop.f32.mrf.mxu0 }
0x1c2e   : > { %v3955_v23 = vpack.c.bf16 %v5458_v7, %v5457_v11 }
0x1c2f   : > { %v3926_v48 = vpop.f32.mrf.mxu0 }
0x1c30   : > { %v3954_v55 = vpack.c.bf16 %v3926_v48, %v3923_v10  ;;  %v3864_v10 = vpop.f32.mrf.mxu1 }
0x1c31   : > { %v5461_v49 = vpop.f32.mrf.mxu0 }
0x1c32   : > { %3974 = vxpose.xlu0.c.b16.start [1/4] (short) (narrow) %v3954_v55, 64 }
0x1c33   : > { %v3939_v4 = vpop.f32.mrf.mxu0 }
0x1c35   : > { %v5462_v13 = vpop.f32.mrf.mxu0 }
0x1c36   : > { %3975 = vxpose.xlu0.c.b16.cont [2/4] (short) (narrow) %v3955_v23, 64  ;;  %v3957_v38 = vpack.c.bf16 %v5462_v13, %v5461_v49  ;;  %v3866_v49 = vpop.f32.mrf.mxu1 }
0x1c37   : > { %v3942_v61 = vpop.f32.mrf.mxu0 }
0x1c38   : > { %v3956_v35 = vpack.c.bf16 %v3942_v61, %v3939_v4 }
0x1c3a   : > { %3976 = vxpose.xlu0.c.b16.cont [3/4] (short) (narrow) %v3956_v35, 64 }
0x1c3e   : > { %3977 = vxpose.xlu0.c.b16.end [4/4] (short) (narrow) %v3957_v38, 64  ;;  %v8401_v38 = vpop.f32.mrf.mxu1 }
0x1c94   : > { %v3982_v26 = vpop.trf.xlu0 }
0x1c95   : > { %5103 = vmatmul.mubr.msk.bf16.vlgmr.msra.gmra.mxu0 %vm665_vm0, %v3982_v26 }
0x1c96   : > { %4044 = vmatprep.mubr.bf16.mxu0 %v8907_v42 }
0x1c98   : > { %v3983_v16 = vpop.trf.xlu0 }
0x1c9c   : > { %v3984_v27 = vpop.trf.xlu0 }
0x1c9d   : > { %5104 = vmatmul.mubr.msk.bf16.gmra.mxu0 %vm665_vm0, %v3983_v16 }
0x1c9e   : > { %4054 = vmatprep.mubr.bf16.mxu0 %v8907_v42 }
0x1ca0   : > { %v3985_v6 = vpop.trf.xlu0 }
0x1ca5   : > { %5105 = vmatmul.mubr.msk.bf16.gmra.mxu0 %vm665_vm0, %v3984_v27 }
0x1ca6   : > { %4064 = vmatprep.mubr.bf16.mxu0 %v8907_v42 }
0x1cad   : > { %5106 = vmatmul.mubr.msk.bf16.gmra.mxu0 %vm665_vm0, %v3985_v6  ;;  %v8403_v6 = vpop.f32.mrf.mxu1 }
0x1d55   : > { %v4036_v33 = vpop.f32.mrf.mxu0 }
0x1d56   : > { %v4037_v31 = vadd.f32 1e-06, %v4036_v33 }
0x1d57   : > { %v4038_v44 = vpop.f32.mrf.mxu0 }
0x1d58   : > { %v4039_v29 = vadd.f32 1e-06, %v4038_v44 }
0x1d59   : > { %v4040_v57 = vpop.f32.mrf.mxu0 }
0x1d5a   : > { %v4041_v11 = vadd.f32 1e-06, %v4040_v57  ;;  %5906 = vrcp.f32 %v4039_v29  ;;  %v3960_v57 = vmul.f32 %v3854_v1, %v8141_v17 }
0x1d5b   : > { %v4042_v7 = vpop.f32.mrf.mxu0 }
0x1d5c   : > { %5908 = vrcp.f32 %v4041_v11  ;;  %v4043_v48 = vadd.f32 1e-06, %v4042_v7 }
0x1d5d   : > { %5910 = vrcp.f32 %v4037_v31  ;;  %v4046_v55 = vpop.f32.mrf.mxu0 }
0x1d5e   : > { %5912 = vrcp.f32 %v4043_v48  ;;  %v4047_v13 = vadd.f32 1e-06, %v4046_v55  ;;  %v3959_v55 = vmul.f32 %v3852_v53, %v8143_v59 }
0x1d5f   : > { %v4048_v4 = vpop.f32.mrf.mxu0 }
0x1d60   : > { %v4049_v23 = vadd.f32 1e-06, %v4048_v4  ;;  %v3961_v4 = vmul.f32 %v3856_v39, %v8145_v50 }
0x1d61   : > { %v4050_v61 = vpop.f32.mrf.mxu0 }
0x1d62   : > { %v4051_v35 = vadd.f32 1e-06, %v4050_v61  ;;  %5914 = vrcp.f32 %v4049_v23 }
0x1d63   : > { %v4052_v26 = vpop.f32.mrf.mxu0 }
0x1d64   : > { %5916 = vrcp.f32 %v4051_v35  ;;  %v4053_v16 = vadd.f32 1e-06, %v4052_v26  ;;  %v3874_v35 = vpop.f32.mrf.mxu1 }
0x1d65   : > { %5918 = vrcp.f32 %v4047_v13  ;;  %v4056_v27 = vpop.f32.mrf.mxu0  ;;  %v3958_v13 = vmul.f32 %v3850_v51, %v8147_v56 }
0x1d66   : > { %5920 = vrcp.f32 %v4053_v16  ;;  %v4057_v11 = vadd.f32 1e-06, %v4056_v27  ;;  %v3876_v56 = vpop.f32.mrf.mxu1 }
0x1d67   : > { %v4058_v33 = vpop.f32.mrf.mxu0  ;;  %v5907_v44 = vpop.eup %5906 }
0x1d68   : > { %v4059_v29 = vadd.f32 1e-06, %v4058_v33  ;;  %v8411_v34 = vmul.f32 %v5907_v44, %v3959_v55 }
0x1d69   : > { %v5909_v31 = vpop.eup %5908  ;;  %v4060_v7 = vpop.f32.mrf.mxu0 }
0x1d6a   : > { %v5911_v48 = vpop.eup %5910  ;;  %v4061_v23 = vadd.f32 1e-06, %v4060_v7  ;;  %v8409_v26 = vmul.f32 %v5909_v31, %v3960_v57  ;;  %5922 = vrcp.f32 %v4059_v29  ;;  %v3964_v29 = vmul.f32 %v3864_v10, %v8169_v54 }
0x1d6b   : > { %v5913_v61 = vpop.eup %5912  ;;  %v4062_v16 = vpop.f32.mrf.mxu0  ;;  %v8415_v1 = vmul.f32 %v5911_v48, %v3958_v13  ;;  %v3963_v7 = vmul.f32 %v8399_v58, %v8172_v41  ;;  %v3965_v48 = vmul.f32 %v3866_v49, %v8174_v21  ;;  %v3968_v49 = vmul.f32 %v3874_v35, %v8199_v45 }
0x1d6c   : > { %5924 = vrcp.f32 %v4061_v23  ;;  %v4063_v33 = vadd.f32 1e-06, %v4062_v16  ;;  %v8413_v17 = vmul.f32 %v5913_v61, %v3961_v4  ;;  %v3962_v23 = vmul.f32 %v8397_v52, %v8176_v46  ;;  %v3880_v61 = vpop.f32.mrf.mxu1 }
0x1d6d   : > { %5926 = vrcp.f32 %v4057_v11  ;;  %v4066_v59 = vpop.f32.mrf.mxu0  ;;  %v8423_v51 = vpack.c.bf16 %v8409_v26, %v8415_v1 }
0x1d6e   : > { %5928 = vrcp.f32 %v4063_v33  ;;  %v8419_v50 = vpack.c.bf16 %v8413_v17, %v8411_v34  ;;  %v4067_v31 = vadd.f32 1e-06, %v4066_v59  ;;  %v3882_v46 = vpop.f32.mrf.mxu1  ;;  %v3967_v33 = vmul.f32 %v8403_v6, %v8202_v47 }
0x1d6f   : > { %v4068_v53 = vpop.f32.mrf.mxu0  ;;  %v5915_v39 = vpop.eup %5914  ;;  %v3969_v59 = vmul.f32 %v3876_v56, %v8204_v63  ;;  %v9028_v56 = vld [vmem:[#allocation30_spill] sm:$0xff] }
0x1d70   : > { %v4069_v27 = vadd.f32 1e-06, %v4068_v53  ;;  %4147 = vmatprep.mubr.bf16.mxu1 %v8419_v50  ;;  %4212 = vmatprep.mubr.bf16.mxu0 %v8419_v50  ;;  %v8438_v16 = vmul.f32 %v5915_v39, %v3963_v7  ;;  %v3966_v53 = vmul.f32 %v8401_v38, %v8206_v5  ;;  %v3884_v39 = vpop.f32.mrf.mxu1  ;;  %v9027_v38 = vld [vmem:[#allocation29_spill] sm:$0xff] }
0x1d71   : > { %v5917_v44 = vpop.eup %5916  ;;  %v4070_v57 = vpop.f32.mrf.mxu0  ;;  %4148 = vmatmul.mubr.bf16.vlgmr.msra.gmra.mxu1 %v8423_v51  ;;  %v3972_v6 = vmul.f32 %v3884_v39, %v9027_v38 }
0x1d72   : > { %v5919_v11 = vpop.eup %5918  ;;  %v4071_v55 = vadd.f32 1e-06, %v4070_v57  ;;  %4371 = vmatpush1.bf16.msra.mxu1 %v8054_v24  ;;  %5930 = vrcp.f32 %v4069_v27  ;;  %v8436_v10 = vmul.f32 %v5917_v44, %v3964_v29  ;;  %v3886_v47 = vpop.f32.mrf.mxu1  ;;  %v3971_v29 = vmul.f32 %v3882_v46, %v9028_v56 }
0x1d73   : > { %v5921_v4 = vpop.eup %5920  ;;  %v4072_v54 = vpop.f32.mrf.mxu0  ;;  %4372 = vmatprep.subr.bf16.mxu1 %v8058_v30  ;;  %v8442_v21 = vmul.f32 %v5919_v11, %v3962_v23  ;;  %v9030_v11 = vld [vmem:[#allocation21_spill] sm:$0xff] }
0x1d74   : > { %5932 = vrcp.f32 %v4071_v55  ;;  %v4073_v13 = vadd.f32 1e-06, %v4072_v54  ;;  %v8440_v41 = vmul.f32 %v5921_v4, %v3965_v48  ;;  %v3970_v7 = vmul.f32 %v3880_v61, %v9030_v11  ;;  %v6039_v61 = vld [vmem:[%s6383_s29 + $0x10] ss:$8 sps:$4 sm:$0xff]   ;;  %v6041_v54 = vld [vmem:[%s6383_s29] ss:$8 sps:$4 sm:$0xff]  }
0x1d75   : > { %5934 = vrcp.f32 %v4067_v31  ;;  %v8452_v30 = vpack.c.bf16 %v8436_v10, %v8442_v21  ;;  %v9029_v31 = vld [vmem:[#allocation31_spill] sm:$0xff] }
0x1d76   : > { %5936 = vrcp.f32 %v4073_v13  ;;  %4373 = vmatpush1.bf16.msra.mxu1 %v8063_v62  ;;  %v8447_v24 = vpack.c.bf16 %v8440_v41, %v8438_v16  ;;  %v3973_v57 = vmul.f32 %v3886_v47, %v9029_v31 }
0x1d77   : > { %4374 = vmatprep.subr.bf16.mxu1 %v8067_v32  ;;  %v5923_v52 = vpop.eup %5922 }
0x1d78   : > { %4155 = vmatprep.mubr.bf16.mxu1 %v8447_v24  ;;  %v8466_v45 = vmul.f32 %v5923_v52, %v3967_v33 }
0x1d79   : > { %v5925_v58 = vpop.eup %5924  ;;  %4156 = vmatmul.mubr.bf16.gmra.mxu1 %v8452_v30 }
0x1d7a   : > { %v5927_v62 = vpop.eup %5926  ;;  %4375 = vmatpush1.bf16.msra.mxu1 %v8071_v15  ;;  %v8464_v27 = vmul.f32 %v5925_v58, %v3968_v49 }
0x1d7b   : > { %v5929_v32 = vpop.eup %5928  ;;  %4376 = vmatprep.subr.bf16.mxu1 %v8075_v9  ;;  %v8470_v44 = vmul.f32 %v5927_v62, %v3966_v53 }
0x1d7c   : > { %v8468_v35 = vmul.f32 %v5929_v32, %v3969_v59 }
0x1d7d   : > { %v8480_v9 = vpack.c.bf16 %v8464_v27, %v8470_v44 }
0x1d7e   : > { %4377 = vmatpush1.bf16.msra.mxu1 %v8079_v3  ;;  %v8475_v15 = vpack.c.bf16 %v8468_v35, %v8466_v45 }
0x1d7f   : > { %4378 = vmatprep.subr.bf16.mxu1 %v8083_v14  ;;  %v5931_v63 = vpop.eup %5930 }
0x1d80   : > { %4163 = vmatprep.mubr.bf16.mxu1 %v8475_v15  ;;  %v8492_v55 = vmul.f32 %v5931_v63, %v3971_v29 }
0x1d81   : > { %v5933_v5 = vpop.eup %5932  ;;  %4164 = vmatmul.mubr.bf16.gmra.mxu1 %v8480_v9 }
0x1d82   : > { %v5935_v3 = vpop.eup %5934  ;;  %4379 = vmatpush1.bf16.msra.mxu1 %v8087_v0  ;;  %v8490_v48 = vmul.f32 %v5933_v5, %v3972_v6 }
0x1d83   : > { %v5937_v14 = vpop.eup %5936  ;;  %4380 = vmatprep.subr.bf16.mxu1 %v8091_v60  ;;  %v8496_v23 = vmul.f32 %v5935_v3, %v3970_v7 }
0x1d84   : > { %v8494_v4 = vmul.f32 %v5937_v14, %v3973_v57 }
0x1d85   : > { %v8504_v60 = vpack.c.bf16 %v8490_v48, %v8496_v23 }
0x1d86   : > { %4381 = vmatpush1.bf16.msra.mxu1 %v8095_v28  ;;  %v4114_v0 = vpack.c.bf16 %v8494_v4, %v8492_v55  ;;  %v6040_v28 = vld [vmem:[%s6383_s29 + $0x4] ss:$8 sps:$4 sm:$0xff]  }
0x1d87   : > { %4382 = vmatprep.subr.bf16.mxu1 %v8099_v18 }
0x1d88   : > { %4171 = vmatprep.mubr.bf16.mxu1 %v4114_v0  ;;  %4188 = vmatprep.subr.bf16.mxu0 %v4114_v0 }
0x1d89   : > { %4172 = vmatmul.mubr.bf16.gmra.mxu1 %v8504_v60  ;;  %4189 = vmatpush1.bf16.xpose.msra.mxu0 %v8504_v60 }
0x1d8a   : > { %4383 = vmatpush1.bf16.msra.mxu1 %v6039_v61  ;;  %4190 = vmatprep.subr.bf16.mxu0 %v8475_v15 }
0x1d8b   : > { %4384 = vmatprep.subr.bf16.mxu1 %v6040_v28  ;;  %4402 = vmatprep.mubr.bf16.mxu1 %v8907_v42 }
0x1d8e   : > { %4385 = vmatpush1.bf16.msra.mxu1 %v6041_v54 }
0x1d8f   : > { %4564 = vmatprep.subr.bf16.mxu1 %v4114_v0 }
0x1d91   : > { %4191 = vmatpush1.bf16.xpose.msra.mxu0 %v8480_v9 }
0x1d92   : > { %4192 = vmatprep.subr.bf16.mxu0 %v8447_v24 }
0x1d99   : > { %4193 = vmatpush1.bf16.xpose.msra.mxu0 %v8452_v30 }
0x1d9a   : > { %4194 = vmatprep.subr.bf16.mxu0 %v8419_v50 }
0x1da1   : > { %4195 = vmatpush1.bf16.xpose.msra.mxu0 %v8423_v51 }
0x1da2   : > { %5463 = vmatprep.subr.bf16.mxu0 %v8339_v22 }
0x1da8   : > { %4213 = vmatmul.mubr.bf16.vlgmr.msra.gmra.mxu0 %v8423_v51 }
0x1da9   : > { %4220 = vmatprep.mubr.bf16.mxu0 %v8447_v24  ;;  %5464 = vmatpush3.bf16.msra.mxu0 %v8339_v22 }
0x1daa   : > { %5465 = vmatprep.subr.bf16.mxu0 %v8349_v43 }
0x1dad   : > { %5466 = vmatpush3.bf16.msra.mxu0 %v8349_v43 }
0x1dae   : > { %5467 = vmatprep.subr.bf16.mxu0 %v8345_v12 }
0x1db0   : > { %4221 = vmatmul.mubr.bf16.gmra.mxu0 %v8452_v30 }
0x1db1   : > { %4228 = vmatprep.mubr.bf16.mxu0 %v8475_v15  ;;  %5468 = vmatpush3.bf16.msra.mxu0 %v8345_v12 }
0x1db2   : > { %5469 = vmatprep.subr.bf16.mxu0 %v8308_v19 }
0x1db5   : > { %5470 = vmatpush3.bf16.msra.mxu0 %v8308_v19 }
0x1db8   : > { %4229 = vmatmul.mubr.bf16.gmra.mxu0 %v8480_v9 }
0x1db9   : > { %4236 = vmatprep.mubr.bf16.mxu0 %v4114_v0 }
0x1dc0   : > { %4237 = vmatmul.mubr.bf16.gmra.mxu0 %v8504_v60 }
0x1e31   : > { %v8532_v18 = vpop.f32.mrf.mxu1 }
0x1e33   : > { %v4151_v22 = vpop.f32.mrf.mxu1 }
0x1e35   : > { %v8534_v43 = vpop.f32.mrf.mxu1 }
0x1e37   : > { %v4154_v13 = vpop.f32.mrf.mxu1 }
0x1e39   : > { %v8536_v46 = vpop.f32.mrf.mxu1 }
0x1e3b   : > { %v4159_v52 = vpop.f32.mrf.mxu1 }
0x1e3d   : > { %v8538_v58 = vpop.f32.mrf.mxu1 }
0x1e3f   : > { %v4162_v12 = vpop.f32.mrf.mxu1 }
0x1e41   : > { %v8540_v49 = vpop.f32.mrf.mxu1 }
0x1e43   : > { %v4167_v19 = vpop.f32.mrf.mxu1 }
0x1e45   : > { %v8542_v62 = vpop.f32.mrf.mxu1 }
0x1e47   : > { %v4170_v33 = vpop.f32.mrf.mxu1 }
0x1e49   : > { %v8544_v59 = vpop.f32.mrf.mxu1 }
0x1e4b   : > { %v4175_v32 = vpop.f32.mrf.mxu1 }
0x1e4d   : > { %v8546_v53 = vpop.f32.mrf.mxu1 }
0x1e4f   : > { %v4178_v39 = vpop.f32.mrf.mxu1 }
0x1e68   : > { %v4214_v47 = vpop.f32.mrf.mxu0 }
0x1e6a   : > { %v4216_v63 = vpop.f32.mrf.mxu0 }
0x1e6c   : > { %v4217_v5 = vpop.f32.mrf.mxu0 }
0x1e6d   : > { %v4245_v38 = vpack.c.bf16 %v4217_v5, %v4214_v47 }
0x1e6e   : > { %v4219_v6 = vpop.f32.mrf.mxu0 }
0x1e6f   : > { %4257 = vxpose.xlu1.c.b16.start [1/4] (short) (narrow) %v4245_v38, 64 }
0x1e70   : > { %v4222_v3 = vpop.f32.mrf.mxu0 }
0x1e72   : > { %v4224_v56 = vpop.f32.mrf.mxu0 }
0x1e74   : > { %v4225_v29 = vpop.f32.mrf.mxu0 }
0x1e75   : > { %v4246_v31 = vpack.c.bf16 %v4225_v29, %v4222_v3 }
0x1e76   : > { %v4227_v57 = vpop.f32.mrf.mxu0 }
0x1e77   : > { %4258 = vxpose.xlu1.c.b16.cont [2/4] (short) (narrow) %v4246_v31, 64 }
0x1e78   : > { %v4230_v14 = vpop.f32.mrf.mxu0 }
0x1e7a   : > { %v4232_v11 = vpop.f32.mrf.mxu0 }
0x1e7c   : > { %v4233_v7 = vpop.f32.mrf.mxu0 }
0x1e7d   : > { %v4247_v0 = vpack.c.bf16 %v4233_v7, %v4230_v14 }
0x1e7e   : > { %v4235_v61 = vpop.f32.mrf.mxu0 }
0x1e7f   : > { %4259 = vxpose.xlu1.c.b16.cont [3/4] (short) (narrow) %v4247_v0, 64  ;;  %v4251_v61 = vmul.f32 %v8536_v46, %v8333_v20  ;;  %v4250_v46 = vmul.f32 %v8534_v43, %v8304_v8  ;;  %v4256_v8 = vmul.f32 %v8546_v53, %v8330_v2 }
0x1e80   : > { %v4238_v28 = vpop.f32.mrf.mxu0 }
0x1e82   : > { %v4240_v54 = vpop.f32.mrf.mxu0 }
0x1e84   : > { %v4241_v22 = vpop.f32.mrf.mxu0 }
0x1e85   : > { %v4248_v13 = vpack.c.bf16 %v4241_v22, %v4238_v28  ;;  %v4249_v22 = vmul.f32 %v8532_v18, %v8302_v36 }
0x1e86   : > { %v4243_v52 = vpop.f32.mrf.mxu0 }
0x1e87   : > { %4260 = vxpose.xlu1.c.b16.end [4/4] (short) (narrow) %v4248_v13, 64 }
0x1edd   : > { %v4265_v12 = vpop.trf.xlu1 }
0x1ede   : > { %5471 = vmatprep.mubr.msk.bf16.mxu0 %vm665_vm0, %v4265_v12  ;;  %v4252_v12 = vmul.f32 %v8538_v58, %v8326_v40  ;;  %v4255_v40 = vmul.f32 %v8544_v59, %v8328_v25  ;;  %v9031_v59 = vld [vmem:[#allocation27_spill] sm:$0xff] }
0x1ee1   : > { %v4266_v19 = vpop.trf.xlu1 }
0x1ee2   : > { %5472 = vmatmul.mubr.msk.bf16.vlgmr.msra.gmra.mxu0 %vm665_vm0, %v4266_v19 }
0x1ee5   : > { %v4267_v33 = vpop.trf.xlu1 }
0x1ee6   : > { %5475 = vmatprep.mubr.msk.bf16.mxu0 %vm665_vm0, %v4267_v33 }
0x1ee9   : > { %v4268_v32 = vpop.trf.xlu1 }
0x1eea   : > { %5476 = vmatmul.mubr.msk.bf16.gmra.mxu0 %vm665_vm0, %v4268_v32 }
0x1fa2   : > { %v5473_v39 = vpop.f32.mrf.mxu0 }
0x1fa3   : > { %v4328_v47 = vadd.f32 1e-06, %v5473_v39  ;;  %v4253_v39 = vmul.f32 %v8540_v49, %v8335_v37  ;;  %v4254_v37 = vmul.f32 %v8542_v62, %v9031_v59 }
0x1fa4   : > { %v4319_v63 = vpop.f32.mrf.mxu0 }
0x1fa5   : > { %5938 = vrcp.f32 %v4328_v47  ;;  %v4320_v5 = vadd.f32 1e-06, %v4319_v63 }
0x1fa6   : > { %v5474_v38 = vpop.f32.mrf.mxu0 }
0x1fa7   : > { %5940 = vrcp.f32 %v4320_v5  ;;  %v4331_v6 = vadd.f32 1e-06, %v5474_v38 }
0x1fa8   : > { %v4322_v3 = vpop.f32.mrf.mxu0 }
0x1fa9   : > { %5942 = vrcp.f32 %v4331_v6  ;;  %v4323_v56 = vadd.f32 1e-06, %v4322_v3 }
0x1faa   : > { %v5477_v29 = vpop.f32.mrf.mxu0 }
0x1fab   : > { %5944 = vrcp.f32 %v4323_v56  ;;  %v4344_v31 = vadd.f32 1e-06, %v5477_v29 }
0x1fac   : > { %v4335_v57 = vpop.f32.mrf.mxu0 }
0x1fad   : > { %5946 = vrcp.f32 %v4344_v31  ;;  %v4336_v14 = vadd.f32 1e-06, %v4335_v57 }
0x1fae   : > { %v5478_v11 = vpop.f32.mrf.mxu0 }
0x1faf   : > { %5948 = vrcp.f32 %v4336_v14  ;;  %v4347_v7 = vadd.f32 1e-06, %v5478_v11 }
0x1fb0   : > { %v4338_v0 = vpop.f32.mrf.mxu0 }
0x1fb1   : > { %5950 = vrcp.f32 %v4347_v7  ;;  %v4339_v28 = vadd.f32 1e-06, %v4338_v0 }
0x1fb2   : > { %v5939_v54 = vpop.eup %5938 }
0x1fb3   : > { %5952 = vrcp.f32 %v4339_v28  ;;  %v4360_v13 = vmul.f32 %v5939_v54, %v4251_v61 }
0x1fb4   : > { %v5941_v52 = vpop.eup %5940 }
0x1fb5   : > { %v4358_v19 = vmul.f32 %v5941_v52, %v4249_v22  ;;  %4856 = vst [vmem:[%s8560_s23 + $0x10] sm:$0xff] %v4360_v13 }
0x1fb6   : > { %v5943_v20 = vpop.eup %5942 }
0x1fb7   : > { %4854 = vst [vmem:[%s8560_s23] sm:$0xff] %v4358_v19  ;;  %v4361_v36 = vmul.f32 %v5943_v20, %v4252_v12 }
0x1fb8   : > { %v5945_v18 = vpop.eup %5944 }
0x1fb9   : > { %v4359_v58 = vmul.f32 %v5945_v18, %v4250_v46  ;;  %v4367_v33 = vpack.c.bf16 %v4361_v36, %v4360_v13  ;;  %4857 = vst [vmem:[%s8560_s23 + $0x18] sm:$0xff] %v4361_v36 }
0x1fba   : > { %v5947_v32 = vpop.eup %5946 }
0x1fbb   : > { %v4366_v47 = vpack.c.bf16 %v4359_v58, %v4358_v19  ;;  %4855 = vst [vmem:[%s8560_s23 + $0x8] sm:$0xff] %v4359_v58  ;;  %v4364_v63 = vmul.f32 %v5947_v32, %v4255_v40 }
0x1fbc   : > { %v5949_v5 = vpop.eup %5948 }
0x1fbd   : > { %4669 = vxpose.xlu1.c.b16.start [1/4] (short) %v4366_v47, 128  ;;  %4403 = vmatmul.mubr.bf16.vlgmr.msra.gmra.mxu1 %v4366_v47  ;;  %4860 = vst [vmem:[%s8560_s23 + $0x30] sm:$0xff] %v4364_v63  ;;  %v4362_v25 = vmul.f32 %v5949_v5, %v4253_v39 }
0x1fbe   : > { %v5951_v43 = vpop.eup %5950  ;;  %5487 = vmatprep.mubr.bf16.mxu0 %v4366_v47  ;;  %4565 = vmatpush1.bf16.msra.mxu1 %v8504_v60 }
0x1fbf   : > { %4566 = vmatprep.subr.bf16.mxu1 %v8475_v15  ;;  %v4365_v49 = vmul.f32 %v5951_v43, %v4256_v8  ;;  %4412 = vmatprep.mubr.bf16.mxu1 %v8907_v42  ;;  %4858 = vst [vmem:[%s8560_s23 + $0x20] sm:$0xff] %v4362_v25 }
0x1fc0   : > { %v5953_v2 = vpop.eup %5952 }
0x1fc1   : > { %4670 = vxpose.xlu1.c.b16.cont [2/4] (short) %v4367_v33, 128  ;;  %v4369_v53 = vpack.c.bf16 %v4365_v49, %v4364_v63  ;;  %4861 = vst [vmem:[%s8560_s23 + $0x38] sm:$0xff] %v4365_v49  ;;  %v4363_v38 = vmul.f32 %v5953_v2, %v4254_v37 }
0x1fc2   : > { %4567 = vmatpush1.bf16.msra.mxu1 %v8480_v9 }
0x1fc3   : > { %4568 = vmatprep.subr.bf16.mxu1 %v8447_v24  ;;  %5479 = vmatprep.subr.bf16.mxu0 %v4369_v53  ;;  %v4368_v60 = vpack.c.bf16 %v4363_v38, %v4362_v25  ;;  %4859 = vst [vmem:[%s8560_s23 + $0x28] sm:$0xff] %v4363_v38 }
0x1fc4   : > { %5480 = vmatpush3.bf16.xpose.msra.mxu0 %v4369_v53 }
0x1fc5   : > { %4671 = vxpose.xlu1.c.b16.cont [3/4] (short) %v4368_v60, 128  ;;  %4413 = vmatmul.mubr.bf16.gmra.mxu1 %v4367_v33 }
0x1fc6   : > { %5481 = vmatprep.subr.bf16.mxu0 %v4368_v60  ;;  %4569 = vmatpush1.bf16.msra.mxu1 %v8452_v30 }
0x1fc7   : > { %4570 = vmatprep.subr.bf16.mxu1 %v8419_v50  ;;  %4422 = vmatprep.mubr.bf16.mxu1 %v8907_v42 }
0x1fc9   : > { %4672 = vxpose.xlu1.c.b16.end [4/4] (short) %v4369_v53, 128 }
0x1fca   : > { %4571 = vmatpush1.bf16.msra.mxu1 %v8423_v51 }
0x1fcc   : > { %5482 = vmatpush3.bf16.xpose.msra.mxu0 %v4368_v60 }
0x1fcd   : > { %4423 = vmatmul.mubr.bf16.gmra.mxu1 %v4368_v60  ;;  %5483 = vmatprep.subr.bf16.mxu0 %v4367_v33 }
0x1fce   : > { %4432 = vmatprep.mubr.bf16.mxu1 %v8907_v42 }
0x1fd4   : > { %5484 = vmatpush3.bf16.xpose.msra.mxu0 %v4367_v33 }
0x1fd5   : > { %4433 = vmatmul.mubr.bf16.gmra.mxu1 %v4369_v53  ;;  %5485 = vmatprep.subr.bf16.mxu0 %v4366_v47 }
0x1fd6   : > { %4588 = vmatprep.mubr.bf16.mxu1 %v8907_v42 }
0x1fdc   : > { %5486 = vmatpush3.bf16.xpose.msra.mxu0 %v4366_v47 }
0x1fe3   : > { %5488 = vmatmul.mubr.bf16.vlgmr.msra.gmra.mxu0 %v4367_v33 }
0x1fe4   : > { %5491 = vmatprep.mubr.bf16.mxu0 %v4368_v60 }
0x1feb   : > { %5492 = vmatmul.mubr.bf16.gmra.mxu0 %v4369_v53 }
0x1fec   : > { %4741 = vmatprep.mubr.bf16.mxu0 %v8907_v42 }
0x207d   : > { %v4404_v0 = vpop.f32.mrf.mxu1 }
0x207f   : > { %v4406_v61 = vpop.f32.mrf.mxu1 }
0x2081   : > { %v4408_v28 = vpop.f32.mrf.mxu1 }
0x2083   : > { %v4410_v54 = vpop.f32.mrf.mxu1 }
0x2085   : > { %v4414_v22 = vpop.f32.mrf.mxu1 }
0x2087   : > { %v8599_v13 = vpop.f32.mrf.mxu1 }
0x2089   : > { %v4418_v52 = vpop.f32.mrf.mxu1 }
0x208b   : > { %v4420_v12 = vpop.f32.mrf.mxu1 }
0x208d   : > { %v8601_v19 = vpop.f32.mrf.mxu1 }
0x208f   : > { %v8603_v20 = vpop.f32.mrf.mxu1 }
0x2091   : > { %v8605_v46 = vpop.f32.mrf.mxu1 }
0x2093   : > { %v8607_v36 = vpop.f32.mrf.mxu1 }
0x2095   : > { %v8609_v18 = vpop.f32.mrf.mxu1 }
0x2097   : > { %v8611_v40 = vpop.f32.mrf.mxu1 }
0x2099   : > { %v8613_v58 = vpop.f32.mrf.mxu1 }
0x209b   : > { %v8615_v33 = vpop.f32.mrf.mxu1 }
0x20a3   : > { %v5489_v50 = vpop.f32.mrf.mxu0 }
0x20a5   : > { %v4477_v24 = vpop.f32.mrf.mxu0 }
0x20a7   : > { %v5490_v30 = vpop.f32.mrf.mxu0 }
0x20a8   : > { %v4509_v6 = vpack.c.bf16 %v5490_v30, %v5489_v50 }
0x20a9   : > { %v4480_v51 = vpop.f32.mrf.mxu0 }
0x20aa   : > { %v4508_v15 = vpack.c.bf16 %v4480_v51, %v4477_v24 }
0x20ab   : > { %v5493_v9 = vpop.f32.mrf.mxu0 }
0x20ac   : > { %4528 = vxpose.xlu0.c.b16.start [1/4] (short) (narrow) %v4508_v15, 64 }
0x20ad   : > { %v4493_v62 = vpop.f32.mrf.mxu0 }
0x20af   : > { %v5494_v3 = vpop.f32.mrf.mxu0 }
0x20b0   : > { %4529 = vxpose.xlu0.c.b16.cont [2/4] (short) (narrow) %v4509_v6, 64  ;;  %v4511_v31 = vpack.c.bf16 %v5494_v3, %v5493_v9  ;;  %v4512_v9 = vmul.f32 %v4404_v0, %v8415_v1 }
0x20b1   : > { %v4496_v56 = vpop.f32.mrf.mxu0 }
0x20b2   : > { %v4510_v29 = vpack.c.bf16 %v4496_v56, %v4493_v62  ;;  %v4514_v62 = vmul.f32 %v4408_v28, %v8409_v26  ;;  %v4513_v56 = vmul.f32 %v4406_v61, %v8411_v34 }
0x20b4   : > { %4530 = vxpose.xlu0.c.b16.cont [3/4] (short) (narrow) %v4510_v29, 64  ;;  %v4515_v29 = vmul.f32 %v4410_v54, %v8413_v17 }
0x20b8   : > { %4531 = vxpose.xlu0.c.b16.end [4/4] (short) (narrow) %v4511_v31, 64 }
0x210e   : > { %v4536_v57 = vpop.trf.xlu0 }
0x210f   : > { %5111 = vmatmul.mubr.msk.bf16.vlgmr.msra.gmra.mxu1 %vm665_vm0, %v4536_v57 }
0x2110   : > { %4598 = vmatprep.mubr.bf16.mxu1 %v8907_v42 }
0x2112   : > { %v4537_v14 = vpop.trf.xlu0 }
0x2116   : > { %v4538_v11 = vpop.trf.xlu0 }
0x2117   : > { %5112 = vmatmul.mubr.msk.bf16.gmra.mxu1 %vm665_vm0, %v4537_v14 }
0x2118   : > { %4608 = vmatprep.mubr.bf16.mxu1 %v8907_v42 }
0x211a   : > { %v4539_v7 = vpop.trf.xlu0 }
0x211f   : > { %5113 = vmatmul.mubr.msk.bf16.gmra.mxu1 %vm665_vm0, %v4538_v11 }
0x2120   : > { %4618 = vmatprep.mubr.bf16.mxu1 %v8907_v42 }
0x2127   : > { %5114 = vmatmul.mubr.msk.bf16.gmra.mxu1 %vm665_vm0, %v4539_v7 }
0x21cf   : > { %v4590_v32 = vpop.f32.mrf.mxu1 }
0x21d0   : > { %v4591_v39 = vadd.f32 1e-06, %v4590_v32 }
0x21d1   : > { %v4592_v47 = vpop.f32.mrf.mxu1 }
0x21d2   : > { %v4593_v63 = vadd.f32 1e-06, %v4592_v47  ;;  %5954 = vrcp.f32 %v4591_v39  ;;  %v4516_v39 = vmul.f32 %v4414_v22, %v8442_v21  ;;  %v4518_v47 = vmul.f32 %v4418_v52, %v8436_v10 }
0x21d3   : > { %v4594_v5 = vpop.f32.mrf.mxu1 }
0x21d4   : > { %v4595_v8 = vadd.f32 1e-06, %v4594_v5  ;;  %5956 = vrcp.f32 %v4593_v63 }
0x21d5   : > { %v4596_v25 = vpop.f32.mrf.mxu1 }
0x21d6   : > { %5958 = vrcp.f32 %v4595_v8  ;;  %v4597_v43 = vadd.f32 1e-06, %v4596_v25  ;;  %v4517_v8 = vmul.f32 %v8599_v13, %v8438_v16  ;;  %v4519_v25 = vmul.f32 %v4420_v12, %v8440_v41 }
0x21d7   : > { %v4600_v59 = vpop.f32.mrf.mxu1 }
0x21d8   : > { %5960 = vrcp.f32 %v4597_v43  ;;  %v4601_v37 = vadd.f32 1e-06, %v4600_v59 }
0x21d9   : > { %v4602_v49 = vpop.f32.mrf.mxu1 }
0x21da   : > { %v4603_v2 = vadd.f32 1e-06, %v4602_v49  ;;  %5962 = vrcp.f32 %v4601_v37 }
0x21db   : > { %v4604_v53 = vpop.f32.mrf.mxu1 }
0x21dc   : > { %v4605_v38 = vadd.f32 1e-06, %v4604_v53  ;;  %5964 = vrcp.f32 %v4603_v2 }
0x21dd   : > { %v4606_v60 = vpop.f32.mrf.mxu1 }
0x21de   : > { %5966 = vrcp.f32 %v4605_v38  ;;  %v4607_v50 = vadd.f32 1e-06, %v4606_v60 }
0x21df   : > { %v4610_v24 = vpop.f32.mrf.mxu1  ;;  %v5955_v30 = vpop.eup %5954 }
0x21e0   : > { %5968 = vrcp.f32 %v4607_v50  ;;  %v8621_v31 = vmul.f32 %v5955_v30, %v4512_v9  ;;  %v4611_v50 = vadd.f32 1e-06, %v4610_v24  ;;  %v4523_v9 = vmul.f32 %v8607_v36, %v8468_v35 }
0x21e1   : > { %v4612_v51 = vpop.f32.mrf.mxu1  ;;  %v5957_v15 = vpop.eup %5956  ;;  %v4527_v24 = vmul.f32 %v8615_v33, %v8494_v4  ;;  %v4522_v35 = vmul.f32 %v8605_v46, %v8464_v27  ;;  %v4520_v4 = vmul.f32 %v8601_v19, %v8470_v44 }
0x21e2   : > { %v8625_v7 = vmul.f32 %v5957_v15, %v4513_v56  ;;  %v4613_v26 = vadd.f32 1e-06, %v4612_v51  ;;  %v4526_v51 = vmul.f32 %v8613_v58, %v8490_v48  ;;  %v4677_v27 = vpop.trf.xlu1 }
0x21e3   : > { %v5959_v6 = vpop.eup %5958  ;;  %v4614_v3 = vpop.f32.mrf.mxu1 }
0x21e4   : > { %v8623_v57 = vmul.f32 %v5959_v6, %v4514_v62  ;;  %5970 = vrcp.f32 %v4613_v26  ;;  %v4615_v38 = vadd.f32 1e-06, %v4614_v3  ;;  %v4525_v62 = vmul.f32 %v8611_v40, %v8492_v55 }
0x21e5   : > { %v5961_v14 = vpop.eup %5960  ;;  %v4616_v11 = vpop.f32.mrf.mxu1  ;;  %v4524_v3 = vmul.f32 %v8609_v18, %v8496_v23 }
0x21e6   : > { %v8627_v32 = vmul.f32 %v5961_v14, %v4515_v29  ;;  %v4661_v1 = vpack.c.bf16 %v8623_v57, %v8621_v31  ;;  %v4617_v28 = vadd.f32 1e-06, %v4616_v11  ;;  %v4521_v14 = vmul.f32 %v8603_v20, %v8466_v45  ;;  %v4678_v44 = vpop.trf.xlu1 }
0x21e7   : > { %v4620_v0 = vpop.f32.mrf.mxu1  ;;  %v5963_v17 = vpop.eup %5962 }
0x21e8   : > { %v4662_v34 = vpack.c.bf16 %v8627_v32, %v8625_v7  ;;  %v4621_v43 = vadd.f32 1e-06, %v4620_v0  ;;  %5972 = vrcp.f32 %v4617_v28  ;;  %v4649_v49 = vmul.f32 %v5963_v17, %v4516_v39 }
0x21e9   : > { %v4622_v61 = vpop.f32.mrf.mxu1  ;;  %v5965_v54 = vpop.eup %5964 }
0x21ea   : > { %v4623_v63 = vadd.f32 1e-06, %v4622_v61  ;;  %v4650_v22 = vmul.f32 %v5965_v54, %v4517_v8  ;;  %v4679_v19 = vpop.trf.xlu1 }
0x21eb   : > { %v5967_v5 = vpop.eup %5966  ;;  %v4624_v59 = vpop.f32.mrf.mxu1 }
0x21ec   : > { %v4625_v37 = vadd.f32 1e-06, %v4624_v59  ;;  %v4651_v2 = vmul.f32 %v5967_v5, %v4518_v47  ;;  %5974 = vrcp.f32 %v4623_v63 }
0x21ed   : > { %v5969_v53 = vpop.eup %5968  ;;  %v4626_v21 = vpop.f32.mrf.mxu1 }
0x21ee   : > { %5976 = vrcp.f32 %v4625_v37  ;;  %v4627_v10 = vadd.f32 1e-06, %v4626_v21  ;;  %v4652_v52 = vmul.f32 %v5969_v53, %v4519_v25  ;;  %v4663_v60 = vpack.c.bf16 %v4651_v2, %v4649_v49  ;;  %v4680_v20 = vpop.trf.xlu1 }
0x21ef   : > { %5978 = vrcp.f32 %v4621_v43 }
0x21f0   : > { %5980 = vrcp.f32 %v4627_v10  ;;  %v4664_v16 = vpack.c.bf16 %v4652_v52, %v4650_v22 }
0x21f1   : > { %5982 = vrcp.f32 %v4615_v38  ;;  %v5971_v41 = vpop.eup %5970 }
0x21f2   : > { %5984 = vrcp.f32 %v4611_v50  ;;  %v4654_v26 = vmul.f32 %v5971_v41, %v4521_v14  ;;  %v4681_v46 = vpop.trf.xlu1 }
0x21f5   : > { %v5973_v13 = vpop.eup %5972 }
0x21f6   : > { %v4656_v11 = vmul.f32 %v5973_v13, %v4523_v9  ;;  %v4682_v31 = vpop.trf.xlu1 }
0x21f8   : > { %v4666_v18 = vpack.c.bf16 %v4656_v11, %v4654_v26 }
0x21f9   : > { %v5975_v12 = vpop.eup %5974 }
0x21fa   : > { %v4658_v48 = vmul.f32 %v5975_v12, %v4525_v62  ;;  %v4683_v57 = vpop.trf.xlu1 }
0x21fb   : > { %v5977_v30 = vpop.eup %5976 }
0x21fc   : > { %v5979_v15 = vpop.eup %5978  ;;  %v4659_v56 = vmul.f32 %v5977_v30, %v4526_v51 }
0x21fd   : > { %v5981_v6 = vpop.eup %5980  ;;  %v4657_v36 = vmul.f32 %v5979_v15, %v4524_v3 }
0x21fe   : > { %v5983_v29 = vpop.eup %5982  ;;  %v4660_v58 = vmul.f32 %v5981_v6, %v4527_v24  ;;  %v4684_v7 = vpop.trf.xlu1 }
0x21ff   : > { %v5985_v55 = vpop.eup %5984  ;;  %v4667_v33 = vpack.c.bf16 %v4659_v56, %v4657_v36  ;;  %v4655_v23 = vmul.f32 %v5983_v29, %v4522_v35 }
0x2200   : > { %v4668_v40 = vpack.c.bf16 %v4660_v58, %v4658_v48  ;;  %v4653_v0 = vmul.f32 %v5985_v55, %v4520_v4 }
0x2202   : > { %4717 = vmatprep.subr.bf16.mxu0 %v4668_v40  ;;  %v4665_v45 = vpack.c.bf16 %v4655_v23, %v4653_v0 }
0x2203   : > { %4718 = vmatpush1.bf16.msra.mxu0 %v4667_v33 }
0x2204   : > { %4719 = vmatprep.subr.bf16.mxu0 %v4666_v18 }
0x2207   : > { %4720 = vmatpush1.bf16.msra.mxu0 %v4665_v45 }
0x2208   : > { %4721 = vmatprep.subr.bf16.mxu0 %v4664_v16 }
0x220b   : > { %4722 = vmatpush1.bf16.msra.mxu0 %v4663_v60 }
0x220c   : > { %4723 = vmatprep.subr.bf16.mxu0 %v4662_v34 }
0x220f   : > { %4724 = vmatpush1.bf16.msra.mxu0 %v4661_v1 }
0x2212   : > { %5115 = vmatmul.mubr.msk.bf16.vlgmr.msra.gmra.mxu0 %vm665_vm0, %v4677_v27 }
0x2213   : > { %4751 = vmatprep.mubr.bf16.mxu0 %v8907_v42 }
0x221a   : > { %5116 = vmatmul.mubr.msk.bf16.gmra.mxu0 %vm665_vm0, %v4678_v44 }
0x221b   : > { %4761 = vmatprep.mubr.bf16.mxu0 %v8907_v42 }
0x2222   : > { %5117 = vmatmul.mubr.msk.bf16.gmra.mxu0 %vm665_vm0, %v4679_v19 }
0x2223   : > { %4771 = vmatprep.mubr.bf16.mxu0 %v8907_v42 }
0x222a   : > { %5118 = vmatmul.mubr.msk.bf16.gmra.mxu0 %vm665_vm0, %v4680_v20 }
0x222b   : > { %4781 = vmatprep.mubr.bf16.mxu0 %v8907_v42 }
0x2232   : > { %5119 = vmatmul.mubr.msk.bf16.gmra.mxu0 %vm665_vm0, %v4681_v46 }
0x2233   : > { %4791 = vmatprep.mubr.bf16.mxu0 %v8907_v42 }
0x223a   : > { %5120 = vmatmul.mubr.msk.bf16.gmra.mxu0 %vm665_vm0, %v4682_v31 }
0x223b   : > { %4801 = vmatprep.mubr.bf16.mxu0 %v8907_v42 }
0x2242   : > { %5121 = vmatmul.mubr.msk.bf16.gmra.mxu0 %vm665_vm0, %v4683_v57 }
0x2243   : > { %4811 = vmatprep.mubr.bf16.mxu0 %v8907_v42 }
0x224a   : > { %5122 = vmatmul.mubr.msk.bf16.gmra.mxu0 %vm665_vm0, %v4684_v7 }
0x224b   : > { %6111 = shalt.err (!%p6108_p4)
}
0x224c   : > { %s6112_s8 = scalar_lea.hbm %s8680_s9, 1024  ;;  %s6116_s7 = scalar_lea.hbm %s8795_s3, 2048 }
0x224d   : > { %p6113_p9 = scmp.ne.s32.totalorder %s8680_s9, %s6112_s8  ;;  %p6117_p5 = scmp.lt.s32.totalorder %s8680_s9, %s8795_s3 }
0x224e   : > { %p6118_p8 = scmp.lt.s32.totalorder %s6116_s7, %s6112_s8 }
0x224f   : > { %p6114_p11 = pnand %p6113_p9, %p9032_p1 }
0x2250   : > { %p6119_p6 = por %p6118_p8, %p6117_p5 }
0x2251   : > { %p6115_p3 = pneg %p6114_p11 }
0x2253   : > { %p6120_p13 = pnand %p6119_p6, %p6115_p3 }
0x2255   : > { %6123 = shalt.err (!%p6120_p13)
}
0x2256   : > { %s6204_s23 = smov 128   ;;  %s6205_s10 = smov 8  }
0x2257   : > { %5500 = dma.vmem_to_hbm [thread:$0]  (%p9032_p1), %s8682_s19, 1024, %s8680_s9, %s4868_s17, %s6204_s23, %s6204_s23, %s6205_s10  }
0x2258   : > { %s5037_s27 = sshll.u32 %s6379_s6, 8  ;;  %s5133_s19 = sshll.u32 %s6250_s16, 12 }
0x2259   : > { %s8708_s4 = scalar_lea.vmem [#allocation7], %s5037_s27  ;;  %s8745_s11 = scalar_lea.hbm %s8794_s2, %s5133_s19 }
0x225a   : > { %s4881_s9 = sshll.u32 %s8708_s4, 4  ;;  %s4863_s20 = scalar_lea.sflag [#allocation4], %s6379_s6  ;;  %s8747_s9 = int_to_ptr.vmem [resolvable:$true] %s4881_s9 }
0x225b   : > { %s6124_s22 = scalar_lea.vmem %s8747_s9, 4096  ;;  %s6206_s16 = smov [#allocation7]  }
0x225c   : > { %p6125_p12 = scmp.ne.s32.totalorder %s8747_s9, %s6124_s22  ;;  %s6128_s8 = sshll.u32 %s6206_s16, 4  ;;  %s6129_s8 = int_to_ptr.vmem [resolvable:$false] %s6128_s8 }
0x225d   : > { %s6130_s28 = scalar_lea.vmem %s6129_s8, 8192  ;;  %p6131_p0 = scmp.lt.s32.totalorder %s8747_s9, %s6129_s8 }
0x225e   : > { %p6126_p7 = pnand %p6125_p12, %p9032_p1  ;;  %p6132_p2 = scmp.lt.s32.totalorder %s6130_s28, %s6124_s22 }
0x2260   : > { %p6127_p10 = pneg %p6126_p7  ;;  %p6133_p4 = por %p6132_p2, %p6131_p0 }
0x2262   : > { %p6134_p9 = pnand %p6133_p4, %p6127_p10 }
0x22d2   : > { %v4743_v42 = vpop.f32.mrf.mxu0 }
0x22d3   : > { %4822 = vst [vmem:[%s8708_s4] sm:$0xff] %v4743_v42 }
0x22d4   : > { %v4745_v32 = vpop.f32.mrf.mxu0 }
0x22d5   : > { %4823 = vst [vmem:[%s8708_s4 + $0x8] sm:$0xff] %v4745_v32 }
0x22d6   : > { %v4747_v1 = vpop.f32.mrf.mxu0 }
0x22d7   : > { %4824 = vst [vmem:[%s8708_s4 + $0x10] sm:$0xff] %v4747_v1 }
0x22d8   : > { %v4749_v28 = vpop.f32.mrf.mxu0 }
0x22d9   : > { %4825 = vst [vmem:[%s8708_s4 + $0x18] sm:$0xff] %v4749_v28 }
0x22da   : > { %v4753_v34 = vpop.f32.mrf.mxu0 }
0x22db   : > { %4826 = vst [vmem:[%s8708_s4 + $0x20] sm:$0xff] %v4753_v34 }
0x22dc   : > { %v4755_v17 = vpop.f32.mrf.mxu0 }
0x22dd   : > { %4827 = vst [vmem:[%s8708_s4 + $0x28] sm:$0xff] %v4755_v17 }
0x22de   : > { %v4757_v61 = vpop.f32.mrf.mxu0 }
0x22df   : > { %4828 = vst [vmem:[%s8708_s4 + $0x30] sm:$0xff] %v4757_v61 }
0x22e0   : > { %v4759_v54 = vpop.f32.mrf.mxu0 }
0x22e1   : > { %4829 = vst [vmem:[%s8708_s4 + $0x38] sm:$0xff] %v4759_v54 }
0x22e2   : > { %v4763_v39 = vpop.f32.mrf.mxu0 }
0x22e3   : > { %4830 = vst [vmem:[%s8708_s4 + $0x40] sm:$0xff] %v4763_v39 }
0x22e4   : > { %v4765_v47 = vpop.f32.mrf.mxu0 }
0x22e5   : > { %4831 = vst [vmem:[%s8708_s4 + $0x48] sm:$0xff] %v4765_v47 }
0x22e6   : > { %v4767_v63 = vpop.f32.mrf.mxu0 }
0x22e7   : > { %4832 = vst [vmem:[%s8708_s4 + $0x50] sm:$0xff] %v4767_v63 }
0x22e8   : > { %v4769_v5 = vpop.f32.mrf.mxu0 }
0x22e9   : > { %4833 = vst [vmem:[%s8708_s4 + $0x58] sm:$0xff] %v4769_v5 }
0x22ea   : > { %v4773_v8 = vpop.f32.mrf.mxu0 }
0x22eb   : > { %4834 = vst [vmem:[%s8708_s4 + $0x60] sm:$0xff] %v4773_v8 }
0x22ec   : > { %v4775_v25 = vpop.f32.mrf.mxu0 }
0x22ed   : > { %4835 = vst [vmem:[%s8708_s4 + $0x68] sm:$0xff] %v4775_v25 }
0x22ee   : > { %v4777_v43 = vpop.f32.mrf.mxu0 }
0x22ef   : > { %4836 = vst [vmem:[%s8708_s4 + $0x70] sm:$0xff] %v4777_v43 }
0x22f0   : > { %v4779_v59 = vpop.f32.mrf.mxu0 }
0x22f1   : > { %4837 = vst [vmem:[%s8708_s4 + $0x78] sm:$0xff] %v4779_v59 }
0x22f2   : > { %v4783_v37 = vpop.f32.mrf.mxu0 }
0x22f3   : > { %4838 = vst [vmem:[%s8708_s4 + $0x80] sm:$0xff] %v4783_v37 }
0x22f4   : > { %v4785_v49 = vpop.f32.mrf.mxu0 }
0x22f5   : > { %4839 = vst [vmem:[%s8708_s4 + $0x88] sm:$0xff] %v4785_v49 }
0x22f6   : > { %v4787_v2 = vpop.f32.mrf.mxu0 }
0x22f7   : > { %4840 = vst [vmem:[%s8708_s4 + $0x90] sm:$0xff] %v4787_v2 }
0x22f8   : > { %v4789_v53 = vpop.f32.mrf.mxu0 }
0x22f9   : > { %4841 = vst [vmem:[%s8708_s4 + $0x98] sm:$0xff] %v4789_v53 }
0x22fa   : > { %v4793_v38 = vpop.f32.mrf.mxu0 }
0x22fb   : > { %4842 = vst [vmem:[%s8708_s4 + $0xa0] sm:$0xff] %v4793_v38 }
0x22fc   : > { %v4795_v21 = vpop.f32.mrf.mxu0 }
0x22fd   : > { %4843 = vst [vmem:[%s8708_s4 + $0xa8] sm:$0xff] %v4795_v21 }
0x22fe   : > { %v4797_v22 = vpop.f32.mrf.mxu0 }
0x22ff   : > { %4844 = vst [vmem:[%s8708_s4 + $0xb0] sm:$0xff] %v4797_v22 }
0x2300   : > { %v4799_v10 = vpop.f32.mrf.mxu0 }
0x2301   : > { %4845 = vst [vmem:[%s8708_s4 + $0xb8] sm:$0xff] %v4799_v10 }
0x2302   : > { %v4803_v52 = vpop.f32.mrf.mxu0 }
0x2303   : > { %4846 = vst [vmem:[%s8708_s4 + $0xc0] sm:$0xff] %v4803_v52 }
0x2304   : > { %v4805_v60 = vpop.f32.mrf.mxu0 }
0x2305   : > { %4847 = vst [vmem:[%s8708_s4 + $0xc8] sm:$0xff] %v4805_v60 }
0x2306   : > { %v4807_v50 = vpop.f32.mrf.mxu0 }
0x2307   : > { %4848 = vst [vmem:[%s8708_s4 + $0xd0] sm:$0xff] %v4807_v50 }
0x2308   : > { %v4809_v16 = vpop.f32.mrf.mxu0 }
0x2309   : > { %4849 = vst [vmem:[%s8708_s4 + $0xd8] sm:$0xff] %v4809_v16 }
0x230a   : > { %v4813_v41 = vpop.f32.mrf.mxu0 }
0x230b   : > { %4850 = vst [vmem:[%s8708_s4 + $0xe0] sm:$0xff] %v4813_v41 }
0x230c   : > { %v4815_v13 = vpop.f32.mrf.mxu0 }
0x230d   : > { %4851 = vst [vmem:[%s8708_s4 + $0xe8] sm:$0xff] %v4815_v13 }
0x230e   : > { %v4817_v12 = vpop.f32.mrf.mxu0 }
0x230f   : > { %4852 = vst [vmem:[%s8708_s4 + $0xf0] sm:$0xff] %v4817_v12 }
0x2310   : > { %v4819_v30 = vpop.f32.mrf.mxu0 }
0x2311   : > { %4853 = vst [vmem:[%s8708_s4 + $0xf8] sm:$0xff] %v4819_v30 }
0x2312   : > { %6137 = shalt.err (!%p6134_p9)
}
0x2313   : > { %s6138_s29 = scalar_lea.hbm %s8745_s11, 4096  ;;  %s6142_s5 = scalar_lea.hbm %s8794_s2, 8192 }
0x2314   : > { %p6139_p11 = scmp.ne.s32.totalorder %s8745_s11, %s6138_s29  ;;  %p6143_p8 = scmp.lt.s32.totalorder %s8745_s11, %s8794_s2 }
0x2315   : > { %p6144_p6 = scmp.lt.s32.totalorder %s6142_s5, %s6138_s29 }
0x2316   : > { %p6140_p3 = pnand %p6139_p11, %p9032_p1 }
0x2317   : > { %p6145_p13 = por %p6144_p6, %p6143_p8 }
0x2318   : > { %p6141_p5 = pneg %p6140_p3 }
0x231a   : > { %p6146_p12 = pnand %p6145_p13, %p6141_p5 }
0x231c   : > { %6149 = shalt.err (!%p6146_p12)
}
0x231d   : > { %s6207_s27 = smov 256   ;;  %s6208_s4 = smov 16  }
0x231e   : > { %5499 = dma.vmem_to_hbm [thread:$0]  (%p9032_p1), %s8747_s9, 4096, %s8745_s11, %s4863_s20, %s6207_s27, %s6207_s27, %s6208_s4  }
0x231f PF: > { %s4912_s19 = sand.u32 1, %s6184_s12   ;;  %p9033_p7 = scmp.ne.s32.totalorder %s8889_s25, 0 }
0x2320   : > { %p9034_p10 = scmp.ge.s32.totalorder %s6196_s15, 2  ;;  %s4913_s17 = scalar_lea.sflag [#allocation4], %s4912_s19 }
0x2322   : > { %p5511_p0 = pnand %p9034_p10, %p9033_p7 }
0x2324   : > { %p5512_p2 = pneg %p5511_p0 }
0x2326   : > { %6175 = dma.done.wait (%p5512_p2), %s4913_s17, 4096  }
0x2327   : > { %6177 = vsyncadd (%p5512_p2), %s4913_s17, 4294963200  ;;  %s4922_s26 = scalar_lea.sflag [#allocation9], %s4912_s19 }
0x2328   : > { %6179 = dma.done.wait (%p5512_p2), %s4922_s26, 1024  }
0x2329   : > { %6181 = vsyncadd (%p5512_p2), %s4922_s26, 4294966272  ;;  %p23_p1 = scmp.ge.s32.totalorder %s6254_s18, 4   ;;  %s9035_s12 = smov %s6188_s13 }
0x232a   : > { %s9036_s13 = smov %s6192_s14  ;;  %s9037_s14 = smov %s6266_s21 }
0x232b   : > { %s9038_s15 = smov %s6254_s18  ;;  %25 = sbr.rel (!%p23_p1) target bundleno = 9 (0x9), region = 103 }
0x2330   :  { %4927 = vsyncpa [#allocation3], 1 }
0x2331   :  { %4929 = vsyncpa [#allocation3 + $0x1], 1 }
0x2332   :  { %4930 = vsyncpa [#allocation6], 1 }
0x2333   :  { %4932 = vsyncpa [#allocation6 + $0x1], 1 }
0x2334   :  { %4933 = vsyncpa [#allocation4], 1 }
0x2335   :  { %4935 = vsyncpa [#allocation4 + $0x1], 1 }
0x2336   :  { %4936 = vsyncpa [#allocation9], 1 }
0x2337   :  { %4938 = vsyncpa [#allocation9 + $0x1], 1 }

</bundles_post_ra>
